<compile_context>
chip_gen: v7x
topology: tpu7x:2x2x1
jax: 0.10.0
libtpu: 0.0.40
codegen_flags: <defaults>
</compile_context>

<pallas_src>
import functools

import jax
import jax.numpy as jnp
from jax.experimental import pallas as pl
from jax.experimental.pallas import tpu as pltpu

BN_EPS = 1e-5            # nn.BatchNorm2d default eps
ATTN_EPS = 1e-6          # KernelAttention eps (added to k_sum BEFORE the Q contraction, as in torch)
NEG_BIAS = -1e30         # softplus(-1e30) == 0 exactly -> padded Q/K lanes are inert
LANE = 128
SLAB_DTYPE = jnp.bfloat16  # dtype of the conv / att intermediate HBM slabs


def _softplus(x):
    # torch.nn.functional.softplus (beta=1, threshold=20); exp/log only (no log1p lowering needed)
    safe = jnp.minimum(x, 20.0)
    return jnp.where(x > 20.0, x, jnp.log(1.0 + jnp.exp(safe)))


def _round_up(x, m):
    return ((x + m - 1) // m) * m


# ----------------------------------- pass 1: conv + BN1 partial stats ---------------------
def _conv_stats_kernel(cols_ref, w_ref, b_ref, slab_ref, stats_ref):
    # One MXU contraction for all nine 3x3 taps (K = 9*Cin padded to a lane multiple).
    raw = jnp.dot(cols_ref[...], w_ref[...], preferred_element_type=jnp.float32)   # [TR, Cpad] f32
    slab_ref[...] = (raw + b_ref[...]).astype(slab_ref.dtype)
    # Partial BN1 stats on the f32 pre-bias values (bias-shifted accumulation; the wrapper
    # re-adds the bias to the mean).  Emitted per block -> grid axis stays "parallel".
    stats_ref[...] = jnp.zeros_like(stats_ref)
    stats_ref[0:1, :] = jnp.sum(raw, axis=0, keepdims=True)
    stats_ref[1:2, :] = jnp.sum(raw * raw, axis=0, keepdims=True)


# --------------------- pass 2: BN1 + ReLU + kernel attention + BN2 partial stats ----------
def _attention_kernel(slab_ref, aff_ref, wqkv_ref, bqkv_ref, att_ref, stats_ref):
    # aff rows: 0 = BN1 scale, 1 = BN1 shift, 2 = gamma (scalar broadcast over lanes).
    pre = slab_ref[...].astype(jnp.float32)                                         # [N, Cpad]
    feat = jnp.maximum(pre * aff_ref[0:1, :] + aff_ref[1:2, :], 0.0)

    # Fused lane-dense Q|K|V projection: lanes [0,128)->Q, [128,256)->K, [256,256+Cpad)->V.
    proj = jnp.dot(feat.astype(jnp.bfloat16), wqkv_ref[...],
                   preferred_element_type=jnp.float32) + bqkv_ref[...]              # [N, 2*LANE+Cpad]
    q = _softplus(proj[:, 0:LANE])               # padded lanes: bias=-1e30 -> exactly 0
    k = _softplus(proj[:, LANE:2 * LANE])
    v = proj[:, 2 * LANE:]                       # padded lanes exactly 0

    # KV[m, c] = sum_n K[n, m] * V[n, c]   (torch: einsum('bmn,bcn->bmc'))
    kv = jax.lax.dot_general(k.astype(jnp.bfloat16), v.astype(jnp.bfloat16),
                             (((0,), (0,)), ((), ())),
                             preferred_element_type=jnp.float32)                    # [LANE, Cpad]
    k_sum = jnp.sum(k, axis=0, keepdims=True)                                       # [1, LANE]
    denom = jnp.sum(q * (k_sum + ATTN_EPS), axis=1, keepdims=True)                  # [N, 1]
    r = pl.reciprocal(denom, approx=True)        # EUP slot
    r = r * (2.0 - denom * r)                    # one Newton step -> ~exact 1/denom
    wv = jnp.dot(q.astype(jnp.bfloat16), kv.astype(jnp.bfloat16),
                 preferred_element_type=jnp.float32) * r                            # [N, Cpad]

    att = feat + aff_ref[2:3, :] * wv            # residual + gamma * attention
    att_ref[...] = att.astype(att_ref.dtype)

    # Per-image partial BN2 stats (reduced across images in the wrapper).
    stats_ref[...] = jnp.zeros_like(stats_ref)
    stats_ref[0:1, :] = jnp.sum(att, axis=0, keepdims=True)
    stats_ref[1:2, :] = jnp.sum(att * att, axis=0, keepdims=True)


# --------------------------- pass 3: BN2 + channel-major packed store ---------------------
def _finalize_kernel(att_ref, aff_ref, o_ref, *, co8):
    att = att_ref[...].astype(jnp.float32)                                          # [N, Cpad]
    y = att * aff_ref[0:1, :] + aff_ref[1:2, :]                                     # BN2 affine
    # XLU transpose + keep only the real channels: the HBM output stream is a compact
    # channel-major [Cout, N] f32 tile (no 4x lane padding, no wrapper slice/transpose).
    o_ref[...] = jnp.transpose(y)[0:co8, :]


# ----------------------------------------- helpers ----------------------------------------
def _pick_row_block(total_rows, target=1024):
    """Largest multiple-of-8 divisor of total_rows that is <= target.

    Divisibility keeps BN statistics exact without masking partial blocks.  Raise `target`
    toward 2048 on v5e/v6e (128 MiB VMEM); 512-1024 is a good default on v7x (64 MiB).
    """
    if total_rows <= target or total_rows % 8 != 0:
        return total_rows
    cand = (target // 8) * 8
    while cand >= 8:
        if total_rows % cand == 0:
            return cand
        cand -= 8
    return total_rows


def _vmem_limit_bytes(per_step_bytes):
    # Double-buffered blocks + margin, floored at the v5e default scoped VMEM and capped
    # below the physical VMEM of the current generation (64 MiB on v7x, 128 MiB on v5e/v6e).
    try:
        cap = int(pltpu.get_tpu_info().vmem_capacity_bytes) * 3 // 4
    except Exception:  # pragma: no cover - conservative fallback
        cap = 48 * 1024 * 1024
    need = 2 * int(per_step_bytes) + (4 << 20)
    return int(min(max(need, 16 << 20), cap))


# ----------------------------------------- parameters -------------------------------------
def init_params(key, in_chan, out_chan, scale=8):
    d = out_chan // scale
    ks = jax.random.split(key, 8)
    p = {}
    p["conv_w"] = 0.1 * jax.random.normal(ks[0], (out_chan, in_chan, 3, 3), jnp.float32)
    p["conv_b"] = 0.1 * jax.random.normal(ks[1], (out_chan,), jnp.float32)
    p["bn1_w"] = jnp.ones((out_chan,), jnp.float32)
    p["bn1_b"] = jnp.zeros((out_chan,), jnp.float32)
    p["wq"] = 0.1 * jax.random.normal(ks[2], (d, out_chan), jnp.float32)   # 1x1 conv weights
    p["bq"] = 0.1 * jax.random.normal(ks[3], (d,), jnp.float32)
    p["wk"] = 0.1 * jax.random.normal(ks[4], (d, out_chan), jnp.float32)
    p["bk"] = 0.1 * jax.random.normal(ks[5], (d,), jnp.float32)
    p["wv"] = 0.1 * jax.random.normal(ks[6], (out_chan, out_chan), jnp.float32)
    p["bv"] = 0.1 * jax.random.normal(ks[7], (out_chan,), jnp.float32)
    # torch inits gamma to 0 (which zeros the attention branch); use a deterministic nonzero
    # value so the attention path is actually exercised.
    p["gamma"] = jnp.full((1, 1), 0.5, jnp.float32)
    p["bn2_w"] = jnp.ones((out_chan,), jnp.float32)
    p["bn2_b"] = jnp.zeros((out_chan,), jnp.float32)
    return p


# ----------------------------------------- wrapper ----------------------------------------
def attention_enhancement_forward(x_nchw, p, row_block=None):
    B, Cin, H, W = x_nchw.shape
    Cout = p["conv_w"].shape[0]
    D = p["wq"].shape[0]
    N = H * W
    R = B * N
    Cpad = _round_up(Cout, LANE)
    Co8 = _round_up(Cout, 8)
    Kc = 9 * Cin
    Kpad = _round_up(Kc, LANE)
    QW = 2 * LANE + Cpad                     # fused Q|K|V projection width
    assert D <= LANE, "query/key dim must fit in one lane group"

    TR = _pick_row_block(R) if row_block is None else int(row_block)
    assert R % TR == 0, "row_block must divide B*H*W (keeps BN stats exact)"
    nblk = R // TR
    f32 = jnp.float32
    cnt = float(R)

    # ---- wrapper-side im2col (lane-dense bf16): [B*N, Kpad] -------------------------------
    x = jnp.transpose(x_nchw, (0, 2, 3, 1)).astype(f32)                  # NHWC
    xpad = jnp.pad(x, ((0, 0), (1, 1), (1, 1), (0, 0)))
    cols = jnp.concatenate(
        [xpad[:, dy:dy + H, dx:dx + W, :] for dy in range(3) for dx in range(3)],
        axis=-1).reshape(R, Kc)
    cols = jnp.pad(cols, ((0, 0), (0, Kpad - Kc))).astype(jnp.bfloat16)

    # conv weight as a single [Kpad, Cpad] matrix (tap-major, input-channel-minor rows)
    wmat = jnp.transpose(p["conv_w"], (2, 3, 1, 0)).reshape(Kc, Cout)
    wmat = jnp.pad(wmat, ((0, Kpad - Kc), (0, Cpad - Cout))).astype(jnp.bfloat16)
    bias = jnp.pad(p["conv_b"], (0, Cpad - Cout)).reshape(1, Cpad).astype(f32)

    # ---- pass 1: conv + BN1 partial stats (grid over row blocks, "parallel") --------------
    p1_bytes = (TR * Kpad * 2 + TR * Cpad * 2 + Kpad * Cpad * 2
                + Cpad * 4 + 8 * Cpad * 4 + 2 * TR * Cpad * 4)
    slab, stats1 = pl.pallas_call(
        _conv_stats_kernel,
        grid=(nblk,),
        in_specs=[pl.BlockSpec((TR, Kpad), lambda i: (i, 0)),
                  pl.BlockSpec((Kpad, Cpad), lambda i: (0, 0)),
                  pl.BlockSpec((1, Cpad), lambda i: (0, 0))],
        out_specs=(pl.BlockSpec((TR, Cpad), lambda i: (i, 0)),
                   pl.BlockSpec((None, 8, Cpad), lambda i: (i, 0, 0))),
        out_shape=(jax.ShapeDtypeStruct((R, Cpad), SLAB_DTYPE),
                   jax.ShapeDtypeStruct((nblk, 8, Cpad), f32)),
        compiler_params=pltpu.CompilerParams(
            dimension_semantics=("parallel",),
            vmem_limit_bytes=_vmem_limit_bytes(p1_bytes)),
    )(cols, wmat, bias)

    # ---- finalize BN1 (a few KB of XLA math) ----------------------------------------------
    # Padded output channels get gain 0 so they stay exactly 0 through the whole pipeline.
    g1 = jnp.pad(p["bn1_w"], (0, Cpad - Cout)).astype(f32)
    b1 = jnp.pad(p["bn1_b"], (0, Cpad - Cout)).astype(f32)
    raw_mean = jnp.sum(stats1[:, 0, :], axis=0) / cnt
    raw_msq = jnp.sum(stats1[:, 1, :], axis=0) / cnt
    mean1 = raw_mean + bias[0]                                # re-add the conv bias shift
    var1 = jnp.maximum(raw_msq - raw_mean * raw_mean, 0.0)
    scale1 = g1 * jax.lax.rsqrt(var1 + BN_EPS)
    shift1 = b1 - mean1 * scale1
    gamma = jnp.broadcast_to(p["gamma"].reshape(()), (Cpad,)).astype(f32)
    aff1 = jnp.zeros((8, Cpad), f32).at[0].set(scale1).at[1].set(shift1).at[2].set(gamma)

    # ---- fused Q|K|V projection weights ----------------------------------------------------
    #   lanes [0,LANE)        -> Q (D real lanes; padded lanes bias=-1e30 -> softplus == 0)
    #   lanes [LANE,2*LANE)   -> K (same)
    #   lanes [2*LANE,2*LANE+Cpad) -> V (Cout real lanes; padded lanes exactly 0)
    wqkv = jnp.zeros((Cpad, QW), f32)
    wqkv = wqkv.at[:Cout, 0:D].set(p["wq"].T)
    wqkv = wqkv.at[:Cout, LANE:LANE + D].set(p["wk"].T)
    wqkv = wqkv.at[:Cout, 2 * LANE:2 * LANE + Cout].set(p["wv"].T)
    wqkv = wqkv.astype(jnp.bfloat16)
    bqkv = jnp.zeros((QW,), f32)
    bqkv = bqkv.at[0:2 * LANE].set(NEG_BIAS)
    bqkv = bqkv.at[0:D].set(p["bq"])
    bqkv = bqkv.at[LANE:LANE + D].set(p["bk"])
    bqkv = bqkv.at[2 * LANE:2 * LANE + Cout].set(p["bv"])
    bqkv = bqkv.reshape(1, QW)

    # ---- pass 2: BN1+ReLU, linear attention, residual, BN2 partial stats (grid over B) ----
    slab3 = slab.reshape(B, N, Cpad)          # free reshape of the contiguous slab
    p2_bytes = (2 * N * Cpad * 2 + Cpad * QW * 2 + QW * 4
                + 2 * 8 * Cpad * 4 + 6 * N * max(Cpad, QW) * 4)
    att, stats2 = pl.pallas_call(
        _attention_kernel,
        grid=(B,),
        in_specs=[pl.BlockSpec((None, N, Cpad), lambda b: (b, 0, 0)),
                  pl.BlockSpec((8, Cpad), lambda b: (0, 0)),
                  pl.BlockSpec((Cpad, QW), lambda b: (0, 0)),
                  pl.BlockSpec((1, QW), lambda b: (0, 0))],
        out_specs=(pl.BlockSpec((None, N, Cpad), lambda b: (b, 0, 0)),
                   pl.BlockSpec((None, 8, Cpad), lambda b: (b, 0, 0))),
        out_shape=(jax.ShapeDtypeStruct((B, N, Cpad), SLAB_DTYPE),
                   jax.ShapeDtypeStruct((B, 8, Cpad), f32)),
        compiler_params=pltpu.CompilerParams(
            dimension_semantics=("parallel",),
            vmem_limit_bytes=_vmem_limit_bytes(p2_bytes)),
    )(slab3, aff1, wqkv, bqkv)

    # ---- finalize BN2 ----------------------------------------------------------------------
    # TODO(synk): BN2 stats use single-pass E[x^2]-E[x]^2; switch to a shifted/compensated
    #             accumulation if activation scales ever make f32 cancellation an issue.
    g2 = jnp.pad(p["bn2_w"], (0, Cpad - Cout)).astype(f32)
    b2 = jnp.pad(p["bn2_b"], (0, Cpad - Cout)).astype(f32)
    mean2 = jnp.sum(stats2[:, 0, :], axis=0) / cnt
    msq2 = jnp.sum(stats2[:, 1, :], axis=0) / cnt
    var2 = jnp.maximum(msq2 - mean2 * mean2, 0.0)
    scale2 = g2 * jax.lax.rsqrt(var2 + BN_EPS)
    shift2 = b2 - mean2 * scale2
    aff2 = jnp.zeros((8, Cpad), f32).at[0].set(scale2).at[1].set(shift2)

    # ---- pass 3: BN2 + channel-major packed store (grid over B, "parallel") ---------------
    p3_bytes = N * Cpad * 2 + Co8 * N * 4 + 8 * Cpad * 4 + 3 * N * Cpad * 4
    out_cn = pl.pallas_call(
        functools.partial(_finalize_kernel, co8=Co8),
        grid=(B,),
        in_specs=[pl.BlockSpec((None, N, Cpad), lambda b: (b, 0, 0)),
                  pl.BlockSpec((8, Cpad), lambda b: (0, 0))],
        out_specs=pl.BlockSpec((None, Co8, N), lambda b: (b, 0, 0)),
        out_shape=jax.ShapeDtypeStruct((B, Co8, N), f32),
        compiler_params=pltpu.CompilerParams(
            dimension_semantics=("parallel",),
            vmem_limit_bytes=_vmem_limit_bytes(p3_bytes)),
    )(att, aff2)

    # Channel-major kernel output -> NCHW with a free reshape (no padded-slab slice/transpose).
    out = out_cn[:, :Cout, :].reshape(B, Cout, H, W)
    return out


if __name__ == "__main__":
    in_chan, out_chan = 4, 32          # out_chan must be divisible by scale=8
    B, H, W = 2, 16, 16

    key = jax.random.PRNGKey(0)
    k_x, k_p = jax.random.split(key)
    x = jax.random.normal(k_x, (B, in_chan, H, W), jnp.float32)
    params = init_params(k_p, in_chan, out_chan)

    # row_block=128 exercises a 4-step pipelined grid in pass 1 at this toy size;
    # leave row_block=None at production shapes to auto-pick ~1K-row blocks.
    fwd = jax.jit(functools.partial(attention_enhancement_forward, row_block=128))
    out = jax.block_until_ready(fwd(x, params))

    assert out.shape == (B, out_chan, H, W), out.shape
    assert bool(jnp.all(jnp.isfinite(out)))
    print("KERNEL_OK")
</pallas_src>

<mosaic_0001>
module attributes {stable_mosaic.version = 11 : i64} {
  func.func @_conv_stats_kernel(%arg0: i32, %arg1: memref<128x128xbf16, #tpu.memory_space<vmem>>, %arg2: memref<128x128xbf16, #tpu.memory_space<vmem>>, %arg3: memref<1x128xf32, #tpu.memory_space<vmem>>, %arg4: memref<128x128xbf16, #tpu.memory_space<vmem>>, %arg5: memref<1x8x128xf32, #tpu.memory_space<vmem>>) attributes {dimension_semantics = [#tpu.dimension_semantics<parallel>], iteration_bounds = array<i64: 4>, scalar_prefetch = 0 : i64, scratch_operands = 0 : i64, tpu.core_type = #tpu.core_type<tc>, window_params = [{transform_indices = @transform_0, window_bounds = array<i64: 128, 128>}, {pipeline_mode = #tpu.pipeline_mode<synchronous>, transform_indices = @transform_1, window_bounds = array<i64: 128, 128>}, {pipeline_mode = #tpu.pipeline_mode<synchronous>, transform_indices = @transform_2, window_bounds = array<i64: 1, 128>}, {transform_indices = @transform_3, window_bounds = array<i64: 128, 128>}, {transform_indices = @transform_4, window_bounds = array<i64: 1, 8, 128>}]} {
    %c0 = arith.constant 0 : index
    %c0_0 = arith.constant 0 : index
    %0 = vector.load %arg1[%c0, %c0_0] : memref<128x128xbf16, #tpu.memory_space<vmem>>, vector<128x128xbf16>
    %c0_1 = arith.constant 0 : index
    %c0_2 = arith.constant 0 : index
    %1 = vector.load %arg2[%c0_1, %c0_2] : memref<128x128xbf16, #tpu.memory_space<vmem>>, vector<128x128xbf16>
    %cst = arith.constant dense<0.000000e+00> : vector<128x128xf32>
    %2 = tpu.matmul %0, %1, %cst {dimension_numbers = #tpu.dot_dimension_numbers<[1], [0], [0], [1], [0, 0, 1, 1], [], []>} : vector<128x128xbf16>, vector<128x128xbf16>, vector<128x128xf32> -> vector<128x128xf32>
    %c0_3 = arith.constant 0 : index
    %c0_4 = arith.constant 0 : index
    %3 = vector.load %arg3[%c0_3, %c0_4] : memref<1x128xf32, #tpu.memory_space<vmem>>, vector<1x128xf32>
    %4 = vector.broadcast %3 : vector<1x128xf32> to vector<128x128xf32>
    %5 = arith.addf %2, %4 : vector<128x128xf32>
    %6 = arith.truncf %5 : vector<128x128xf32> to vector<128x128xbf16>
    %c0_5 = arith.constant 0 : index
    %c0_6 = arith.constant 0 : index
    %7 = vector.load %arg4[%c0_5, %c0_6] : memref<128x128xbf16, #tpu.memory_space<vmem>>, vector<128x128xbf16>
    tpu.vector_store %arg4[%c0_5, %c0_6], %6 {strides = array<i32>} : memref<128x128xbf16, #tpu.memory_space<vmem>>, vector<128x128xbf16>,
    %cst_7 = arith.constant 0.000000e+00 : f32
    %8 = vector.broadcast %cst_7 : f32 to vector<8x128xf32>
    %c0_8 = arith.constant 0 : index
    %c0_9 = arith.constant 0 : index
    %c0_10 = arith.constant 0 : index
    %9 = vector.load %arg5[%c0_8, %c0_9, %c0_10] : memref<1x8x128xf32, #tpu.memory_space<vmem>>, vector<1x8x128xf32>
    %10 = vector.shape_cast %9 : vector<1x8x128xf32> to vector<8x128xf32>
    %11 = vector.shape_cast %8 : vector<8x128xf32> to vector<1x8x128xf32>
    tpu.vector_store %arg5[%c0_8, %c0_9, %c0_10], %11 {strides = array<i32>} : memref<1x8x128xf32, #tpu.memory_space<vmem>>, vector<1x8x128xf32>,
    %cst_11 = arith.constant dense<0.000000e+00> : vector<128xf32>
    %12 = vector.multi_reduction <add>, %2, %cst_11 [0] : vector<128x128xf32> to vector<128xf32>
    %13 = vector.shape_cast %12 : vector<128xf32> to vector<1x128xf32>
    %c0_12 = arith.constant 0 : index
    %c0_13 = arith.constant 0 : index
    %c0_14 = arith.constant 0 : index
    %14 = vector.load %arg5[%c0_12, %c0_13, %c0_14] : memref<1x8x128xf32, #tpu.memory_space<vmem>>, vector<1x1x128xf32>
    %15 = vector.shape_cast %14 : vector<1x1x128xf32> to vector<1x128xf32>
    %16 = vector.shape_cast %13 : vector<1x128xf32> to vector<1x1x128xf32>
    tpu.vector_store %arg5[%c0_12, %c0_13, %c0_14], %16 {strides = array<i32>} : memref<1x8x128xf32, #tpu.memory_space<vmem>>, vector<1x1x128xf32>,
    %17 = arith.mulf %2, %2 : vector<128x128xf32>
    %cst_15 = arith.constant dense<0.000000e+00> : vector<128xf32>
    %18 = vector.multi_reduction <add>, %17, %cst_15 [0] : vector<128x128xf32> to vector<128xf32>
    %19 = vector.shape_cast %18 : vector<128xf32> to vector<1x128xf32>
    %c0_16 = arith.constant 0 : index
    %c1 = arith.constant 1 : index
    %c0_17 = arith.constant 0 : index
    %20 = vector.load %arg5[%c0_16, %c1, %c0_17] : memref<1x8x128xf32, #tpu.memory_space<vmem>>, vector<1x1x128xf32>
    %21 = vector.shape_cast %20 : vector<1x1x128xf32> to vector<1x128xf32>
    %22 = vector.shape_cast %19 : vector<1x128xf32> to vector<1x1x128xf32>
    tpu.vector_store %arg5[%c0_16, %c1, %c0_17], %22 {strides = array<i32>} : memref<1x8x128xf32, #tpu.memory_space<vmem>>, vector<1x1x128xf32>,
    return
  }
  func.func @transform_0(%arg0: i32) -> (i32, i32) {
    %c0_i32 = arith.constant 0 : i32
    %c0_i32_0 = arith.constant 0 : i32
    return %arg0, %c0_i32 : i32, i32
  }
  func.func @transform_1(%arg0: i32) -> (i32, i32) {
    %c0_i32 = arith.constant 0 : i32
    %c0_i32_0 = arith.constant 0 : i32
    %c0_i32_1 = arith.constant 0 : i32
    return %c0_i32, %c0_i32_0 : i32, i32
  }
  func.func @transform_2(%arg0: i32) -> (i32, i32) {
    %c0_i32 = arith.constant 0 : i32
    %c0_i32_0 = arith.constant 0 : i32
    %c0_i32_1 = arith.constant 0 : i32
    return %c0_i32, %c0_i32_0 : i32, i32
  }
  func.func @transform_3(%arg0: i32) -> (i32, i32) {
    %c0_i32 = arith.constant 0 : i32
    %c0_i32_0 = arith.constant 0 : i32
    return %arg0, %c0_i32 : i32, i32
  }
  func.func @transform_4(%arg0: i32) -> (i32, i32, i32) {
    %c0_i32 = arith.constant 0 : i32
    %c0_i32_0 = arith.constant 0 : i32
    %c0_i32_1 = arith.constant 0 : i32
    return %arg0, %c0_i32, %c0_i32_0 : i32, i32, i32
  }
}

module attributes {stable_mosaic.version = 11 : i64} {
  func.func @_attention_kernel(%arg0: i32, %arg1: memref<1x256x128xbf16, #tpu.memory_space<vmem>>, %arg2: memref<8x128xf32, #tpu.memory_space<vmem>>, %arg3: memref<128x384xbf16, #tpu.memory_space<vmem>>, %arg4: memref<1x384xf32, #tpu.memory_space<vmem>>, %arg5: memref<1x256x128xbf16, #tpu.memory_space<vmem>>, %arg6: memref<1x8x128xf32, #tpu.memory_space<vmem>>) attributes {dimension_semantics = [#tpu.dimension_semantics<parallel>], iteration_bounds = array<i64: 2>, scalar_prefetch = 0 : i64, scratch_operands = 0 : i64, tpu.core_type = #tpu.core_type<tc>, window_params = [{transform_indices = @transform_0, window_bounds = array<i64: 1, 256, 128>}, {pipeline_mode = #tpu.pipeline_mode<synchronous>, transform_indices = @transform_1, window_bounds = array<i64: 8, 128>}, {pipeline_mode = #tpu.pipeline_mode<synchronous>, transform_indices = @transform_2, window_bounds = array<i64: 128, 384>}, {pipeline_mode = #tpu.pipeline_mode<synchronous>, transform_indices = @transform_3, window_bounds = array<i64: 1, 384>}, {transform_indices = @transform_4, window_bounds = array<i64: 1, 256, 128>}, {transform_indices = @transform_5, window_bounds = array<i64: 1, 8, 128>}]} {
    %c0 = arith.constant 0 : index
    %c0_0 = arith.constant 0 : index
    %c0_1 = arith.constant 0 : index
    %0 = vector.load %arg1[%c0, %c0_0, %c0_1] : memref<1x256x128xbf16, #tpu.memory_space<vmem>>, vector<1x256x128xbf16>
    %1 = vector.shape_cast %0 : vector<1x256x128xbf16> to vector<256x128xbf16>
    %2 = arith.extf %1 : vector<256x128xbf16> to vector<256x128xf32>
    %c0_2 = arith.constant 0 : index
    %c0_3 = arith.constant 0 : index
    %3 = vector.load %arg2[%c0_2, %c0_3] : memref<8x128xf32, #tpu.memory_space<vmem>>, vector<1x128xf32>
    %4 = vector.broadcast %3 : vector<1x128xf32> to vector<256x128xf32>
    %5 = arith.mulf %2, %4 : vector<256x128xf32>
    %c1 = arith.constant 1 : index
    %c0_4 = arith.constant 0 : index
    %6 = vector.load %arg2[%c1, %c0_4] : memref<8x128xf32, #tpu.memory_space<vmem>>, vector<1x128xf32>
    %7 = vector.broadcast %6 : vector<1x128xf32> to vector<256x128xf32>
    %8 = arith.addf %5, %7 : vector<256x128xf32>
    %cst = arith.constant 0.000000e+00 : f32
    %9 = vector.broadcast %cst : f32 to vector<256x128xf32>
    %10 = arith.maximumf %8, %9 : vector<256x128xf32>
    %11 = arith.truncf %10 : vector<256x128xf32> to vector<256x128xbf16>
    %c0_5 = arith.constant 0 : index
    %c0_6 = arith.constant 0 : index
    %12 = vector.load %arg3[%c0_5, %c0_6] : memref<128x384xbf16, #tpu.memory_space<vmem>>, vector<128x384xbf16>
    %cst_7 = arith.constant dense<0.000000e+00> : vector<256x384xf32>
    %13 = tpu.matmul %11, %12, %cst_7 {dimension_numbers = #tpu.dot_dimension_numbers<[1], [0], [0], [1], [0, 0, 1, 1], [], []>} : vector<256x128xbf16>, vector<128x384xbf16>, vector<256x384xf32> -> vector<256x384xf32>
    %c0_8 = arith.constant 0 : index
    %c0_9 = arith.constant 0 : index
    %14 = vector.load %arg4[%c0_8, %c0_9] : memref<1x384xf32, #tpu.memory_space<vmem>>, vector<1x384xf32>
    %15 = vector.broadcast %14 : vector<1x384xf32> to vector<256x384xf32>
    %16 = arith.addf %13, %15 : vector<256x384xf32>
    %17 = vector.extract_strided_slice %16 {offsets = [0, 0], sizes = [256, 128], strides = [1, 1]} : vector<256x384xf32> to vector<256x128xf32>
    %cst_10 = arith.constant 2.000000e+01 : f32
    %18 = vector.broadcast %cst_10 : f32 to vector<256x128xf32>
    %19 = arith.minimumf %17, %18 : vector<256x128xf32>
    %cst_11 = arith.constant 2.000000e+01 : f32
    %20 = vector.broadcast %cst_11 : f32 to vector<256x128xf32>
    %21 = arith.cmpf ogt, %17, %20 : vector<256x128xf32>
    %22 = math.exp %19 : vector<256x128xf32>
    %cst_12 = arith.constant 1.000000e+00 : f32
    %23 = vector.broadcast %cst_12 : f32 to vector<256x128xf32>
    %24 = arith.addf %23, %22 : vector<256x128xf32>
    %25 = math.log %24 : vector<256x128xf32>
    %26 = arith.select %21, %17, %25 : vector<256x128xi1>, vector<256x128xf32>
    %27 = vector.extract_strided_slice %16 {offsets = [0, 128], sizes = [256, 128], strides = [1, 1]} : vector<256x384xf32> to vector<256x128xf32>
    %cst_13 = arith.constant 2.000000e+01 : f32
    %28 = vector.broadcast %cst_13 : f32 to vector<256x128xf32>
    %29 = arith.minimumf %27, %28 : vector<256x128xf32>
    %cst_14 = arith.constant 2.000000e+01 : f32
    %30 = vector.broadcast %cst_14 : f32 to vector<256x128xf32>
    %31 = arith.cmpf ogt, %27, %30 : vector<256x128xf32>
    %32 = math.exp %29 : vector<256x128xf32>
    %cst_15 = arith.constant 1.000000e+00 : f32
    %33 = vector.broadcast %cst_15 : f32 to vector<256x128xf32>
    %34 = arith.addf %33, %32 : vector<256x128xf32>
    %35 = math.log %34 : vector<256x128xf32>
    %36 = arith.select %31, %27, %35 : vector<256x128xi1>, vector<256x128xf32>
    %37 = vector.extract_strided_slice %16 {offsets = [0, 256], sizes = [256, 128], strides = [1, 1]} : vector<256x384xf32> to vector<256x128xf32>
    %38 = arith.truncf %36 : vector<256x128xf32> to vector<256x128xbf16>
    %39 = arith.truncf %37 : vector<256x128xf32> to vector<256x128xbf16>
    %cst_16 = arith.constant dense<0.000000e+00> : vector<128x128xf32>
    %40 = tpu.matmul %38, %39, %cst_16 {dimension_numbers = #tpu.dot_dimension_numbers<[0], [0], [1], [1], [0, 1, 1, 1], [], []>} : vector<256x128xbf16>, vector<256x128xbf16>, vector<128x128xf32> -> vector<128x128xf32>
    %cst_17 = arith.constant dense<0.000000e+00> : vector<128xf32>
    %41 = vector.multi_reduction <add>, %36, %cst_17 [0] : vector<256x128xf32> to vector<128xf32>
    %42 = vector.shape_cast %41 : vector<128xf32> to vector<1x128xf32>
    %cst_18 = arith.constant 9.99999997E-7 : f32
    %43 = vector.broadcast %cst_18 : f32 to vector<1x128xf32>
    %44 = arith.addf %42, %43 : vector<1x128xf32>
    %45 = vector.broadcast %44 : vector<1x128xf32> to vector<256x128xf32>
    %46 = arith.mulf %26, %45 : vector<256x128xf32>
    %cst_19 = arith.constant dense<0.000000e+00> : vector<256xf32>
    %47 = vector.multi_reduction <add>, %46, %cst_19 [1] : vector<256x128xf32> to vector<256xf32>
    %48 = vector.shape_cast %47 : vector<256xf32> to vector<256x1xf32>
    %49 = tpu.reciprocal %48 {approx = true} : vector<256x1xf32> -> vector<256x1xf32>
    %50 = arith.mulf %48, %49 : vector<256x1xf32>
    %cst_20 = arith.constant 2.000000e+00 : f32
    %51 = vector.broadcast %cst_20 : f32 to vector<256x1xf32>
    %52 = arith.subf %51, %50 : vector<256x1xf32>
    %53 = arith.mulf %49, %52 : vector<256x1xf32>
    %54 = arith.truncf %26 : vector<256x128xf32> to vector<256x128xbf16>
    %55 = arith.truncf %40 : vector<128x128xf32> to vector<128x128xbf16>
    %cst_21 = arith.constant dense<0.000000e+00> : vector<256x128xf32>
    %56 = tpu.matmul %54, %55, %cst_21 {dimension_numbers = #tpu.dot_dimension_numbers<[1], [0], [0], [1], [0, 0, 1, 1], [], []>} : vector<256x128xbf16>, vector<128x128xbf16>, vector<256x128xf32> -> vector<256x128xf32>
    %57 = vector.broadcast %53 : vector<256x1xf32> to vector<256x128xf32>
    %58 = arith.mulf %56, %57 : vector<256x128xf32>
    %c2 = arith.constant 2 : index
    %c0_22 = arith.constant 0 : index
    %59 = vector.load %arg2[%c2, %c0_22] : memref<8x128xf32, #tpu.memory_space<vmem>>, vector<1x128xf32>
    %60 = vector.broadcast %59 : vector<1x128xf32> to vector<256x128xf32>
    %61 = arith.mulf %60, %58 : vector<256x128xf32>
    %62 = arith.addf %10, %61 : vector<256x128xf32>
    %63 = arith.truncf %62 : vector<256x128xf32> to vector<256x128xbf16>
    %c0_23 = arith.constant 0 : index
    %c0_24 = arith.constant 0 : index
    %c0_25 = arith.constant 0 : index
    %64 = vector.load %arg5[%c0_23, %c0_24, %c0_25] : memref<1x256x128xbf16, #tpu.memory_space<vmem>>, vector<1x256x128xbf16>
    %65 = vector.shape_cast %64 : vector<1x256x128xbf16> to vector<256x128xbf16>
    %66 = vector.shape_cast %63 : vector<256x128xbf16> to vector<1x256x128xbf16>
    tpu.vector_store %arg5[%c0_23, %c0_24, %c0_25], %66 {strides = array<i32>} : memref<1x256x128xbf16, #tpu.memory_space<vmem>>, vector<1x256x128xbf16>,
    %cst_26 = arith.constant 0.000000e+00 : f32
    %67 = vector.broadcast %cst_26 : f32 to vector<8x128xf32>
    %c0_27 = arith.constant 0 : index
    %c0_28 = arith.constant 0 : index
    %c0_29 = arith.constant 0 : index
    %68 = vector.load %arg6[%c0_27, %c0_28, %c0_29] : memref<1x8x128xf32, #tpu.memory_space<vmem>>, vector<1x8x128xf32>
    %69 = vector.shape_cast %68 : vector<1x8x128xf32> to vector<8x128xf32>
    %70 = vector.shape_cast %67 : vector<8x128xf32> to vector<1x8x128xf32>
    tpu.vector_store %arg6[%c0_27, %c0_28, %c0_29], %70 {strides = array<i32>} : memref<1x8x128xf32, #tpu.memory_space<vmem>>, vector<1x8x128xf32>,
    %cst_30 = arith.constant dense<0.000000e+00> : vector<128xf32>
    %71 = vector.multi_reduction <add>, %62, %cst_30 [0] : vector<256x128xf32> to vector<128xf32>
    %72 = vector.shape_cast %71 : vector<128xf32> to vector<1x128xf32>
    %c0_31 = arith.constant 0 : index
    %c0_32 = arith.constant 0 : index
    %c0_33 = arith.constant 0 : index
    %73 = vector.load %arg6[%c0_31, %c0_32, %c0_33] : memref<1x8x128xf32, #tpu.memory_space<vmem>>, vector<1x1x128xf32>
    %74 = vector.shape_cast %73 : vector<1x1x128xf32> to vector<1x128xf32>
    %75 = vector.shape_cast %72 : vector<1x128xf32> to vector<1x1x128xf32>
    tpu.vector_store %arg6[%c0_31, %c0_32, %c0_33], %75 {strides = array<i32>} : memref<1x8x128xf32, #tpu.memory_space<vmem>>, vector<1x1x128xf32>,
    %76 = arith.mulf %62, %62 : vector<256x128xf32>
    %cst_34 = arith.constant dense<0.000000e+00> : vector<128xf32>
    %77 = vector.multi_reduction <add>, %76, %cst_34 [0] : vector<256x128xf32> to vector<128xf32>
    %78 = vector.shape_cast %77 : vector<128xf32> to vector<1x128xf32>
    %c0_35 = arith.constant 0 : index
    %c1_36 = arith.constant 1 : index
    %c0_37 = arith.constant 0 : index
    %79 = vector.load %arg6[%c0_35, %c1_36, %c0_37] : memref<1x8x128xf32, #tpu.memory_space<vmem>>, vector<1x1x128xf32>
    %80 = vector.shape_cast %79 : vector<1x1x128xf32> to vector<1x128xf32>
    %81 = vector.shape_cast %78 : vector<1x128xf32> to vector<1x1x128xf32>
    tpu.vector_store %arg6[%c0_35, %c1_36, %c0_37], %81 {strides = array<i32>} : memref<1x8x128xf32, #tpu.memory_space<vmem>>, vector<1x1x128xf32>,
    return
  }
  func.func @transform_0(%arg0: i32) -> (i32, i32, i32) {
    %c0_i32 = arith.constant 0 : i32
    %c0_i32_0 = arith.constant 0 : i32
    %c0_i32_1 = arith.constant 0 : i32
    return %arg0, %c0_i32, %c0_i32_0 : i32, i32, i32
  }
  func.func @transform_1(%arg0: i32) -> (i32, i32) {
    %c0_i32 = arith.constant 0 : i32
    %c0_i32_0 = arith.constant 0 : i32
    %c0_i32_1 = arith.constant 0 : i32
    return %c0_i32, %c0_i32_0 : i32, i32
  }
  func.func @transform_2(%arg0: i32) -> (i32, i32) {
    %c0_i32 = arith.constant 0 : i32
    %c0_i32_0 = arith.constant 0 : i32
    %c0_i32_1 = arith.constant 0 : i32
    return %c0_i32, %c0_i32_0 : i32, i32
  }
  func.func @transform_3(%arg0: i32) -> (i32, i32) {
    %c0_i32 = arith.constant 0 : i32
    %c0_i32_0 = arith.constant 0 : i32
    %c0_i32_1 = arith.constant 0 : i32
    return %c0_i32, %c0_i32_0 : i32, i32
  }
  func.func @transform_4(%arg0: i32) -> (i32, i32, i32) {
    %c0_i32 = arith.constant 0 : i32
    %c0_i32_0 = arith.constant 0 : i32
    %c0_i32_1 = arith.constant 0 : i32
    return %arg0, %c0_i32, %c0_i32_0 : i32, i32, i32
  }
  func.func @transform_5(%arg0: i32) -> (i32, i32, i32) {
    %c0_i32 = arith.constant 0 : i32
    %c0_i32_0 = arith.constant 0 : i32
    %c0_i32_1 = arith.constant 0 : i32
    return %arg0, %c0_i32, %c0_i32_0 : i32, i32, i32
  }
}

module attributes {stable_mosaic.version = 11 : i64} {
  func.func @_finalize_kernel(%arg0: i32, %arg1: memref<1x256x128xbf16, #tpu.memory_space<vmem>>, %arg2: memref<8x128xf32, #tpu.memory_space<vmem>>, %arg3: memref<1x32x256xf32, #tpu.memory_space<vmem>>) attributes {dimension_semantics = [#tpu.dimension_semantics<parallel>], iteration_bounds = array<i64: 2>, scalar_prefetch = 0 : i64, scratch_operands = 0 : i64, tpu.core_type = #tpu.core_type<tc>, window_params = [{transform_indices = @transform_0, window_bounds = array<i64: 1, 256, 128>}, {pipeline_mode = #tpu.pipeline_mode<synchronous>, transform_indices = @transform_1, window_bounds = array<i64: 8, 128>}, {transform_indices = @transform_2, window_bounds = array<i64: 1, 32, 256>}]} {
    %c0 = arith.constant 0 : index
    %c0_0 = arith.constant 0 : index
    %c0_1 = arith.constant 0 : index
    %0 = vector.load %arg1[%c0, %c0_0, %c0_1] : memref<1x256x128xbf16, #tpu.memory_space<vmem>>, vector<1x256x128xbf16>
    %1 = vector.shape_cast %0 : vector<1x256x128xbf16> to vector<256x128xbf16>
    %2 = arith.extf %1 : vector<256x128xbf16> to vector<256x128xf32>
    %c0_2 = arith.constant 0 : index
    %c0_3 = arith.constant 0 : index
    %3 = vector.load %arg2[%c0_2, %c0_3] : memref<8x128xf32, #tpu.memory_space<vmem>>, vector<1x128xf32>
    %4 = vector.broadcast %3 : vector<1x128xf32> to vector<256x128xf32>
    %5 = arith.mulf %2, %4 : vector<256x128xf32>
    %c1 = arith.constant 1 : index
    %c0_4 = arith.constant 0 : index
    %6 = vector.load %arg2[%c1, %c0_4] : memref<8x128xf32, #tpu.memory_space<vmem>>, vector<1x128xf32>
    %7 = vector.broadcast %6 : vector<1x128xf32> to vector<256x128xf32>
    %8 = arith.addf %5, %7 : vector<256x128xf32>
    %9 = tpu.transpose %8, [1, 0] : vector<256x128xf32> -> vector<128x256xf32>
    %10 = vector.extract_strided_slice %9 {offsets = [0, 0], sizes = [32, 256], strides = [1, 1]} : vector<128x256xf32> to vector<32x256xf32>
    %c0_5 = arith.constant 0 : index
    %c0_6 = arith.constant 0 : index
    %c0_7 = arith.constant 0 : index
    %11 = vector.load %arg3[%c0_5, %c0_6, %c0_7] : memref<1x32x256xf32, #tpu.memory_space<vmem>>, vector<1x32x256xf32>
    %12 = vector.shape_cast %11 : vector<1x32x256xf32> to vector<32x256xf32>
    %13 = vector.shape_cast %10 : vector<32x256xf32> to vector<1x32x256xf32>
    tpu.vector_store %arg3[%c0_5, %c0_6, %c0_7], %13 {strides = array<i32>} : memref<1x32x256xf32, #tpu.memory_space<vmem>>, vector<1x32x256xf32>,
    return
  }
  func.func @transform_0(%arg0: i32) -> (i32, i32, i32) {
    %c0_i32 = arith.constant 0 : i32
    %c0_i32_0 = arith.constant 0 : i32
    %c0_i32_1 = arith.constant 0 : i32
    return %arg0, %c0_i32, %c0_i32_0 : i32, i32, i32
  }
  func.func @transform_1(%arg0: i32) -> (i32, i32) {
    %c0_i32 = arith.constant 0 : i32
    %c0_i32_0 = arith.constant 0 : i32
    %c0_i32_1 = arith.constant 0 : i32
    return %c0_i32, %c0_i32_0 : i32, i32
  }
  func.func @transform_2(%arg0: i32) -> (i32, i32, i32) {
    %c0_i32 = arith.constant 0 : i32
    %c0_i32_0 = arith.constant 0 : i32
    %c0_i32_1 = arith.constant 0 : i32
    return %arg0, %c0_i32, %c0_i32_0 : i32, i32, i32
  }
}

</mosaic_0001>

<bundles_post_ra>
// kernel: attention_enhancement_forward.3
= control target key start
LH: loop header
LB: loop body
LE: loop exit
PB: predicated region body
PF: predicated region fallthrough
CT: control target
= control target key end

     0   :  { %s920_s15 = smov 0   ;;  %s1022_s0 = inlined_call_operand.vmem [shape: bf16[512,128], index: 0, kind: input, shape index: {}]   ;;  %s1023_s1 = inlined_call_operand.vmem [shape: bf16[128,128], index: 1, kind: input, shape index: {}]   ;;  %s1024_s2 = inlined_call_operand.vmem [shape: f32[1,128], index: 2, kind: input, shape index: {}]   ;;  %s1025_s3 = inlined_call_operand.vmem [shape: bf16[512,128], index: 3, kind: output, shape index: {0}]   ;;  %s1026_s4 = inlined_call_operand.vmem [shape: f32[4,8,128], index: 4, kind: output, shape index: {1}]  }
   0x1 LB: > { %s926_s16 = sadd.s32 4294967295, %s892_s15   ;;  %p693_p0 = scmp.ge.s32.totalorder %s892_s15, 1  ;;  %s892_s15 = sphi %s920_s15, %s15_s15  }
   0x2   : > { %p166_p1 = scmp.lt.s32.totalorder %s892_s15, 5 }
   0x4   : > { %p167_p2 = pnand %p693_p0, %p166_p1 }
   0x5   : > { %v870_v0 = vld [vmem:[%s1023_s1] sm:$0xff] (!%p167_p2)   ;;  %s694_s19 = sshll.u32 (!%p167_p2), %s926_s16, 4  ;;  %v871_v1 = vld [vmem:[%s1023_s1 + $0x8] sm:$0xff] (!%p167_p2)   ;;  %v872_v2 = vld [vmem:[%s1023_s1 + $0x10] sm:$0xff] (!%p167_p2)   ;;  %p208_p4 = scmp.lt.s32.totalorder (!%p167_p2), %s926_s16, 3  ;;  %v894_v16 = vmov (!%p167_p2), 0.0  }
   0x6   : > { %170 = sbr.rel (%p167_p2) target bundleno = 298 (0x12a), region = 32  ;;  %p197_p3 = scmp.lt.s32.totalorder (!%p167_p2), %s694_s19, 63  ;;  %813 = vmatprep.subr.bf16.mxu0 (!%p167_p2), %v870_v0  ;;  %845 = vmatprep.subr.bf16.mxu1 (!%p167_p2), %v870_v0  ;;  %v873_v3 = vld [vmem:[%s1023_s1 + $0x18] sm:$0xff] (!%p167_p2)   ;;  %v874_v5 = vld [vmem:[%s1023_s1 + $0x20] sm:$0xff] (!%p167_p2)   ;;  %v875_v7 = vld [vmem:[%s1023_s1 + $0x28] sm:$0xff] (!%p167_p2)  }
   0x7   : > { %814 = vmatpush3.bf16.msra.mxu0 (!%p167_p2), %v870_v0  ;;  %853 = vmatpush3.bf16.msra.mxu1 (!%p167_p2), %v870_v0  ;;  %v876_v8 = vld [vmem:[%s1023_s1 + $0x30] sm:$0xff] (!%p167_p2)   ;;  %v877_v9 = vld [vmem:[%s1023_s1 + $0x38] sm:$0xff] (!%p167_p2)   ;;  %v715_v17 = vld [vmem:[%s1024_s2] ss:$0 sm:$0xff] (!%p167_p2) }
   0x8   : > { %815 = vmatprep.subr.bf16.mxu0 (!%p167_p2), %v871_v1  ;;  %846 = vmatprep.subr.bf16.mxu1 (!%p167_p2), %v871_v1 }
   0xb   : > { %816 = vmatpush3.bf16.msra.mxu0 (!%p167_p2), %v871_v1  ;;  %854 = vmatpush3.bf16.msra.mxu1 (!%p167_p2), %v871_v1 }
   0xc   : > { %817 = vmatprep.subr.bf16.mxu0 (!%p167_p2), %v872_v2  ;;  %847 = vmatprep.subr.bf16.mxu1 (!%p167_p2), %v872_v2 }
   0xd   : > { %s1028_s19 = smov (!%p197_p3, %s694_s19), 63  ;;  %s1030_s16 = smov (!%p208_p4, %s926_s16), 3 }
   0xe   : > { %s695_s24 = sshll.u32 %s1028_s19, 2  ;;  %s698_s12 = sshll.u32 %s1030_s16, 3 }
   0xf   : > { %s948_s27 = scalar_lea.vmem %s1022_s0, %s695_s24  ;;  %818 = vmatpush3.bf16.msra.mxu0 %v872_v2  ;;  %855 = vmatpush3.bf16.msra.mxu1 %v872_v2  ;;  %s978_s17 = scalar_lea.vmem %s1026_s4, %s698_s12 }
  0x10   : > { %v878_v4 = vld [vmem:[%s948_s27] sm:$0xff]   ;;  %819 = vmatprep.subr.bf16.mxu0 %v873_v3  ;;  %848 = vmatprep.subr.bf16.mxu1 %v873_v3  ;;  %v879_v10 = vld [vmem:[%s948_s27 + $0x8] sm:$0xff]   ;;  %v880_v12 = vld [vmem:[%s948_s27 + $0x10] sm:$0xff]   ;;  %541 = vst [vmem:[%s978_s17] sm:$0xff] %v894_v16  ;;  %s998_s22 = scalar_lea.vmem %s1025_s3, %s695_s24 }
  0x11   : > { %829 = vmatprep.mubr.bf16.mxu0 %v878_v4  ;;  %v882_v6 = vld [vmem:[%s948_s27 + $0x20] sm:$0xff]   ;;  %v883_v11 = vld [vmem:[%s948_s27 + $0x28] sm:$0xff]   ;;  %v884_v13 = vld [vmem:[%s948_s27 + $0x30] sm:$0xff]  }
  0x12   : > { %837 = vmatprep.mubr.bf16.mxu1 %v882_v6  ;;  %v881_v14 = vld [vmem:[%s948_s27 + $0x18] sm:$0xff]  }
  0x13   : > { %820 = vmatpush3.bf16.msra.mxu0 %v873_v3  ;;  %856 = vmatpush3.bf16.msra.mxu1 %v873_v3  ;;  %v885_v15 = vld [vmem:[%s948_s27 + $0x38] sm:$0xff]  }
  0x14   : > { %821 = vmatprep.subr.bf16.mxu0 %v874_v5  ;;  %849 = vmatprep.subr.bf16.mxu1 %v874_v5 }
  0x17   : > { %822 = vmatpush3.bf16.msra.mxu0 %v874_v5  ;;  %857 = vmatpush3.bf16.msra.mxu1 %v874_v5 }
  0x18   : > { %823 = vmatprep.subr.bf16.mxu0 %v875_v7  ;;  %850 = vmatprep.subr.bf16.mxu1 %v875_v7 }
  0x1b   : > { %824 = vmatpush3.bf16.msra.mxu0 %v875_v7  ;;  %858 = vmatpush3.bf16.msra.mxu1 %v875_v7 }
  0x1c   : > { %825 = vmatprep.subr.bf16.mxu0 %v876_v8  ;;  %851 = vmatprep.subr.bf16.mxu1 %v876_v8 }
  0x1f   : > { %826 = vmatpush3.bf16.msra.mxu0 %v876_v8  ;;  %859 = vmatpush3.bf16.msra.mxu1 %v876_v8 }
  0x20   : > { %827 = vmatprep.subr.bf16.mxu0 %v877_v9  ;;  %852 = vmatprep.subr.bf16.mxu1 %v877_v9 }
  0x23   : > { %828 = vmatpush3.bf16.msra.mxu0 %v877_v9  ;;  %860 = vmatpush3.bf16.msra.mxu1 %v877_v9 }
  0x26   : > { %830 = vmatmul.mubr.bf16.vlgmr.msra.gmra.mrb[0].mxu0 %v879_v10  ;;  %838 = vmatmul.mubr.bf16.vlgmr.msra.gmra.mrb[0].mxu1 %v883_v11 }
  0x27   : > { %833 = vmatprep.mubr.bf16.mxu0 %v880_v12  ;;  %841 = vmatprep.mubr.bf16.mxu1 %v884_v13 }
  0x2e   : > { %834 = vmatmul.mubr.bf16.gmra.mrb[4].mxu0 %v881_v14  ;;  %842 = vmatmul.mubr.bf16.gmra.mrb[4].mxu1 %v885_v15 }
  0xf9   : > { %v831_v18 = vpop.f32.mrb[0].mxu0  ;;  %v984_v19 = vpop.f32.mrb[0].mxu1 }
  0xfa   : > { %v375_v20 = vpop.f32.mrb[1].mxu0  ;;  %v455_v21 = vadd.f32 %v984_v19, %v715_v17  ;;  %v987_v22 = vpop.f32.mrb[1].mxu1  ;;  %v447_v23 = vadd.f32 %v831_v18, %v715_v17  ;;  %v566_v37 = vmul.f32 %v831_v18, %v831_v18 }
  0xfb   : > { %v832_v24 = vpop.f32.mrb[2].mxu0  ;;  %v453_v25 = vadd.f32 %v715_v17, %v987_v22  ;;  %v990_v26 = vpop.f32.mrb[2].mxu1  ;;  %v445_v27 = vadd.f32 %v715_v17, %v375_v20  ;;  %v564_v28 = vmul.f32 %v375_v20, %v375_v20  ;;  %v572_v15 = vmul.f32 %v987_v22, %v987_v22 }
  0xfc   : > { %v448_v29 = vadd.f32 %v832_v24, %v715_v17  ;;  %v378_v30 = vpop.f32.mrb[3].mxu0  ;;  %v456_v31 = vadd.f32 %v990_v26, %v715_v17  ;;  %v410_v32 = vpop.f32.mrb[3].mxu1  ;;  %v567_v44 = vmul.f32 %v832_v24, %v832_v24 }
  0xfd   : > { %v446_v33 = vadd.f32 %v715_v17, %v378_v30  ;;  %v542_v34 = vadd.f32 %v378_v30, %v375_v20  ;;  %v565_v35 = vmul.f32 %v378_v30, %v378_v30  ;;  %v454_v36 = vadd.f32 %v715_v17, %v410_v32 }
  0xfe   : > { %v758_v38 = vpack.c.bf16 %v448_v29, %v447_v23  ;;  %v778_v39 = vpack.c.bf16 %v456_v31, %v455_v21  ;;  %v573_v21 = vmul.f32 %v410_v32, %v410_v32  ;;  %v574_v23 = vmul.f32 %v984_v19, %v984_v19 }
  0xff   : > { %v753_v40 = vpack.c.bf16 %v446_v33, %v445_v27  ;;  %v543_v41 = vadd.f32 %v831_v18, %v542_v34  ;;  %v580_v42 = vadd.f32 %v565_v35, %v564_v28  ;;  %v773_v43 = vpack.c.bf16 %v454_v36, %v453_v25 }
 0x100   : > { %790 = vst [vmem:[%s998_s22 + $0x8] sm:$0xff] %v758_v38   ;;  %794 = vst [vmem:[%s998_s22 + $0x28] sm:$0xff] %v778_v39   ;;  %v575_v27 = vmul.f32 %v990_v26, %v990_v26 }
 0x101   : > { %754 = vst [vmem:[%s998_s22] sm:$0xff] %v753_v40   ;;  %v581_v45 = vadd.f32 %v580_v42, %v566_v37  ;;  %v835_v46 = vpop.f32.mrb[4].mxu0  ;;  %v544_v47 = vadd.f32 %v832_v24, %v543_v41  ;;  %793 = vst [vmem:[%s998_s22 + $0x20] sm:$0xff] %v773_v43   ;;  %v843_v48 = vpop.f32.mrb[4].mxu1 }
 0x102   : > { %v391_v49 = vpop.f32.mrb[5].mxu0  ;;  %v423_v50 = vpop.f32.mrb[5].mxu1  ;;  %v451_v51 = vadd.f32 %v835_v46, %v715_v17  ;;  %v459_v60 = vadd.f32 %v843_v48, %v715_v17  ;;  %v570_v6 = vmul.f32 %v835_v46, %v835_v46  ;;  %v578_v36 = vmul.f32 %v843_v48, %v843_v48 }
 0x103   : > { %v545_v52 = vadd.f32 %v544_v47, %v391_v49  ;;  %v568_v53 = vmul.f32 %v391_v49, %v391_v49  ;;  %v582_v54 = vadd.f32 %v581_v45, %v567_v44  ;;  %v836_v55 = vpop.f32.mrb[6].mxu0  ;;  %v844_v56 = vpop.f32.mrb[6].mxu1  ;;  %v449_v57 = vadd.f32 %v715_v17, %v391_v49 }
 0x104   : > { %v452_v58 = vadd.f32 %v836_v55, %v715_v17  ;;  %v394_v59 = vpop.f32.mrb[7].mxu0  ;;  %v457_v61 = vadd.f32 %v715_v17, %v423_v50  ;;  %v426_v62 = vpop.f32.mrb[7].mxu1  ;;  %v460_v4 = vadd.f32 %v844_v56, %v715_v17  ;;  %v571_v12 = vmul.f32 %v836_v55, %v836_v55 }
 0x105   : > { %v583_v63 = vadd.f32 %v582_v54, %v568_v53  ;;  %v450_v0 = vadd.f32 %v715_v17, %v394_v59  ;;  %v546_v1 = vadd.f32 %v545_v52, %v394_v59  ;;  %v569_v2 = vmul.f32 %v394_v59, %v394_v59 }
 0x106   : > { %v768_v3 = vpack.c.bf16 %v452_v58, %v451_v51  ;;  %v458_v5 = vadd.f32 %v715_v17, %v426_v62  ;;  %v788_v10 = vpack.c.bf16 %v460_v4, %v459_v60  ;;  %v576_v30 = vmul.f32 %v423_v50, %v423_v50 }
 0x107   : > { %v763_v7 = vpack.c.bf16 %v450_v0, %v449_v57  ;;  %v547_v8 = vadd.f32 %v835_v46, %v546_v1  ;;  %v584_v9 = vadd.f32 %v583_v63, %v569_v2  ;;  %v577_v35 = vmul.f32 %v426_v62, %v426_v62 }
 0x108   : > { %792 = vst [vmem:[%s998_s22 + $0x18] sm:$0xff] %v768_v3   ;;  %v783_v11 = vpack.c.bf16 %v458_v5, %v457_v61  ;;  %796 = vst [vmem:[%s998_s22 + $0x38] sm:$0xff] %v788_v10   ;;  %v579_v38 = vmul.f32 %v844_v56, %v844_v56 }
 0x109   : > { %791 = vst [vmem:[%s998_s22 + $0x10] sm:$0xff] %v763_v7   ;;  %v585_v13 = vadd.f32 %v584_v9, %v570_v6  ;;  %v548_v14 = vadd.f32 %v836_v55, %v547_v8 }
 0x10a   : > { %795 = vst [vmem:[%s998_s22 + $0x30] sm:$0xff] %v783_v11  }
 0x10b   : > { %v549_v16 = vadd.f32 %v548_v14, %v987_v22  ;;  %v586_v18 = vadd.f32 %v585_v13, %v571_v12 }
 0x10d   : > { %v587_v17 = vadd.f32 %v586_v18, %v572_v15  ;;  %v550_v20 = vadd.f32 %v549_v16, %v410_v32 }
 0x10f   : > { %v551_v24 = vadd.f32 %v984_v19, %v550_v20  ;;  %v588_v25 = vadd.f32 %v587_v17, %v573_v21 }
 0x111   : > { %v589_v28 = vadd.f32 %v588_v25, %v574_v23  ;;  %v552_v29 = vadd.f32 %v990_v26, %v551_v24 }
 0x113   : > { %v553_v31 = vadd.f32 %v552_v29, %v423_v50  ;;  %v590_v33 = vadd.f32 %v589_v28, %v575_v27 }
 0x115   : > { %v591_v22 = vadd.f32 %v590_v33, %v576_v30  ;;  %v554_v34 = vadd.f32 %v553_v31, %v426_v62 }
 0x117   : > { %v555_v32 = vadd.f32 %v843_v48, %v554_v34  ;;  %v592_v37 = vadd.f32 %v591_v22, %v577_v35 }
 0x119   : > { %v556_v39 = vadd.f32 %v844_v56, %v555_v32  ;;  %v593_v19 = vadd.f32 %v592_v37, %v578_v36 }
 0x11b   : > { %v557_v40 = vrot.slane %v556_v39, 4  ;;  %v594_v41 = vadd.f32 %v593_v19, %v579_v38 }
 0x11d   : > { %v558_v42 = vadd.f32 %v557_v40, %v556_v39  ;;  %v595_v43 = vrot.slane %v594_v41, 4 }
 0x11f   : > { %v559_v44 = vrot.slane %v558_v42, 2  ;;  %v596_v26 = vadd.f32 %v595_v43, %v594_v41 }
 0x121   : > { %v560_v45 = vadd.f32 %v559_v44, %v558_v42  ;;  %v597_v46 = vrot.slane %v596_v26, 2 }
 0x123   : > { %v561_v47 = vrot.slane %v560_v45, 1  ;;  %v598_v49 = vadd.f32 %v597_v46, %v596_v26 }
 0x125   : > { %v562_v50 = vadd.f32 %v561_v47, %v560_v45  ;;  %v599_v51 = vrot.slane %v598_v49, 1 }
 0x127   : > { %563 = vst [vmem:[%s978_s17] sm:$0x1] %v562_v50  ;;  %v600_v48 = vadd.f32 %v599_v51, %v598_v49 }
 0x129   : > { %601 = vst [vmem:[%s978_s17 + $0x1] sm:$0x1] %v600_v48 }
 0x12a PF: > { %s15_s15 = sadd.s32 1, %s892_s15  }
 0x12b   : > { %p12_p5 = scmp.ge.s32.totalorder %s15_s15, 6  }
 0x12d   :  { %14 = sbr.rel (!%p12_p5) target bundleno = 1 (0x1), region = 74 }

// kernel: attention_enhancement_forward.5
= control target key start
LH: loop header
LB: loop body
LE: loop exit
PB: predicated region body
PF: predicated region fallthrough
CT: control target
= control target key end

     0   :  { %s534_s9 = smov 0   ;;  %s647_s0 = inlined_call_operand.vmem [shape: bf16[2,256,128], index: 0, kind: input, shape index: {}]   ;;  %s648_s1 = inlined_call_operand.vmem [shape: f32[8,128], index: 1, kind: input, shape index: {}]   ;;  %s649_s2 = inlined_call_operand.vmem [shape: f32[2,32,256], index: 2, kind: output, shape index: {}]  }
   0x1 LB: > { %s409_s10 = sadd.s32 4294967295, %s517_s9   ;;  %p413_p0 = scmp.ge.s32.totalorder %s517_s9, 1  ;;  %s517_s9 = sphi %s534_s9, %s12_s9  }
   0x2   : > { %p112_p1 = scmp.lt.s32.totalorder %s517_s9, 3 }
   0x4   : > { %p113_p2 = pnand %p413_p0, %p112_p1 }
   0x5   : > { %p134_p3 = scmp.lt.s32.totalorder (!%p113_p2), %s409_s10, 1  ;;  %v553_v0 = vld [vmem:[%s648_s1] ss:$0 sm:$0xff] (!%p113_p2)  ;;  %v562_v9 = vld [vmem:[%s648_s1 + $0x1] ss:$0 sm:$0xff] (!%p113_p2) }
   0x6   : > { %116 = sbr.rel (%p113_p2) target bundleno = 166 (0xa6), region = 28 }
   0xd   : > { %s651_s10 = smov (!%p134_p3, %s409_s10), 1 }
   0xe   : > { %s422_s11 = sshll.u32 %s651_s10, 7  ;;  %s423_s19 = sshll.u32 %s651_s10, 6 }
   0xf   : > { %s548_s14 = scalar_lea.vmem %s647_s0, %s422_s11  ;;  %s143_s22 = scalar_lea.vmem %s649_s2, %s423_s19 }
  0x10   : > { %v495_v1 = vld [vmem:[%s548_s14 + $0x40] sm:$0xff]   ;;  %v496_v3 = vld [vmem:[%s548_s14 + $0x48] sm:$0xff]   ;;  %v497_v24 = vld [vmem:[%s548_s14 + $0x50] sm:$0xff]  }
  0x11   : > { %v425_v2 = vld [vmem:[%s548_s14] sm:$0xff]   ;;  %v458_v4 = vunpack.c.l.bf16 %v495_v1  ;;  %v459_v6 = vunpack.c.h.bf16 %v495_v1  ;;  %v488_v8 = vld [vmem:[%s548_s14 + $0x8] sm:$0xff]   ;;  %v462_v10 = vunpack.c.l.bf16 %v496_v3  ;;  %v463_v19 = vunpack.c.h.bf16 %v496_v3  ;;  %v489_v25 = vld [vmem:[%s548_s14 + $0x10] sm:$0xff]  }
  0x12   : > { %v426_v5 = vunpack.c.l.bf16 %v425_v2  ;;  %v427_v7 = vunpack.c.h.bf16 %v425_v2  ;;  %v430_v11 = vunpack.c.l.bf16 %v488_v8  ;;  %v431_v20 = vunpack.c.h.bf16 %v488_v8  ;;  %v498_v38 = vld [vmem:[%s548_s14 + $0x58] sm:$0xff]   ;;  %v499_v52 = vld [vmem:[%s548_s14 + $0x60] sm:$0xff]   ;;  %v500_v3 = vld [vmem:[%s548_s14 + $0x68] sm:$0xff]  }
  0x13   : > { %v229_v12 = vmul.f32 %v458_v4, %v553_v0  ;;  %v230_v14 = vmul.f32 %v459_v6, %v553_v0  ;;  %v231_v18 = vmul.f32 %v462_v10, %v553_v0  ;;  %v232_v26 = vmul.f32 %v463_v19, %v553_v0  ;;  %v490_v39 = vld [vmem:[%s548_s14 + $0x18] sm:$0xff]   ;;  %v491_v53 = vld [vmem:[%s548_s14 + $0x20] sm:$0xff]   ;;  %v492_v4 = vld [vmem:[%s548_s14 + $0x28] sm:$0xff]  }
  0x14   : > { %v213_v13 = vmul.f32 %v426_v5, %v553_v0  ;;  %v214_v15 = vmul.f32 %v427_v7, %v553_v0  ;;  %v215_v23 = vmul.f32 %v430_v11, %v553_v0  ;;  %v216_v27 = vmul.f32 %v431_v20, %v553_v0  ;;  %v493_v19 = vld [vmem:[%s548_s14 + $0x30] sm:$0xff]  }
  0x15   : > { %v266_v16 = vadd.f32 %v562_v9, %v229_v12  ;;  %v267_v21 = vadd.f32 %v562_v9, %v230_v14  ;;  %v268_v28 = vadd.f32 %v562_v9, %v231_v18  ;;  %v466_v30 = vunpack.c.l.bf16 %v497_v24  ;;  %v501_v18 = vld [vmem:[%s548_s14 + $0x70] sm:$0xff]  }
  0x16   : > { %v250_v17 = vadd.f32 %v562_v9, %v213_v13  ;;  %v251_v22 = vadd.f32 %v562_v9, %v214_v15  ;;  %v252_v29 = vadd.f32 %v562_v9, %v215_v23  ;;  %v434_v31 = vunpack.c.l.bf16 %v489_v25 }
  0x17   : > { %314 = vxpose.xlu1.b32.start [1/16] (narrow) %v266_v16, 32  ;;  %v269_v32 = vadd.f32 %v562_v9, %v232_v26  ;;  %v467_v33 = vunpack.c.h.bf16 %v497_v24  ;;  %v253_v34 = vadd.f32 %v562_v9, %v216_v27  ;;  %v233_v35 = vmul.f32 %v466_v30, %v553_v0 }
  0x18   : > { %282 = vxpose.xlu0.b32.start [1/16] (narrow) %v250_v17, 32  ;;  %v217_v36 = vmul.f32 %v434_v31, %v553_v0  ;;  %v435_v37 = vunpack.c.h.bf16 %v489_v25  ;;  %v470_v41 = vunpack.c.l.bf16 %v498_v38  ;;  %v438_v45 = vunpack.c.l.bf16 %v490_v39 }
  0x19   : > { %v234_v40 = vmul.f32 %v467_v33, %v553_v0  ;;  %v270_v42 = vadd.f32 %v562_v9, %v233_v35  ;;  %v471_v47 = vunpack.c.h.bf16 %v498_v38  ;;  %v439_v51 = vunpack.c.h.bf16 %v490_v39  ;;  %v494_v33 = vld [vmem:[%s548_s14 + $0x38] sm:$0xff]  }
  0x1a   : > { %v254_v43 = vadd.f32 %v562_v9, %v217_v36  ;;  %v218_v44 = vmul.f32 %v435_v37, %v553_v0  ;;  %v235_v46 = vmul.f32 %v470_v41, %v553_v0  ;;  %v219_v50 = vmul.f32 %v438_v45, %v553_v0 }
  0x1b   : > { %315 = vxpose.xlu1.b32.cont [2/16] (narrow) %v267_v21, 32  ;;  %v271_v48 = vadd.f32 %v562_v9, %v234_v40  ;;  %v236_v54 = vmul.f32 %v471_v47, %v553_v0  ;;  %v474_v55 = vunpack.c.l.bf16 %v499_v52  ;;  %v220_v58 = vmul.f32 %v439_v51, %v553_v0 }
  0x1c   : > { %283 = vxpose.xlu0.b32.cont [2/16] (narrow) %v251_v22, 32  ;;  %v255_v49 = vadd.f32 %v562_v9, %v218_v44  ;;  %v272_v56 = vadd.f32 %v562_v9, %v235_v46  ;;  %v256_v57 = vadd.f32 %v562_v9, %v219_v50  ;;  %v442_v59 = vunpack.c.l.bf16 %v491_v53 }
  0x1d   : > { %v273_v60 = vadd.f32 %v562_v9, %v236_v54  ;;  %v237_v61 = vmul.f32 %v474_v55, %v553_v0  ;;  %v257_v62 = vadd.f32 %v562_v9, %v220_v58  ;;  %v475_v1 = vunpack.c.h.bf16 %v499_v52 }
  0x1e   : > { %v221_v63 = vmul.f32 %v442_v59, %v553_v0  ;;  %v443_v2 = vunpack.c.h.bf16 %v491_v53  ;;  %v478_v6 = vunpack.c.l.bf16 %v500_v3  ;;  %v446_v11 = vunpack.c.l.bf16 %v492_v4 }
  0x1f   : > { %316 = vxpose.xlu1.b32.cont [3/16] (narrow) %v268_v28, 32  ;;  %v274_v5 = vadd.f32 %v562_v9, %v237_v61  ;;  %v238_v8 = vmul.f32 %v475_v1, %v553_v0  ;;  %v479_v13 = vunpack.c.h.bf16 %v500_v3  ;;  %v447_v17 = vunpack.c.h.bf16 %v492_v4 }
  0x20   : > { %284 = vxpose.xlu0.b32.cont [3/16] (narrow) %v252_v29, 32  ;;  %v258_v7 = vadd.f32 %v562_v9, %v221_v63  ;;  %v222_v10 = vmul.f32 %v443_v2, %v553_v0  ;;  %v239_v12 = vmul.f32 %v478_v6, %v553_v0  ;;  %v223_v16 = vmul.f32 %v446_v11, %v553_v0 }
  0x21   : > { %v275_v14 = vadd.f32 %v562_v9, %v238_v8  ;;  %v240_v20 = vmul.f32 %v479_v13, %v553_v0  ;;  %v482_v21 = vunpack.c.l.bf16 %v501_v18  ;;  %v224_v24 = vmul.f32 %v447_v17, %v553_v0 }
  0x22   : > { %v259_v15 = vadd.f32 %v562_v9, %v222_v10  ;;  %v276_v22 = vadd.f32 %v562_v9, %v239_v12  ;;  %v260_v23 = vadd.f32 %v562_v9, %v223_v16  ;;  %v450_v25 = vunpack.c.l.bf16 %v493_v19 }
  0x23   : > { %317 = vxpose.xlu1.b32.cont [4/16] (narrow) %v269_v32, 32  ;;  %v277_v26 = vadd.f32 %v562_v9, %v240_v20  ;;  %v241_v27 = vmul.f32 %v482_v21, %v553_v0  ;;  %v261_v28 = vadd.f32 %v562_v9, %v224_v24  ;;  %v483_v30 = vunpack.c.h.bf16 %v501_v18  ;;  %v502_v32 = vld [vmem:[%s548_s14 + $0x78] sm:$0xff]  }
  0x24   : > { %285 = vxpose.xlu0.b32.cont [4/16] (narrow) %v253_v34, 32  ;;  %v225_v29 = vmul.f32 %v450_v25, %v553_v0  ;;  %v451_v31 = vunpack.c.h.bf16 %v493_v19  ;;  %v486_v35 = vunpack.c.l.bf16 %v502_v32  ;;  %v454_v39 = vunpack.c.l.bf16 %v494_v33 }
  0x25   : > { %v278_v34 = vadd.f32 %v562_v9, %v241_v27  ;;  %v242_v37 = vmul.f32 %v483_v30, %v553_v0  ;;  %v487_v41 = vunpack.c.h.bf16 %v502_v32  ;;  %v455_v45 = vunpack.c.h.bf16 %v494_v33 }
  0x26   : > { %v262_v36 = vadd.f32 %v562_v9, %v225_v29  ;;  %v226_v38 = vmul.f32 %v451_v31, %v553_v0  ;;  %v243_v40 = vmul.f32 %v486_v35, %v553_v0  ;;  %v227_v44 = vmul.f32 %v454_v39, %v553_v0 }
  0x27   : > { %318 = vxpose.xlu1.b32.cont [5/16] (narrow) %v270_v42, 32  ;;  %v279_v42 = vadd.f32 %v562_v9, %v242_v37  ;;  %v244_v46 = vmul.f32 %v487_v41, %v553_v0 }
  0x28   : > { %286 = vxpose.xlu0.b32.cont [5/16] (narrow) %v254_v43, 32  ;;  %v263_v43 = vadd.f32 %v562_v9, %v226_v38  ;;  %v280_v47 = vadd.f32 %v562_v9, %v243_v40 }
  0x29   : > { %v281_v50 = vadd.f32 %v562_v9, %v244_v46 }
  0x2b   : > { %319 = vxpose.xlu1.b32.cont [6/16] (narrow) %v271_v48, 32  ;;  %v264_v48 = vadd.f32 %v562_v9, %v227_v44 }
  0x2c   : > { %287 = vxpose.xlu0.b32.cont [6/16] (narrow) %v255_v49, 32  ;;  %v228_v49 = vmul.f32 %v455_v45, %v553_v0 }
  0x2e   : > { %v265_v51 = vadd.f32 %v562_v9, %v228_v49 }
  0x2f   : > { %320 = vxpose.xlu1.b32.cont [7/16] (narrow) %v272_v56, 32 }
  0x30   : > { %288 = vxpose.xlu0.b32.cont [7/16] (narrow) %v256_v57, 32 }
  0x33   : > { %321 = vxpose.xlu1.b32.cont [8/16] (narrow) %v273_v60, 32 }
  0x34   : > { %289 = vxpose.xlu0.b32.cont [8/16] (narrow) %v257_v62, 32 }
  0x37   : > { %322 = vxpose.xlu1.b32.cont [9/16] (narrow) %v274_v5, 32 }
  0x38   : > { %290 = vxpose.xlu0.b32.cont [9/16] (narrow) %v258_v7, 32 }
  0x3b   : > { %323 = vxpose.xlu1.b32.cont [10/16] (narrow) %v275_v14, 32 }
  0x3c   : > { %291 = vxpose.xlu0.b32.cont [10/16] (narrow) %v259_v15, 32 }
  0x3f   : > { %324 = vxpose.xlu1.b32.cont [11/16] (narrow) %v276_v22, 32 }
  0x40   : > { %292 = vxpose.xlu0.b32.cont [11/16] (narrow) %v260_v23, 32 }
  0x43   : > { %325 = vxpose.xlu1.b32.cont [12/16] (narrow) %v277_v26, 32 }
  0x44   : > { %293 = vxpose.xlu0.b32.cont [12/16] (narrow) %v261_v28, 32 }
  0x47   : > { %326 = vxpose.xlu1.b32.cont [13/16] (narrow) %v278_v34, 32 }
  0x48   : > { %294 = vxpose.xlu0.b32.cont [13/16] (narrow) %v262_v36, 32 }
  0x4b   : > { %327 = vxpose.xlu1.b32.cont [14/16] (narrow) %v279_v42, 32 }
  0x4c   : > { %295 = vxpose.xlu0.b32.cont [14/16] (narrow) %v263_v43, 32 }
  0x4f   : > { %328 = vxpose.xlu1.b32.cont [15/16] (narrow) %v280_v47, 32 }
  0x50   : > { %296 = vxpose.xlu0.b32.cont [15/16] (narrow) %v264_v48, 32 }
  0x53   : > { %329 = vxpose.xlu1.b32.end [16/16] (narrow) %v281_v50, 32 }
  0x54   : > { %297 = vxpose.xlu0.b32.end [16/16] (narrow) %v265_v51, 32 }
  0x97   : > { %v330_v52 = vpop.trf.xlu1 }
  0x98   : > { %v298_v53 = vpop.trf.xlu0  ;;  %347 = vst [vmem:[%s143_s22 + $0x8] sm:$0xff] %v330_v52 }
  0x99   : > { %346 = vst [vmem:[%s143_s22] sm:$0xff] %v298_v53 }
  0x9b   : > { %v331_v54 = vpop.trf.xlu1 }
  0x9c   : > { %v299_v55 = vpop.trf.xlu0  ;;  %349 = vst [vmem:[%s143_s22 + $0x18] sm:$0xff] %v331_v54 }
  0x9d   : > { %348 = vst [vmem:[%s143_s22 + $0x10] sm:$0xff] %v299_v55 }
  0x9f   : > { %v332_v0 = vpop.trf.xlu1 }
  0xa0   : > { %v300_v56 = vpop.trf.xlu0  ;;  %351 = vst [vmem:[%s143_s22 + $0x28] sm:$0xff] %v332_v0 }
  0xa1   : > { %350 = vst [vmem:[%s143_s22 + $0x20] sm:$0xff] %v300_v56 }
  0xa3   : > { %v333_v9 = vpop.trf.xlu1 }
  0xa4   : > { %v301_v57 = vpop.trf.xlu0  ;;  %353 = vst [vmem:[%s143_s22 + $0x38] sm:$0xff] %v333_v9 }
  0xa5   : > { %352 = vst [vmem:[%s143_s22 + $0x30] sm:$0xff] %v301_v57 }
  0xa6 PF: > { %s12_s9 = sadd.s32 1, %s517_s9  }
  0xa7   : > { %p9_p4 = scmp.ge.s32.totalorder %s12_s9, 4  }
  0xa9   :  { %11 = sbr.rel (!%p9_p4) target bundleno = 1 (0x1), region = 58 }

// kernel: attention_enhancement_forward.4
= control target key start
LH: loop header
LB: loop body
LE: loop exit
PB: predicated region body
PF: predicated region fallthrough
CT: control target
= control target key end

     0   :  { %s3436_s18 = smov 0   ;;  %s5330_s0 = inlined_call_operand.vmem [shape: bf16[2,256,128], index: 0, kind: input, shape index: {}]   ;;  %s5331_s1 = inlined_call_operand.vmem [shape: f32[8,128], index: 1, kind: input, shape index: {}]   ;;  %s5332_s2 = inlined_call_operand.vmem [shape: bf16[128,384], index: 2, kind: input, shape index: {}]   ;;  %s5333_s3 = inlined_call_operand.vmem [shape: f32[1,384], index: 3, kind: input, shape index: {}]   ;;  %s5334_s4 = inlined_call_operand.vmem [shape: bf16[2,256,128], index: 4, kind: output, shape index: {0}]   ;;  %s5335_s5 = inlined_call_operand.vmem [shape: f32[2,8,128], index: 5, kind: output, shape index: {1}]  }
   0x1 LB: > { %s2530_s19 = sadd.s32 4294967295, %s3402_s18   ;;  %p2534_p0 = scmp.ge.s32.totalorder %s3402_s18, 1  ;;  %s3402_s18 = sphi %s3436_s18, %s16_s18  }
   0x2   : > { %p190_p1 = scmp.lt.s32.totalorder %s3402_s18, 3 }
   0x4   : > { %p191_p2 = pnand %p2534_p0, %p190_p1 }
   0x6   : > { %194 = sbr.rel (%p191_p2) target bundleno = 1093 (0x445), region = 36 }
   0xd   : > { %v3043_v0 = vld [vmem:[%s5332_s2 + $0x4] ss:$12 sps:$4 sm:$0xff]   ;;  %p222_p3 = scmp.lt.s32.totalorder %s2530_s19, 1  ;;  %v3045_v1 = vld [vmem:[%s5332_s2] ss:$12 sps:$4 sm:$0xff]   ;;  %v3404_v2 = vmov 0  }
   0xe   : > { %632 = vmatprep.mubr.bf16.mxu0 %v3404_v2  ;;  %752 = vmatprep.mubr.bf16.mxu1 %v3404_v2  ;;  %v3046_v3 = vld [vmem:[%s5332_s2 + $0x1c] ss:$12 sps:$4 sm:$0xff]   ;;  %v3048_v4 = vld [vmem:[%s5332_s2 + $0x18] ss:$12 sps:$4 sm:$0xff]   ;;  %v3049_v5 = vld [vmem:[%s5332_s2 + $0x34] ss:$12 sps:$4 sm:$0xff]  }
   0xf   : > { %600 = vmatprep.subr.bf16.mxu0 %v3043_v0  ;;  %s5744_s19 = smov (!%p222_p3, %s2530_s19), 1  ;;  %3017 = vmatprep.subr.bf16.mxu1 %v3043_v0  ;;  %v3051_v6 = vld [vmem:[%s5332_s2 + $0x30] ss:$12 sps:$4 sm:$0xff]   ;;  %v3052_v7 = vld [vmem:[%s5332_s2 + $0x4c] ss:$12 sps:$4 sm:$0xff]  }
  0x10   : > { %601 = vmatpush1.bf16.msra.mxu0 %v3045_v1  ;;  %3025 = vmatpush1.bf16.msra.mxu1 %v3045_v1  ;;  %s2601_s30 = sshll.u32 %s5744_s19, 7  ;;  %v3054_v8 = vld [vmem:[%s5332_s2 + $0x48] ss:$12 sps:$4 sm:$0xff]   ;;  %v3055_v10 = vld [vmem:[%s5332_s2 + $0x64] ss:$12 sps:$4 sm:$0xff]   ;;  %s2539_s11 = sshll.u32 %s5744_s19, 3 }
  0x11   : > { %602 = vmatprep.subr.bf16.mxu0 %v3046_v3  ;;  %3018 = vmatprep.subr.bf16.mxu1 %v3046_v3  ;;  %s3475_s12 = scalar_lea.vmem %s5330_s0, %s2601_s30  ;;  %v3057_v13 = vld [vmem:[%s5332_s2 + $0x60] ss:$12 sps:$4 sm:$0xff]   ;;  %v3058_v15 = vld [vmem:[%s5332_s2 + $0x7c] ss:$12 sps:$4 sm:$0xff]   ;;  %v3060_v16 = vld [vmem:[%s5332_s2 + $0x78] ss:$12 sps:$4 sm:$0xff]   ;;  %s4970_s15 = scalar_lea.vmem %s5335_s5, %s2539_s11 }
  0x12   : > { %v2636_v9 = vld [vmem:[%s3475_s12] sm:$0xff]   ;;  %v2779_v20 = vld [vmem:[%s3475_s12 + $0x8] sm:$0xff]   ;;  %v3063_v23 = vld [vmem:[%s5332_s2 + $0x90] ss:$12 sps:$4 sm:$0xff]   ;;  %s5112_s22 = scalar_lea.vmem %s5334_s4, %s2601_s30 }
  0x13   : > { %v2637_v11 = vunpack.c.l.bf16 %v2636_v9  ;;  %v2638_v12 = vunpack.c.h.bf16 %v2636_v9  ;;  %v3490_v14 = vld [vmem:[%s5331_s1] ss:$0 sm:$0xff]  ;;  %v3503_v19 = vld [vmem:[%s5331_s1 + $0x1] ss:$0 sm:$0xff]  ;;  %v2641_v24 = vunpack.c.l.bf16 %v2779_v20  ;;  %v2642_v25 = vunpack.c.h.bf16 %v2779_v20  ;;  %v3064_v26 = vld [vmem:[%s5332_s2 + $0xac] ss:$12 sps:$4 sm:$0xff]  }
  0x14   : > { %603 = vmatpush1.bf16.msra.mxu0 %v3048_v4  ;;  %3026 = vmatpush1.bf16.msra.mxu1 %v3048_v4  ;;  %v2790_v21 = vld [vmem:[%s3475_s12 + $0x60] sm:$0xff]   ;;  %v2780_v31 = vld [vmem:[%s3475_s12 + $0x10] sm:$0xff]   ;;  %v2791_v34 = vld [vmem:[%s3475_s12 + $0x68] sm:$0xff]  }
  0x15   : > { %604 = vmatprep.subr.bf16.mxu0 %v3049_v5  ;;  %3019 = vmatprep.subr.bf16.mxu1 %v3049_v5  ;;  %v306_v17 = vmul.f32 %v2637_v11, %v3490_v14  ;;  %v307_v18 = vmul.f32 %v2638_v12, %v3490_v14  ;;  %v3061_v22 = vld [vmem:[%s5332_s2 + $0x94] ss:$12 sps:$4 sm:$0xff]   ;;  %v2685_v29 = vunpack.c.l.bf16 %v2790_v21  ;;  %v2686_v30 = vunpack.c.h.bf16 %v2790_v21  ;;  %v2781_v53 = vld [vmem:[%s3475_s12 + $0x18] sm:$0xff]   ;;  %v2787_v11 = vld [vmem:[%s3475_s12 + $0x48] sm:$0xff]  }
  0x16   : > { %v308_v35 = vmul.f32 %v2641_v24, %v3490_v14  ;;  %v309_v36 = vmul.f32 %v2642_v25, %v3490_v14  ;;  %v3066_v41 = vld [vmem:[%s5332_s2 + $0xa8] ss:$12 sps:$4 sm:$0xff]   ;;  %v2645_v42 = vunpack.c.l.bf16 %v2780_v31  ;;  %v2689_v43 = vunpack.c.l.bf16 %v2791_v34  ;;  %v3069_v21 = vld [vmem:[%s5332_s2 + $0x38] ss:$12 sps:$4 sm:$0xff]  }
  0x17   : > { %v3517_v27 = vadd.f32 %v3503_v19, %v306_v17  ;;  %v3520_v28 = vadd.f32 %v3503_v19, %v307_v18  ;;  %v330_v32 = vmul.f32 %v2685_v29, %v3490_v14  ;;  %v331_v33 = vmul.f32 %v2686_v30, %v3490_v14  ;;  %v2792_v46 = vld [vmem:[%s3475_s12 + $0x70] sm:$0xff]  }
  0x18   : > { %605 = vmatpush1.bf16.msra.mxu0 %v3051_v6  ;;  %3027 = vmatpush1.bf16.msra.mxu1 %v3051_v6  ;;  %v2646_v47 = vunpack.c.h.bf16 %v2780_v31  ;;  %v2690_v48 = vunpack.c.h.bf16 %v2791_v34  ;;  %v332_v49 = vmul.f32 %v2689_v43, %v3490_v14  ;;  %v3550_v51 = vadd.f32 %v3503_v19, %v308_v35  ;;  %v3067_v54 = vld [vmem:[%s5332_s2 + $0x8] ss:$12 sps:$4 sm:$0xff]   ;;  %v3068_v6 = vld [vmem:[%s5332_s2 + $0x20] ss:$12 sps:$4 sm:$0xff]  }
  0x19   : > { %606 = vmatprep.subr.bf16.mxu0 %v3052_v7  ;;  %3020 = vmatprep.subr.bf16.mxu1 %v3052_v7  ;;  %5472 = vst [vmem:[#allocation2_spill] sm:$0xff] %v3517_v27  ;;  %5473 = vst [vmem:[#allocation3_spill] sm:$0xff] %v3520_v28  ;;  %v5367_v37 = vmax.f32 %v3517_v27, 0.0  ;;  %v5364_v38 = vmax.f32 %v3520_v28, 0.0  ;;  %v3531_v39 = vadd.f32 %v3503_v19, %v330_v32  ;;  %v2693_v57 = vunpack.c.l.bf16 %v2792_v46 }
  0x1a   : > { %v3534_v40 = vadd.f32 %v3503_v19, %v331_v33  ;;  %5476 = vst [vmem:[#allocation6_spill] sm:$0xff] %v3550_v51  ;;  %v3553_v52 = vadd.f32 %v3503_v19, %v309_v36  ;;  %v310_v55 = vmul.f32 %v2645_v42, %v3490_v14  ;;  %v333_v56 = vmul.f32 %v2690_v48, %v3490_v14  ;;  %v2782_v48 = vld [vmem:[%s3475_s12 + $0x20] sm:$0xff]  }
  0x1b   : > { %5474 = vst [vmem:[#allocation4_spill] sm:$0xff] %v3531_v39  ;;  %v5343_v44 = vmax.f32 %v3531_v39, 0.0  ;;  %v3547_v50 = vpack.c.bf16 %v5364_v38, %v5367_v37  ;;  %v2694_v58 = vunpack.c.h.bf16 %v2792_v46  ;;  %v3568_v60 = vadd.f32 %v3503_v19, %v332_v49 }
  0x1c   : > { %607 = vmatpush1.bf16.msra.mxu0 %v3054_v8  ;;  %3028 = vmatpush1.bf16.msra.mxu1 %v3054_v8  ;;  %5475 = vst [vmem:[#allocation5_spill] sm:$0xff] %v3534_v40  ;;  %v5340_v45 = vmax.f32 %v3534_v40, 0.0  ;;  %5477 = vst [vmem:[#allocation7_spill] sm:$0xff] %v3553_v52  ;;  %v311_v61 = vmul.f32 %v2646_v47, %v3490_v14  ;;  %v2649_v62 = vunpack.c.l.bf16 %v2781_v53  ;;  %v2650_v63 = vunpack.c.h.bf16 %v2781_v53  ;;  %v3070_v47 = vld [vmem:[%s5332_s2 + $0x50] ss:$12 sps:$4 sm:$0xff]  }
  0x1d   : > { %608 = vmatprep.subr.bf16.mxu0 %v3055_v10  ;;  %3021 = vmatprep.subr.bf16.mxu1 %v3055_v10  ;;  %5478 = vst [vmem:[#allocation8_spill] sm:$0xff] %v3568_v60  ;;  %v3572_v0 = vadd.f32 %v3503_v19, %v333_v56  ;;  %v5366_v1 = vmax.f32 %v3550_v51, 0.0  ;;  %v5365_v3 = vmax.f32 %v3553_v52, 0.0  ;;  %v334_v4 = vmul.f32 %v2693_v57, %v3490_v14  ;;  %v2793_v10 = vld [vmem:[%s3475_s12 + $0x78] sm:$0xff]  }
  0x1e   : > { %v3565_v59 = vpack.c.bf16 %v5340_v45, %v5343_v44  ;;  %v335_v5 = vmul.f32 %v2694_v58, %v3490_v14  ;;  %v3584_v7 = vadd.f32 %v3503_v19, %v310_v55  ;;  %v5342_v8 = vmax.f32 %v3568_v60, 0.0 }
  0x1f   : > { %5479 = vst [vmem:[#allocation9_spill] sm:$0xff] %v3572_v0  ;;  %v5341_v9 = vmax.f32 %v3572_v0, 0.0  ;;  %v3592_v12 = vadd.f32 %v3503_v19, %v311_v61  ;;  %v313_v17 = vmul.f32 %v2650_v63, %v3490_v14  ;;  %v3605_v18 = vadd.f32 %v3503_v19, %v334_v4 }
  0x20   : > { %609 = vmatpush1.bf16.msra.mxu0 %v3057_v13  ;;  %3029 = vmatpush1.bf16.msra.mxu1 %v3057_v13  ;;  %5480 = vst [vmem:[#allocation10_spill] sm:$0xff] %v3584_v7  ;;  %v312_v13 = vmul.f32 %v2649_v62, %v3490_v14  ;;  %v3608_v20 = vadd.f32 %v3503_v19, %v335_v5  ;;  %v2697_v24 = vunpack.c.l.bf16 %v2793_v10  ;;  %v2673_v25 = vunpack.c.l.bf16 %v2787_v11 }
  0x21   : > { %610 = vmatprep.subr.bf16.mxu0 %v3058_v15  ;;  %3022 = vmatprep.subr.bf16.mxu1 %v3058_v15  ;;  %5481 = vst [vmem:[#allocation11_spill] sm:$0xff] %v3592_v12  ;;  %v2788_v15 = vld [vmem:[%s3475_s12 + $0x50] sm:$0xff]   ;;  %5482 = vst [vmem:[#allocation12_spill] sm:$0xff] %v3605_v18  ;;  %v3619_v29 = vpack.c.bf16 %v5341_v9, %v5342_v8  ;;  %v2698_v30 = vunpack.c.h.bf16 %v2793_v10  ;;  %v5360_v33 = vmax.f32 %v3592_v12, 0.0  ;;  %v2654_v10 = vunpack.c.h.bf16 %v2782_v48 }
  0x22   : > { %5483 = vst [vmem:[#allocation13_spill] sm:$0xff] %v3608_v20  ;;  %v2677_v31 = vunpack.c.l.bf16 %v2788_v15  ;;  %v2678_v32 = vunpack.c.h.bf16 %v2788_v15  ;;  %v324_v34 = vmul.f32 %v2673_v25, %v3490_v14  ;;  %v5336_v42 = vmax.f32 %v3608_v20, 0.0 }
  0x23   : > { %v336_v49 = vmul.f32 %v2697_v24, %v3490_v14  ;;  %v337_v56 = vmul.f32 %v2698_v30, %v3490_v14  ;;  %v3651_v62 = vadd.f32 %v3503_v19, %v312_v13  ;;  %v3654_v63 = vadd.f32 %v3503_v19, %v313_v17  ;;  %v3071_v13 = vld [vmem:[%s5332_s2 + $0x68] ss:$12 sps:$4 sm:$0xff]  }
  0x24   : > { %611 = vmatpush1.bf16.msra.mxu0 %v3060_v16  ;;  %3030 = vmatpush1.bf16.msra.mxu1 %v3060_v16  ;;  %v3601_v16 = vpack.c.bf16 %v5365_v3, %v5366_v1  ;;  %v326_v43 = vmul.f32 %v2677_v31, %v3490_v14  ;;  %v327_v46 = vmul.f32 %v2678_v32, %v3490_v14  ;;  %v2783_v31 = vld [vmem:[%s3475_s12 + $0x28] sm:$0xff]  }
  0x25   : > { %612 = vmatprep.subr.bf16.mxu0 %v3061_v22  ;;  %3023 = vmatprep.subr.bf16.mxu1 %v3061_v22  ;;  %v2789_v22 = vld [vmem:[%s3475_s12 + $0x58] sm:$0xff]   ;;  %v3636_v53 = vadd.f32 %v3503_v19, %v324_v34  ;;  %5488 = vst [vmem:[#allocation18_spill] sm:$0xff] %v3651_v62  ;;  %5489 = vst [vmem:[#allocation19_spill] sm:$0xff] %v3654_v63  ;;  %v5362_v24 = vmax.f32 %v3651_v62, 0.0  ;;  %v5361_v25 = vmax.f32 %v3654_v63, 0.0 }
  0x26   : > { %v2681_v36 = vunpack.c.l.bf16 %v2789_v22  ;;  %v2682_v55 = vunpack.c.h.bf16 %v2789_v22  ;;  %v3644_v57 = vadd.f32 %v3503_v19, %v326_v43  ;;  %v3647_v58 = vadd.f32 %v3503_v19, %v327_v46  ;;  %v3072_v32 = vld [vmem:[%s5332_s2 + $0x80] ss:$12 sps:$4 sm:$0xff]  }
  0x27   : > { %5484 = vst [vmem:[#allocation14_spill] sm:$0xff] %v3636_v53  ;;  %v3681_v22 = vadd.f32 %v3503_v19, %v337_v56  ;;  %v315_v30 = vmul.f32 %v2654_v10, %v3490_v14  ;;  %v410_v43 = vpack.c.bf16 %v5361_v25, %v5362_v24  ;;  %v2784_v10 = vld [vmem:[%s3475_s12 + $0x30] sm:$0xff]  }
  0x28   : > { %613 = vmatpush1.bf16.msra.mxu0 %v3063_v23  ;;  %3031 = vmatpush1.bf16.msra.mxu1 %v3063_v23  ;;  %v5363_v23 = vmax.f32 %v3584_v7, 0.0  ;;  %5486 = vst [vmem:[#allocation16_spill] sm:$0xff] %v3644_v57  ;;  %5487 = vst [vmem:[#allocation17_spill] sm:$0xff] %v3647_v58  ;;  %v328_v61 = vmul.f32 %v2681_v36, %v3490_v14  ;;  %v329_v4 = vmul.f32 %v2682_v55, %v3490_v14 }
  0x29   : > { %614 = vmatprep.subr.bf16.mxu0 %v3064_v26  ;;  %3024 = vmatprep.subr.bf16.mxu1 %v3064_v26  ;;  %v2674_v26 = vunpack.c.h.bf16 %v2787_v11  ;;  %5493 = vst [vmem:[#allocation23_spill] sm:$0xff] %v3681_v22  ;;  %v2657_v36 = vunpack.c.l.bf16 %v2783_v31 }
  0x2a   : > { %v409_v5 = vpack.c.bf16 %v5360_v33, %v5363_v23  ;;  %v3663_v11 = vadd.f32 %v3503_v19, %v328_v61  ;;  %v3669_v15 = vadd.f32 %v3503_v19, %v329_v4 }
  0x2b   : > { %v325_v35 = vmul.f32 %v2674_v26, %v3490_v14  ;;  %v316_v4 = vmul.f32 %v2657_v36, %v3490_v14  ;;  %v2662_v36 = vunpack.c.h.bf16 %v2784_v10 }
  0x2c   : > { %615 = vmatpush1.bf16.msra.mxu0 %v3066_v41  ;;  %3032 = vmatpush1.bf16.msra.mxu1 %v3066_v41  ;;  %v5339_v41 = vmax.f32 %v3605_v18, 0.0  ;;  %5490 = vst [vmem:[#allocation20_spill] sm:$0xff] %v3663_v11  ;;  %5491 = vst [vmem:[#allocation21_spill] sm:$0xff] %v3669_v15  ;;  %v5346_v8 = vmax.f32 %v3663_v11, 0.0  ;;  %v5345_v44 = vmax.f32 %v3669_v15, 0.0 }
  0x2d   : > { %2921 = vmatprep.subr.bf16.mxu1 %v3067_v54 }
  0x2e   : > { %v3675_v17 = vpack.c.bf16 %v5336_v42, %v5339_v41  ;;  %v319_v42 = vmul.f32 %v2662_v36, %v3490_v14  ;;  %v2786_v36 = vld [vmem:[%s3475_s12 + $0x40] sm:$0xff]  }
  0x2f   : > { %633 = vmatmul.mubr.bf16.vlgmr.msra.gmra.mrb[0].mxu0 %v3547_v50  ;;  %753 = vmatmul.mubr.bf16.vlgmr.msra.gmra.mrb[0].mxu1 %v3565_v59  ;;  %v2669_v41 = vunpack.c.l.bf16 %v2786_v36  ;;  %v2670_v45 = vunpack.c.h.bf16 %v2786_v36 }
  0x30   : > { %642 = vmatprep.mubr.bf16.mxu0 %v3404_v2  ;;  %762 = vmatprep.mubr.bf16.mxu1 %v3404_v2 }
  0x31   : > { %2922 = vmatpush3.bf16.msra.mxu1 %v3067_v54  ;;  %v3639_v54 = vadd.f32 %v3503_v19, %v325_v35  ;;  %v5337_v35 = vmax.f32 %v3681_v22, 0.0 }
  0x32   : > { %2923 = vmatprep.subr.bf16.mxu1 %v3068_v6 }
  0x33   : > { %5485 = vst [vmem:[#allocation15_spill] sm:$0xff] %v3639_v54 }
  0x35   : > { %2924 = vmatpush3.bf16.msra.mxu1 %v3068_v6  ;;  %v2653_v6 = vunpack.c.l.bf16 %v2782_v48  ;;  %v2658_v48 = vunpack.c.h.bf16 %v2783_v31  ;;  %v3731_v31 = vadd.f32 %v3503_v19, %v316_v4  ;;  %v2785_v4 = vld [vmem:[%s3475_s12 + $0x38] sm:$0xff]  }
  0x36   : > { %2925 = vmatprep.subr.bf16.mxu1 %v3069_v21 }
  0x37   : > { %643 = vmatmul.mubr.bf16.gmra.mrb[4].mxu0 %v3601_v16  ;;  %763 = vmatmul.mubr.bf16.gmra.mrb[4].mxu1 %v3619_v29  ;;  %v314_v26 = vmul.f32 %v2653_v6, %v3490_v14  ;;  %v317_v6 = vmul.f32 %v2658_v48, %v3490_v14  ;;  %5496 = vst [vmem:[#allocation26_spill] sm:$0xff] %v3731_v31 }
  0x38   : > { %652 = vmatprep.mubr.bf16.mxu0 %v3404_v2  ;;  %772 = vmatprep.mubr.bf16.mxu1 %v3404_v2 }
  0x39   : > { %2926 = vmatpush3.bf16.msra.mxu1 %v3069_v21  ;;  %v3678_v21 = vadd.f32 %v3503_v19, %v336_v49  ;;  %v3701_v46 = vadd.f32 %v3503_v19, %v314_v26  ;;  %v3073_v49 = vld [vmem:[%s5332_s2 + $0x98] ss:$12 sps:$4 sm:$0xff]   ;;  %v2661_v26 = vunpack.c.l.bf16 %v2784_v10 }
  0x3a   : > { %2927 = vmatprep.subr.bf16.mxu1 %v3070_v47 }
  0x3b   : > { %5492 = vst [vmem:[#allocation22_spill] sm:$0xff] %v3678_v21  ;;  %v5338_v34 = vmax.f32 %v3678_v21, 0.0  ;;  %5494 = vst [vmem:[#allocation24_spill] sm:$0xff] %v3701_v46  ;;  %v5358_v56 = vmax.f32 %v3701_v46, 0.0  ;;  %v318_v48 = vmul.f32 %v2661_v26, %v3490_v14  ;;  %v2665_v26 = vunpack.c.l.bf16 %v2785_v4 }
  0x3d   : > { %2928 = vmatpush3.bf16.msra.mxu1 %v3070_v47  ;;  %v3704_v47 = vadd.f32 %v3503_v19, %v315_v30  ;;  %v3713_v55 = vpack.c.bf16 %v5337_v35, %v5338_v34  ;;  %v2666_v35 = vunpack.c.h.bf16 %v2785_v4 }
  0x3e   : > { %2929 = vmatprep.subr.bf16.mxu1 %v3071_v13 }
  0x3f   : > { %653 = vmatmul.mubr.bf16.gmra.mrb[8].mxu0 %v409_v5  ;;  %773 = vmatmul.mubr.bf16.gmra.mrb[8].mxu1 %v3675_v17  ;;  %5495 = vst [vmem:[#allocation25_spill] sm:$0xff] %v3704_v47  ;;  %v5356_v61 = vmax.f32 %v3704_v47, 0.0 }
  0x40   : > { %662 = vmatprep.mubr.bf16.mxu0 %v3404_v2  ;;  %782 = vmatprep.mubr.bf16.mxu1 %v3404_v2 }
  0x41   : > { %2930 = vmatpush3.bf16.msra.mxu1 %v3071_v13  ;;  %v3074_v13 = vld [vmem:[%s5332_s2 + $0xb0] ss:$12 sps:$4 sm:$0xff]   ;;  %v411_v30 = vpack.c.bf16 %v5356_v61, %v5358_v56 }
  0x42   : > { %2931 = vmatprep.subr.bf16.mxu1 %v3072_v32 }
  0x45   : > { %2932 = vmatpush3.bf16.msra.mxu1 %v3072_v32  ;;  %v3734_v32 = vadd.f32 %v3503_v19, %v317_v6  ;;  %v3744_v6 = vadd.f32 %v3503_v19, %v318_v48  ;;  %v320_v48 = vmul.f32 %v2665_v26, %v3490_v14  ;;  %v322_v26 = vmul.f32 %v2669_v41, %v3490_v14 }
  0x46   : > { %2933 = vmatprep.subr.bf16.mxu1 %v3073_v49 }
  0x47   : > { %663 = vmatmul.mubr.bf16.gmra.mrb[12].mxu0 %v410_v43  ;;  %783 = vmatmul.mubr.bf16.gmra.mrb[12].mxu1 %v3713_v55  ;;  %5497 = vst [vmem:[#allocation27_spill] sm:$0xff] %v3734_v32  ;;  %5498 = vst [vmem:[#allocation28_spill] sm:$0xff] %v3744_v6  ;;  %v5355_v34 = vmax.f32 %v3744_v6, 0.0  ;;  %v3764_v4 = vadd.f32 %v3503_v19, %v320_v48 }
  0x48   : > { %672 = vmatprep.mubr.bf16.mxu0 %v3404_v2  ;;  %2937 = vmatprep.mubr.bf16.mxu1 %v3547_v50  ;;  %v5359_v50 = vmax.f32 %v3731_v31, 0.0 }
  0x49   : > { %2934 = vmatpush3.bf16.msra.mxu1 %v3073_v49  ;;  %v5357_v49 = vmax.f32 %v3734_v32, 0.0  ;;  %5500 = vst [vmem:[#allocation30_spill] sm:$0xff] %v3764_v4  ;;  %v5354_v36 = vmax.f32 %v3764_v4, 0.0 }
  0x4a   : > { %2935 = vmatprep.subr.bf16.mxu1 %v3074_v13 }
  0x4b   : > { %v412_v10 = vpack.c.bf16 %v5357_v49, %v5359_v50 }
  0x4d   : > { %2936 = vmatpush3.bf16.msra.mxu1 %v3074_v13  ;;  %v3751_v13 = vadd.f32 %v3503_v19, %v319_v42 }
  0x4f   : > { %673 = vmatmul.mubr.bf16.gmra.mrb[16].mxu0 %v411_v30  ;;  %5499 = vst [vmem:[#allocation29_spill] sm:$0xff] %v3751_v13 }
  0x50   : > { %682 = vmatprep.mubr.bf16.mxu0 %v3404_v2  ;;  %2938 = vmatmul.mubr.bf16.vlgmr.msra.gmra.mrb[16].mxu1 %v3601_v16  ;;  %v5352_v16 = vmax.f32 %v3751_v13, 0.0 }
  0x51   : > { %2941 = vmatprep.mubr.bf16.mxu1 %v409_v5  ;;  %v321_v5 = vmul.f32 %v2666_v35, %v3490_v14  ;;  %v323_v35 = vmul.f32 %v2670_v45, %v3490_v14 }
  0x52   : > { %v413_v42 = vpack.c.bf16 %v5352_v16, %v5355_v34 }
  0x53   : > { %v3767_v9 = vadd.f32 %v3503_v19, %v321_v5  ;;  %v3778_v48 = vadd.f32 %v3503_v19, %v323_v35  ;;  %v5349_v5 = vmax.f32 %v3639_v54, 0.0 }
  0x55   : > { %5501 = vst [vmem:[#allocation31_spill] sm:$0xff] %v3767_v9  ;;  %5503 = vst [vmem:[#allocation33_spill] sm:$0xff] %v3778_v48  ;;  %v5348_v41 = vmax.f32 %v3778_v48, 0.0 }
  0x57   : > { %683 = vmatmul.mubr.bf16.gmra.mrb[20].mxu0 %v412_v10 }
  0x58   : > { %692 = vmatprep.mubr.bf16.mxu0 %v3404_v2  ;;  %2942 = vmatmul.mubr.bf16.gmra.mrb[20].mxu1 %v410_v43  ;;  %v5353_v43 = vmax.f32 %v3767_v9, 0.0 }
  0x59   : > { %2945 = vmatprep.mubr.bf16.mxu1 %v411_v30  ;;  %v3775_v30 = vadd.f32 %v3503_v19, %v322_v26  ;;  %v5344_v26 = vmax.f32 %v3647_v58, 0.0 }
  0x5a   : > { %v414_v14 = vpack.c.bf16 %v5353_v43, %v5354_v36 }
  0x5b   : > { %5502 = vst [vmem:[#allocation32_spill] sm:$0xff] %v3775_v30  ;;  %v5351_v45 = vmax.f32 %v3775_v30, 0.0 }
  0x5d   : > { %v415_v19 = vpack.c.bf16 %v5348_v41, %v5351_v45 }
  0x5f   : > { %693 = vmatmul.mubr.bf16.gmra.mrb[24].mxu0 %v413_v42 }
  0x60   : > { %702 = vmatprep.mubr.bf16.mxu0 %v3404_v2  ;;  %2946 = vmatmul.mubr.bf16.gmra.mrb[24].mxu1 %v412_v10  ;;  %v5350_v10 = vmax.f32 %v3636_v53, 0.0 }
  0x61   : > { %2949 = vmatprep.mubr.bf16.mxu1 %v413_v42  ;;  %v5347_v42 = vmax.f32 %v3644_v57, 0.0 }
  0x62   : > { %v416_v35 = vpack.c.bf16 %v5349_v5, %v5350_v10 }
  0x67   : > { %703 = vmatmul.mubr.bf16.gmra.mrb[28].mxu0 %v414_v14 }
  0x68   : > { %712 = vmatprep.mubr.bf16.mxu0 %v3404_v2  ;;  %2950 = vmatmul.mubr.bf16.gmra.mrb[28].mxu1 %v414_v14  ;;  %v417_v14 = vpack.c.bf16 %v5344_v26, %v5347_v42 }
  0x69   : > { %2953 = vmatprep.mubr.bf16.mxu1 %v415_v19 }
  0x6f   : > { %713 = vmatmul.mubr.bf16.gmra.mrb[32].mxu0 %v415_v19  ;;  %v418_v19 = vpack.c.bf16 %v5345_v44, %v5346_v8  ;;  %v455_v8 = vld [vmem:[%s5333_s3] sm:$0x7] }
  0x70   : > { %722 = vmatprep.mubr.bf16.mxu0 %v3404_v2  ;;  %2954 = vmatmul.mubr.bf16.gmra.mrb[32].mxu1 %v416_v35 }
  0x71   : > { %2957 = vmatprep.mubr.bf16.mxu1 %v417_v14 }
  0x77   : > { %723 = vmatmul.mubr.bf16.gmra.mrb[36].mxu0 %v416_v35  ;;  %v457_v35 = vlaneseq }
  0x78   : > { %732 = vmatprep.mubr.bf16.mxu0 %v3404_v2  ;;  %2958 = vmatmul.mubr.bf16.gmra.mrb[36].mxu1 %v418_v19 }
  0x79   : > { %2961 = vmatprep.mubr.bf16.mxu1 %v3565_v59  ;;  %v3816_v26 = vshrl.u32 %v457_v35, 7 }
  0x7b   : > { %v459_v44 = vsub.s32 0, %v3816_v26  ;;  %v463_v59 = vsub.s32 1, %v3816_v26 }
  0x7f   : > { %733 = vmatmul.mubr.bf16.gmra.mrb[40].mxu0 %v417_v14  ;;  %v3823_v14 = vrot.slane %v455_v8, %v459_v44 }
  0x80   : > { %742 = vmatprep.mubr.bf16.mxu0 %v3404_v2  ;;  %2962 = vmatmul.mubr.bf16.gmra.mrb[40].mxu1 %v3619_v29  ;;  %v3825_v2 = vrot.slane %v455_v8, %v463_v59 }
  0x81   : > { %2965 = vmatprep.mubr.bf16.mxu1 %v3675_v17 }
  0x87   : > { %743 = vmatmul.mubr.bf16.gmra.mrb[44].mxu0 %v418_v19 }
  0x88   : > { %2966 = vmatmul.mubr.bf16.gmra.mrb[44].mxu1 %v3713_v55 }
 0x102   : > { %v634_v29 = vpop.f32.mrb[0].mxu0  ;;  %v754_v42 = vpop.f32.mrb[0].mxu1 }
 0x103   : > { %v3828_v17 = vadd.f32 %v634_v29, %v3823_v14  ;;  %v636_v55 = vpop.f32.mrb[1].mxu0  ;;  %v3838_v44 = vadd.f32 %v754_v42, %v3823_v14  ;;  %v756_v8 = vpop.f32.mrb[1].mxu1 }
 0x104   : > { %v3831_v19 = vadd.f32 %v636_v55, %v3825_v2  ;;  %v638_v35 = vpop.f32.mrb[2].mxu0  ;;  %v3845_v55 = vadd.f32 %v756_v8, %v3825_v2  ;;  %v758_v45 = vpop.f32.mrb[2].mxu1 }
 0x105   : > { %v954_v41 = vmin.f32 %v3828_v17, 20.0  ;;  %v3835_v5 = vadd.f32 %v638_v35, %v3823_v14  ;;  %v640_v10 = vpop.f32.mrb[3].mxu0  ;;  %5504 = vst [vmem:[#allocation34_spill] sm:$0xff] %v3838_v44  ;;  %v978_v35 = vmin.f32 %v3838_v44, 20.0  ;;  %v760_v36 = vpop.f32.mrb[3].mxu1  ;;  %vm986_vm0 = vcmp.gt.f32.partialorder %v3828_v17, 20.0 }
 0x106   : > { %v1210_v59 = vmin.f32 %v3831_v19, 20.0  ;;  %v3842_v29 = vadd.f32 %v640_v10, %v3825_v2  ;;  %v1234_v61 = vmin.f32 %v3845_v55, 20.0  ;;  %v3852_v10 = vadd.f32 %v758_v45, %v3823_v14 }
 0x107   : > { %v1018_v16 = vmul.f32 1.442695, %v954_v41  ;;  %v955_v43 = vmin.f32 %v3835_v5, 20.0  ;;  %v1066_v50 = vmul.f32 1.442695, %v978_v35  ;;  %v3855_v41 = vadd.f32 %v760_v36, %v3825_v2 }
 0x108   : > { %v1274_v34 = vmul.f32 1.442695, %v1210_v59  ;;  %v1211_v42 = vmin.f32 %v3842_v29, 20.0  ;;  %5505 = vst [vmem:[#allocation35_spill] sm:$0xff] %v3852_v10  ;;  %v1322_v25 = vmul.f32 1.442695, %v1234_v61 }
 0x109   : > { %3075 = vpow2.f32 %v1018_v16  ;;  %v1020_v49 = vmul.f32 1.442695, %v955_v43  ;;  %v979_v24 = vmin.f32 %v3852_v10, 20.0  ;;  %vm987_vm1 = vcmp.gt.f32.partialorder %v3835_v5, 20.0 }
 0x10a   : > { %3077 = vpow2.f32 %v1274_v34  ;;  %v1276_v8 = vmul.f32 1.442695, %v1211_v42  ;;  %v644_v56 = vpop.f32.mrb[4].mxu0  ;;  %v764_v34 = vpop.f32.mrb[4].mxu1  ;;  %vm1242_vm2 = vcmp.gt.f32.partialorder %v3831_v19, 20.0  ;;  %vm1243_vm3 = vcmp.gt.f32.partialorder %v3842_v29, 20.0 }
 0x10b   : > { %3079 = vpow2.f32 %v1020_v49  ;;  %v3858_v33 = vadd.f32 %v644_v56, %v3823_v14  ;;  %v646_v59 = vpop.f32.mrb[5].mxu0  ;;  %v1068_v49 = vmul.f32 1.442695, %v979_v24  ;;  %v1235_v56 = vmin.f32 %v3855_v41, 20.0  ;;  %v766_v42 = vpop.f32.mrb[5].mxu1 }
 0x10c   : > { %3081 = vpow2.f32 %v1276_v8  ;;  %v3862_v16 = vadd.f32 %v646_v59, %v3825_v2  ;;  %v648_v43 = vpop.f32.mrb[6].mxu0  ;;  %v768_v8 = vpop.f32.mrb[6].mxu1 }
 0x10d   : > { %5506 = vst [vmem:[#allocation36_spill] sm:$0xff] %v3858_v33  ;;  %v956_v45 = vmin.f32 %v3858_v33, 20.0  ;;  %v3866_v35 = vadd.f32 %v648_v43, %v3823_v14  ;;  %v650_v36 = vpop.f32.mrb[7].mxu0  ;;  %3083 = vpow2.f32 %v1066_v50  ;;  %v770_v3 = vpop.f32.mrb[7].mxu1  ;;  %v1324_v37 = vmul.f32 1.442695, %v1235_v56 }
 0x10e   : > { %v1212_v61 = vmin.f32 %v3862_v16, 20.0  ;;  %v3871_v23 = vadd.f32 %v650_v36, %v3825_v2  ;;  %3085 = vpow2.f32 %v1322_v25  ;;  %v3906_v39 = vadd.f32 %v768_v8, %v3823_v14 }
 0x10f   : > { %5507 = vst [vmem:[#allocation37_spill] sm:$0xff] %v3866_v35  ;;  %v1022_v59 = vmul.f32 1.442695, %v956_v45  ;;  %v957_v38 = vmin.f32 %v3866_v35, 20.0  ;;  %3087 = vpow2.f32 %v1068_v49  ;;  %v3882_v49 = vadd.f32 %v764_v34, %v3823_v14 }
 0x110   : > { %v1278_v1 = vmul.f32 1.442695, %v1212_v61  ;;  %v1213_v43 = vmin.f32 %v3871_v23, 20.0  ;;  %5511 = vst [vmem:[#allocation41_spill] sm:$0xff] %v3906_v39  ;;  %vm1244_vm4 = vcmp.gt.f32.partialorder %v3862_v16, 20.0  ;;  %vm1245_vm5 = vcmp.gt.f32.partialorder %v3871_v23, 20.0 }
 0x111   : > { %3089 = vpow2.f32 %v1022_v59  ;;  %v1024_v24 = vmul.f32 1.442695, %v957_v38  ;;  %5509 = vst [vmem:[#allocation39_spill] sm:$0xff] %v3882_v49 }
 0x112   : > { %3091 = vpow2.f32 %v1278_v1  ;;  %v1280_v20 = vmul.f32 1.442695, %v1213_v43  ;;  %v654_v22 = vpop.f32.mrb[8].mxu0  ;;  %v3884_v38 = vpop.f32.mrb[8].mxu1 }
 0x113   : > { %v3076_v21 = vpop.eup %3075  ;;  %3093 = vpow2.f32 %v1024_v24  ;;  %v3876_v50 = vadd.f32 %v654_v22, %v3823_v14  ;;  %v656_v45 = vpop.f32.mrb[9].mxu0 }
 0x114   : > { %v3078_v36 = vpop.eup %3077  ;;  %v1082_v18 = vadd.f32 1.0, %v3076_v21  ;;  %3095 = vpow2.f32 %v1280_v20  ;;  %v3879_v25 = vadd.f32 %v656_v45, %v3825_v2  ;;  %v658_v61 = vpop.f32.mrb[10].mxu0 }
 0x115   : > { %5508 = vst [vmem:[#allocation38_spill] sm:$0xff] %v3876_v50  ;;  %v3080_v1 = vpop.eup %3079  ;;  %v958_v56 = vmin.f32 %v3876_v50, 20.0  ;;  %v3888_v59 = vadd.f32 %v658_v61, %v3823_v14  ;;  %v660_v22 = vpop.f32.mrb[11].mxu0  ;;  %v1338_v43 = vadd.f32 1.0, %v3078_v36  ;;  %3097 = vpow2.f32 %v1324_v37 }
 0x116   : > { %v3890_v21 = vpop.f32.mrb[9].mxu1  ;;  %v3082_v20 = vpop.eup %3081  ;;  %3099 = vlog2.f32 %v1082_v18  ;;  %v1083_v24 = vadd.f32 1.0, %v3080_v1  ;;  %v1214_v45 = vmin.f32 %v3879_v25, 20.0  ;;  %v3894_v34 = vadd.f32 %v660_v22, %v3825_v2 }
 0x117   : > { %5510 = vst [vmem:[#allocation40_spill] sm:$0xff] %v3888_v59  ;;  %v3896_v40 = vpop.f32.mrb[10].mxu1  ;;  %v1026_v0 = vmul.f32 1.442695, %v958_v56  ;;  %v959_v60 = vmin.f32 %v3888_v59, 20.0  ;;  %3101 = vlog2.f32 %v1338_v43  ;;  %v3900_v61 = vadd.f32 %v766_v42, %v3825_v2  ;;  %v3084_v36 = vpop.eup %3083 }
 0x118   : > { %v3902_v37 = vpop.f32.mrb[11].mxu1  ;;  %3103 = vlog2.f32 %v1083_v24  ;;  %v1282_v18 = vmul.f32 1.442695, %v1214_v45  ;;  %v1215_v1 = vmin.f32 %v3894_v34, 20.0  ;;  %v3086_v22 = vpop.eup %3085  ;;  %v1339_v56 = vadd.f32 1.0, %v3082_v20 }
 0x119   : > { %3105 = vpow2.f32 %v1026_v0  ;;  %v1028_v58 = vmul.f32 1.442695, %v959_v60  ;;  %v3088_v15 = vpop.eup %3087  ;;  %v980_v42 = vmin.f32 %v3882_v49, 20.0  ;;  %v3915_v0 = vadd.f32 %v770_v3, %v3825_v2 }
 0x11a   : > { %3107 = vpow2.f32 %v1282_v18  ;;  %v1284_v43 = vmul.f32 1.442695, %v1215_v1  ;;  %v664_v11 = vpop.f32.mrb[12].mxu0  ;;  %v3921_v54 = vpop.f32.mrb[12].mxu1  ;;  %vm1246_vm6 = vcmp.gt.f32.partialorder %v3879_v25, 20.0  ;;  %vm1247_vm7 = vcmp.gt.f32.partialorder %v3894_v34, 20.0 }
 0x11b   : > { %v3090_v57 = vpop.eup %3089  ;;  %3109 = vpow2.f32 %v1028_v58  ;;  %v3911_v24 = vadd.f32 %v664_v11, %v3823_v14  ;;  %v666_v45 = vpop.f32.mrb[13].mxu0  ;;  %5513 = vst [vmem:[#allocation43_spill] sm:$0xff] %v3915_v0 }
 0x11c   : > { %v3092_v60 = vpop.eup %3091  ;;  %v1084_v20 = vadd.f32 1.0, %v3090_v57  ;;  %3111 = vpow2.f32 %v1284_v43  ;;  %v3918_v18 = vadd.f32 %v666_v45, %v3825_v2  ;;  %v668_v1 = vpop.f32.mrb[14].mxu0 }
 0x11d   : > { %5512 = vst [vmem:[#allocation42_spill] sm:$0xff] %v3911_v24  ;;  %v3094_v58 = vpop.eup %3093  ;;  %v1340_v11 = vadd.f32 1.0, %v3092_v60  ;;  %v960_v53 = vmin.f32 %v3911_v24, 20.0  ;;  %v3925_v8 = vadd.f32 %v668_v1, %v3823_v14  ;;  %v670_v3 = vpop.f32.mrb[15].mxu0  ;;  %3113 = vlog2.f32 %v1339_v56 }
 0x11e   : > { %v3927_v30 = vpop.f32.mrb[13].mxu1  ;;  %v3096_v57 = vpop.eup %3095  ;;  %3115 = vlog2.f32 %v1084_v20  ;;  %v1085_v43 = vadd.f32 1.0, %v3094_v58  ;;  %v1216_v45 = vmin.f32 %v3918_v18, 20.0  ;;  %v3931_v48 = vadd.f32 %v670_v3, %v3825_v2 }
 0x11f   : > { %5514 = vst [vmem:[#allocation44_spill] sm:$0xff] %v3925_v8  ;;  %v3933_v13 = vpop.f32.mrb[14].mxu1  ;;  %v3935_v60 = vpop.eup %3097  ;;  %3117 = vlog2.f32 %v1340_v11  ;;  %v1341_v1 = vadd.f32 1.0, %v3096_v57  ;;  %v1030_v9 = vmul.f32 1.442695, %v960_v53  ;;  %v961_v56 = vmin.f32 %v3925_v8, 20.0 }
 0x120   : > { %v3939_v4 = vpop.f32.mrb[15].mxu1  ;;  %v3100_v20 = vpop.eup %3099  ;;  %3119 = vlog2.f32 %v1085_v43  ;;  %v1286_v58 = vmul.f32 1.442695, %v1216_v45  ;;  %v1217_v6 = vmin.f32 %v3931_v48, 20.0  ;;  %v3942_v3 = vmul.f32 1.442695, %v980_v42 }
 0x121   : > { %v3102_v47 = vpop.eup %3101  ;;  %3121 = vlog2.f32 %v1341_v1  ;;  %v1032_v32 = vmul.f32 1.442695, %v961_v56  ;;  %v1115_v46 = vmul.f32 0.6931472, %v3100_v20  ;;  %v3945_v11 = vadd.f32 1.0, %v3084_v36 }
 0x122   : > { %v3104_v53 = vpop.eup %3103  ;;  %3123 = vpow2.f32 %v1030_v9  ;;  %v1288_v57 = vmul.f32 1.442695, %v1217_v6  ;;  %v674_v31 = vpop.f32.mrb[16].mxu0  ;;  %v3948_v43 = vadd.f32 1.0, %v3086_v22  ;;  %v3950_v45 = vadd.f32 1.0, %v3088_v15 }
 0x123   : > { %v3106_v42 = vpop.eup %3105  ;;  %3125 = vpow2.f32 %v1286_v58  ;;  %v3953_v1 = vadd.f32 %v674_v31, %v3823_v14  ;;  %v676_v56 = vpop.f32.mrb[17].mxu0  ;;  %v1117_v20 = vmul.f32 0.6931472, %v3104_v53  ;;  %v1371_v12 = vmul.f32 0.6931472, %v3102_v47 }
 0x124   : > { %v3108_v36 = vpop.eup %3107  ;;  %v1086_v63 = vadd.f32 1.0, %v3106_v42  ;;  %3127 = vpow2.f32 %v1032_v32  ;;  %v3956_v9 = vadd.f32 %v676_v56, %v3825_v2  ;;  %v678_v6 = vpop.f32.mrb[18].mxu0  ;;  %v3961_v15 = vsel %vm986_vm0, %v3828_v17, %v1115_v46 }
 0x125   : > { %5515 = vst [vmem:[#allocation45_spill] sm:$0xff] %v3953_v1  ;;  %5516 = vst [vmem:[#allocation46_spill] sm:$0xff] %v3961_v15  ;;  %v3963_v22 = vpop.f32.mrb[16].mxu1  ;;  %v3110_v58 = vpop.eup %3109  ;;  %v1342_v31 = vadd.f32 1.0, %v3108_v36  ;;  %3129 = vpow2.f32 %v1288_v57  ;;  %v962_v53 = vmin.f32 %v3953_v1, 20.0  ;;  %v3967_v47 = vadd.f32 %v678_v6, %v3823_v14 }
 0x126   : > { %v680_v32 = vpop.f32.mrb[19].mxu0  ;;  %v3969_v42 = vpop.f32.mrb[17].mxu1  ;;  %3131 = vlog2.f32 %v1086_v63  ;;  %v1087_v62 = vadd.f32 1.0, %v3110_v58  ;;  %v1218_v7 = vmin.f32 %v3956_v9, 20.0  ;;  %vm1248_vm8 = vcmp.gt.f32.partialorder %v3918_v18, 20.0 }
 0x127   : > { %5517 = vst [vmem:[#allocation47_spill] sm:$0xff] %v3967_v47  ;;  %v3112_v56 = vpop.eup %3111  ;;  %v3973_v46 = vadd.f32 %v680_v32, %v3825_v2  ;;  %v3975_v17 = vpop.f32.mrb[18].mxu1  ;;  %3133 = vlog2.f32 %v1342_v31  ;;  %v1034_v28 = vmul.f32 1.442695, %v962_v53  ;;  %v963_v6 = vmin.f32 %v3967_v47, 20.0 }
 0x128   : > { %v3114_v36 = vpop.eup %3113  ;;  %v1343_v57 = vadd.f32 1.0, %v3112_v56  ;;  %v3978_v52 = vpop.f32.mrb[19].mxu1  ;;  %3135 = vlog2.f32 %v1087_v62  ;;  %v1290_v63 = vmul.f32 1.442695, %v1218_v7  ;;  %v3986_v32 = vsel %vm987_vm1, %v3835_v5, %v1117_v20 }
 0x129   : > { %v3980_v51 = vpop.eup %3115  ;;  %v1219_v58 = vmin.f32 %v3973_v46, 20.0  ;;  %5519 = vst [vmem:[#allocation49_spill] sm:$0xff] %v3986_v32  ;;  %v1036_v53 = vmul.f32 1.442695, %v963_v6  ;;  %v1889_v56 = vpack.c.bf16 %v3986_v32, %v3961_v15  ;;  %v1373_v27 = vmul.f32 0.6931472, %v3114_v36 }
 0x12a   : > { %5518 = vst [vmem:[#allocation48_spill] sm:$0xff] %v3980_v51  ;;  %v3118_v31 = vpop.eup %3117  ;;  %3137 = vlog2.f32 %v1343_v57  ;;  %v1434_v62 = vsel %vm1242_vm2, %v3831_v19, %v1371_v12  ;;  %v684_v44 = vpop.f32.mrb[20].mxu0  ;;  %v5521_v5 = vmin.f32 %v3900_v61, 20.0  ;;  %vm1249_vm9 = vcmp.gt.f32.partialorder %v3931_v48, 20.0 }
 0x12b   : > { %v3991_v49 = vpop.eup %3119  ;;  %3139 = vpow2.f32 %v1034_v28  ;;  %v1292_v7 = vmul.f32 1.442695, %v1219_v58  ;;  %2985 = vmatprep.mubr.bf16.mxu0 %v1889_v56  ;;  %v1435_v36 = vsel %vm1243_vm3, %v3842_v29, %v1373_v27  ;;  %v4005_v28 = vadd.f32 %v684_v44, %v3823_v14  ;;  %v686_v6 = vpop.f32.mrb[21].mxu0 }
 0x12c   : > { %5520 = vst [vmem:[#allocation50_spill] sm:$0xff] %v3991_v49  ;;  %v3999_v20 = vmul.f32 1.442695, %v5521_v5  ;;  %v3122_v57 = vpop.eup %3121  ;;  %3141 = vpow2.f32 %v1290_v63  ;;  %v1375_v58 = vmul.f32 0.6931472, %v3118_v31  ;;  %v1466_v19 = vpack.c.bf16 %v1435_v36, %v1434_v62  ;;  %v688_v5 = vpop.f32.mrb[22].mxu0 }
 0x12d   : > { %5522 = vst [vmem:[#allocation51_spill] sm:$0xff] %v4005_v28  ;;  %v3124_v12 = vpop.eup %3123  ;;  %3143 = vpow2.f32 %v1036_v53  ;;  %v1627_v15 = vadd.f32 %v1435_v36, %v1434_v62  ;;  %v4008_v32 = vadd.f32 %v686_v6, %v3825_v2  ;;  %v4010_v10 = vpop.f32.mrb[20].mxu1  ;;  %v964_v27 = vmin.f32 %v4005_v28, 20.0 }
 0x12e   : > { %v3126_v63 = vpop.eup %3125  ;;  %v1088_v56 = vadd.f32 1.0, %v3124_v12  ;;  %3145 = vpow2.f32 %v1292_v7  ;;  %v4014_v44 = vadd.f32 %v688_v5, %v3823_v14  ;;  %v690_v29 = vpop.f32.mrb[23].mxu0  ;;  %1498 = vxpose.xlu1.c.b16.start [1/8] %v1466_v19, 128  ;;  %v1377_v50 = vmul.f32 0.6931472, %v3122_v57 }
 0x12f   : > { %v4016_v31 = vpop.f32.mrb[21].mxu1  ;;  %v3128_v53 = vpop.eup %3127  ;;  %v1344_v1 = vadd.f32 1.0, %v3126_v63  ;;  %v1220_v62 = vmin.f32 %v4008_v32, 20.0  ;;  %v4020_v36 = vadd.f32 %v690_v29, %v3825_v2  ;;  %3147 = vlog2.f32 %v3945_v11 }
 0x130   : > { %5523 = vst [vmem:[#allocation52_spill] sm:$0xff] %v4014_v44  ;;  %v4023_v6 = vpop.f32.mrb[22].mxu1  ;;  %v3130_v7 = vpop.eup %3129  ;;  %3149 = vlog2.f32 %v1088_v56  ;;  %v1089_v12 = vadd.f32 1.0, %v3128_v53  ;;  %v1038_v5 = vmul.f32 1.442695, %v964_v27  ;;  %v965_v28 = vmin.f32 %v4014_v44, 20.0 }
 0x131   : > { %v4026_v47 = vpop.f32.mrb[23].mxu1  ;;  %v4028_v24 = vpop.eup %3131  ;;  %3151 = vlog2.f32 %v1344_v1  ;;  %v1345_v19 = vadd.f32 1.0, %v3130_v7  ;;  %v1294_v63 = vmul.f32 1.442695, %v1220_v62  ;;  %v1221_v29 = vmin.f32 %v4020_v36, 20.0 }
 0x132   : > { %5524 = vst [vmem:[#allocation53_spill] sm:$0xff] %v4028_v24  ;;  %v3134_v11 = vpop.eup %3133  ;;  %3153 = vlog2.f32 %v1089_v12  ;;  %v1040_v8 = vmul.f32 1.442695, %v965_v28  ;;  %v1436_v56 = vsel %vm1244_vm4, %v3862_v16, %v1375_v58  ;;  %v694_v1 = vpop.f32.mrb[24].mxu0  ;;  %v5526_v62 = vmin.f32 %v3906_v39, 20.0 }
 0x133   : > { %v4035_v27 = vpop.eup %3135  ;;  %3155 = vlog2.f32 %v1345_v19  ;;  %v1296_v53 = vmul.f32 1.442695, %v1221_v29  ;;  %v1628_v44 = vadd.f32 %v1627_v15, %v1436_v56  ;;  %v1437_v57 = vsel %vm1245_vm5, %v3871_v23, %v1377_v50  ;;  %v696_v28 = vpop.f32.mrb[25].mxu0 }
 0x134   : > { %5525 = vst [vmem:[#allocation54_spill] sm:$0xff] %v4035_v27  ;;  %v4040_v7 = vmul.f32 1.442695, %v5526_v62  ;;  %v3138_v24 = vpop.eup %3137  ;;  %3157 = vpow2.f32 %v1038_v5  ;;  %v4046_v16 = vadd.f32 %v694_v1, %v3823_v14  ;;  %v1379_v58 = vmul.f32 0.6931472, %v3134_v11  ;;  %v698_v62 = vpop.f32.mrb[26].mxu0 }
 0x135   : > { %v3140_v12 = vpop.eup %3139  ;;  %3159 = vpow2.f32 %v1294_v63  ;;  %v1467_v15 = vpack.c.bf16 %v1437_v57, %v1436_v56  ;;  %v1629_v19 = vadd.f32 %v1628_v44, %v1437_v57  ;;  %v4049_v29 = vadd.f32 %v696_v28, %v3825_v2  ;;  %v4051_v39 = vpop.f32.mrb[24].mxu1 }
 0x136   : > { %5527 = vst [vmem:[#allocation55_spill] sm:$0xff] %v4046_v16  ;;  %v3142_v5 = vpop.eup %3141  ;;  %v1090_v27 = vadd.f32 1.0, %v3140_v12  ;;  %3161 = vpow2.f32 %v1040_v8  ;;  %v966_v23 = vmin.f32 %v4046_v16, 20.0  ;;  %v4055_v50 = vadd.f32 %v698_v62, %v3823_v14  ;;  %v700_v1 = vpop.f32.mrb[27].mxu0 }
 0x137   : > { %v4057_v11 = vpop.f32.mrb[25].mxu1  ;;  %v3144_v63 = vpop.eup %3143  ;;  %v1346_v56 = vadd.f32 1.0, %v3142_v5  ;;  %3163 = vpow2.f32 %v1296_v53  ;;  %1499 = vxpose.xlu1.c.b16.cont [2/8] %v1467_v15, 128  ;;  %v1222_v44 = vmin.f32 %v4049_v29, 20.0  ;;  %v4061_v57 = vadd.f32 %v700_v1, %v3825_v2 }
 0x138   : > { %5528 = vst [vmem:[#allocation56_spill] sm:$0xff] %v4055_v50  ;;  %v4063_v28 = vpop.f32.mrb[26].mxu1  ;;  %v3146_v8 = vpop.eup %3145  ;;  %3165 = vlog2.f32 %v1090_v27  ;;  %v1091_v12 = vadd.f32 1.0, %v3144_v63  ;;  %v1042_v16 = vmul.f32 1.442695, %v966_v23  ;;  %v967_v62 = vmin.f32 %v4055_v50, 20.0 }
 0x139   : > { %v4066_v59 = vpop.f32.mrb[27].mxu1  ;;  %v4068_v51 = vpop.eup %3147  ;;  %3167 = vlog2.f32 %v1346_v56  ;;  %v1347_v53 = vadd.f32 1.0, %v3146_v8  ;;  %v4073_v5 = vadd.f32 %v3884_v38, %v3823_v14  ;;  %v1298_v27 = vmul.f32 1.442695, %v1222_v44 }
 0x13a   : > { %5529 = vst [vmem:[#allocation57_spill] sm:$0xff] %v4066_v59  ;;  %5530 = vst [vmem:[#allocation58_spill] sm:$0xff] %v4068_v51  ;;  %v4075_v1 = vpop.eup %3149  ;;  %3169 = vlog2.f32 %v1091_v12  ;;  %v1381_v63 = vmul.f32 0.6931472, %v3138_v24  ;;  %v1438_v23 = vsel %vm1246_vm6, %v3879_v25, %v1379_v58  ;;  %v1363_v56 = vadd.f32 1.0, %v3935_v60  ;;  %v704_v51 = vpop.f32.mrb[28].mxu0 }
 0x13b   : > { %5531 = vst [vmem:[#allocation59_spill] sm:$0xff] %v4073_v5  ;;  %5532 = vst [vmem:[#allocation60_spill] sm:$0xff] %v4075_v1  ;;  %v3152_v50 = vpop.eup %3151  ;;  %3171 = vlog2.f32 %v1347_v53  ;;  %v1223_v8 = vmin.f32 %v4061_v57, 20.0  ;;  %v1630_v15 = vadd.f32 %v1629_v19, %v1438_v23  ;;  %v1044_v38 = vmul.f32 1.442695, %v967_v62  ;;  %v706_v25 = vpop.f32.mrb[29].mxu0 }
 0x13c   : > { %v4082_v33 = vpop.eup %3153  ;;  %3173 = vpow2.f32 %v1042_v16  ;;  %v1439_v24 = vsel %vm1247_vm7, %v3894_v34, %v1381_v63  ;;  %v4088_v44 = vadd.f32 %v704_v51, %v3823_v14  ;;  %v4092_v19 = vadd.f32 %v706_v25, %v3825_v2  ;;  %v708_v53 = vpop.f32.mrb[30].mxu0 }
 0x13d   : > { %5533 = vst [vmem:[#allocation61_spill] sm:$0xff] %v4082_v33  ;;  %v3156_v58 = vpop.eup %3155  ;;  %3175 = vlog2.f32 %v3948_v43  ;;  %v1468_v60 = vpack.c.bf16 %v1439_v24, %v1438_v23  ;;  %v1631_v12 = vadd.f32 %v1630_v15, %v1439_v24  ;;  %v4094_v1 = vpop.f32.mrb[28].mxu1  ;;  %v1383_v51 = vmul.f32 0.6931472, %v3152_v50 }
 0x13e   : > { %5534 = vst [vmem:[#allocation62_spill] sm:$0xff] %v4088_v44  ;;  %5535 = vst [vmem:[#allocation63_spill] sm:$0xff] %v4094_v1  ;;  %v3158_v16 = vpop.eup %3157  ;;  %3177 = vpow2.f32 %v1298_v27  ;;  %v710_v62 = vpop.f32.mrb[31].mxu0  ;;  %v968_v15 = vmin.f32 %v4088_v44, 20.0  ;;  %v1385_v23 = vmul.f32 0.6931472, %v3156_v58 }
 0x13f   : > { %v4098_v63 = vpop.f32.mrb[29].mxu1  ;;  %v3160_v33 = vpop.eup %3159  ;;  %v1092_v43 = vadd.f32 1.0, %v3158_v16  ;;  %3179 = vlog2.f32 %v3950_v45  ;;  %1500 = vxpose.xlu1.c.b16.cont [3/8] %v1468_v60, 128  ;;  %v1300_v49 = vmul.f32 1.442695, %v1223_v8  ;;  %v1224_v16 = vmin.f32 %v4092_v19, 20.0 }
 0x140   : > { %5536 = vst [vmem:[#allocation64_spill] sm:$0xff] %v4098_v63  ;;  %v4102_v24 = vpop.f32.mrb[30].mxu1  ;;  %v3162_v25 = vpop.eup %3161  ;;  %v1348_v27 = vadd.f32 1.0, %v3160_v33  ;;  %3181 = vpow2.f32 %v1044_v38  ;;  %v4109_v45 = vadd.f32 %v708_v53, %v3823_v14  ;;  %v4114_v33 = vadd.f32 %v710_v62, %v3825_v2 }
 0x141   : > { %5537 = vst [vmem:[#allocation65_spill] sm:$0xff] %v4102_v24  ;;  %v4105_v34 = vpop.f32.mrb[31].mxu1  ;;  %v3164_v50 = vpop.eup %3163  ;;  %3183 = vlog2.f32 %v1092_v43  ;;  %v1093_v35 = vadd.f32 1.0, %v3162_v25  ;;  %v1440_v8 = vsel %vm1248_vm8, %v3918_v18, %v1383_v51  ;;  %v1046_v43 = vmul.f32 1.442695, %v968_v15 }
 0x142   : > { %5538 = vst [vmem:[#allocation66_spill] sm:$0xff] %v4105_v34  ;;  %5539 = vst [vmem:[#allocation67_spill] sm:$0xff] %v4109_v45  ;;  %v4111_v60 = vpop.eup %3165  ;;  %3185 = vlog2.f32 %v1348_v27  ;;  %v1349_v58 = vadd.f32 1.0, %v3164_v50  ;;  %v1441_v25 = vsel %vm1249_vm9, %v3931_v48, %v1385_v23  ;;  %v1632_v44 = vadd.f32 %v1631_v12, %v1440_v8  ;;  %v714_v53 = vpop.f32.mrb[32].mxu0 }
 0x143   : > { %5540 = vst [vmem:[#allocation68_spill] sm:$0xff] %v4111_v60  ;;  %v4119_v38 = vpop.eup %3167  ;;  %3187 = vlog2.f32 %v1093_v35  ;;  %v1469_v27 = vpack.c.bf16 %v1441_v25, %v1440_v8  ;;  %v4125_v50 = vadd.f32 %v714_v53, %v3823_v14  ;;  %v4129_v62 = vadd.f32 %v3890_v21, %v3825_v2  ;;  %v716_v18 = vpop.f32.mrb[33].mxu0 }
 0x144   : > { %v4122_v34 = vpop.eup %3169  ;;  %3189 = vlog2.f32 %v1349_v58  ;;  %v969_v35 = vmin.f32 %v4109_v45, 20.0  ;;  %v4132_v15 = vadd.f32 %v1632_v44, %v1441_v25  ;;  %v4135_v48 = vadd.f32 %v716_v18, %v3825_v2  ;;  %v718_v12 = vpop.f32.mrb[34].mxu0 }
 0x145   : > { %5541 = vst [vmem:[#allocation69_spill] sm:$0xff] %v4122_v34  ;;  %5542 = vst [vmem:[#allocation70_spill] sm:$0xff] %v4125_v50  ;;  %v3172_v51 = vpop.eup %3171  ;;  %3191 = vlog2.f32 %v1363_v56  ;;  %v4137_v23 = vpop.f32.mrb[32].mxu1  ;;  %v1225_v8 = vmin.f32 %v4114_v33, 20.0  ;;  %1501 = vxpose.xlu1.c.b16.cont [4/8] %v1469_v27, 128  ;;  %v970_v21 = vmin.f32 %v4125_v50, 20.0  ;;  %v4143_v56 = vadd.f32 %v3896_v40, %v3823_v14 }
 0x146   : > { %5543 = vst [vmem:[#allocation71_spill] sm:$0xff] %v4129_v62  ;;  %5544 = vst [vmem:[#allocation72_spill] sm:$0xff] %v4135_v48  ;;  %v3174_v58 = vpop.eup %3173  ;;  %3193 = vpow2.f32 %v1300_v49  ;;  %v720_v53 = vpop.f32.mrb[35].mxu0  ;;  %v1238_v45 = vmin.f32 %v4129_v62, 20.0  ;;  %v4152_v49 = vadd.f32 %v718_v12, %v3823_v14  ;;  %v1302_v60 = vmul.f32 1.442695, %v1224_v16 }
 0x147   : > { %5545 = vst [vmem:[#allocation73_spill] sm:$0xff] %v4137_v23  ;;  %5546 = vst [vmem:[#allocation74_spill] sm:$0xff] %v4143_v56  ;;  %v4145_v44 = vpop.f32.mrb[33].mxu1  ;;  %v4147_v25 = vpop.eup %3175  ;;  %v1094_v18 = vadd.f32 1.0, %v3174_v58  ;;  %3195 = vpow2.f32 %v3942_v3  ;;  %v5550_v40 = vmin.f32 %v3915_v0, 20.0  ;;  %v5553_v12 = vmin.f32 %v4073_v5, 20.0 }
 0x148   : > { %5547 = vst [vmem:[#allocation75_spill] sm:$0xff] %v4145_v44  ;;  %5548 = vst [vmem:[#allocation76_spill] sm:$0xff] %v4152_v49  ;;  %v4154_v27 = vpop.f32.mrb[34].mxu1  ;;  %v3178_v50 = vpop.eup %3177  ;;  %3197 = vpow2.f32 %v1046_v43  ;;  %v1226_v44 = vmin.f32 %v4135_v48, 20.0  ;;  %v1048_v62 = vmul.f32 1.442695, %v969_v35 }
 0x149   : > { %5549 = vst [vmem:[#allocation77_spill] sm:$0xff] %v4154_v27  ;;  %v1328_v34 = vmul.f32 1.442695, %v5550_v40  ;;  %v4159_v23 = vpop.f32.mrb[35].mxu1  ;;  %v4161_v58 = vpop.eup %3179  ;;  %3199 = vlog2.f32 %v1094_v18  ;;  %v1350_v3 = vadd.f32 1.0, %v3178_v50  ;;  %v983_v40 = vmin.f32 %v4143_v56, 20.0 }
 0x14a   : > { %5551 = vst [vmem:[#allocation78_spill] sm:$0xff] %v4159_v23  ;;  %5552 = vst [vmem:[#allocation79_spill] sm:$0xff] %v4161_v58  ;;  %v1074_v24 = vmul.f32 1.442695, %v5553_v12  ;;  %v3182_v63 = vpop.eup %3181  ;;  %3201 = vpow2.f32 %v3999_v20  ;;  %v1304_v43 = vmul.f32 1.442695, %v1225_v8  ;;  %v4180_v20 = vadd.f32 %v3902_v37, %v3825_v2 }
 0x14b   : > { %v4166_v16 = vmul.f32 1.442695, %v970_v21  ;;  %v4169_v27 = vpop.eup %3183  ;;  %3203 = vlog2.f32 %v1350_v3  ;;  %v1095_v48 = vadd.f32 1.0, %v3182_v63  ;;  %v4171_v23 = vmul.f32 1.442695, %v1238_v45  ;;  %v724_v35 = vpop.f32.mrb[36].mxu0 }
 0x14c   : > { %5554 = vst [vmem:[#allocation80_spill] sm:$0xff] %v4169_v27  ;;  %v971_v50 = vmin.f32 %v4152_v49, 20.0  ;;  %v4174_v18 = vpop.eup %3185  ;;  %3205 = vpow2.f32 %v1302_v60  ;;  %v4176_v12 = vmul.f32 1.442695, %v1226_v44  ;;  %5555 = vst [vmem:[#allocation81_spill] sm:$0xff] %v4180_v20  ;;  %v4183_v8 = vadd.f32 %v720_v53, %v3825_v2  ;;  %v726_v21 = vpop.f32.mrb[37].mxu0 }
 0x14d   : > { %v4185_v3 = vpop.eup %3187  ;;  %3207 = vlog2.f32 %v1095_v48  ;;  %v4189_v63 = vadd.f32 %v3921_v54, %v3823_v14  ;;  %v1387_v45 = vmul.f32 0.6931472, %v4119_v38  ;;  %v1389_v60 = vmul.f32 0.6931472, %v3172_v51  ;;  %v728_v44 = vpop.f32.mrb[38].mxu0 }
 0x14e   : > { %5556 = vst [vmem:[#allocation82_spill] sm:$0xff] %v4183_v8  ;;  %5557 = vst [vmem:[#allocation83_spill] sm:$0xff] %v4185_v3  ;;  %v4192_v5 = vpop.eup %3189  ;;  %3209 = vpow2.f32 %v4040_v7  ;;  %vm1250_vm10 = vcmp.gt.f32.partialorder %v3956_v9, 20.0  ;;  %vm1251_vm11 = vcmp.gt.f32.partialorder %v3973_v46, 20.0  ;;  %v4198_v37 = vadd.f32 %v724_v35, %v3823_v14  ;;  %v4200_v48 = vpop.f32.mrb[39].mxu0 }
 0x14f   : > { %5558 = vst [vmem:[#allocation84_spill] sm:$0xff] %v4189_v63  ;;  %v4202_v53 = vpop.f32.mrb[36].mxu1  ;;  %v4204_v54 = vpop.eup %3191  ;;  %3211 = vpow2.f32 %v1048_v62  ;;  %v4206_v38 = vmul.f32 1.442695, %v983_v40  ;;  %v1442_v51 = vsel %vm1250_vm10, %v3956_v9, %v1387_v45  ;;  %v1443_v7 = vsel %vm1251_vm11, %v3973_v46, %v1389_v60 }
 0x150   : > { %5559 = vst [vmem:[#allocation85_spill] sm:$0xff] %v4198_v37  ;;  %5560 = vst [vmem:[#allocation86_spill] sm:$0xff] %v4202_v53  ;;  %v4210_v56 = vpop.f32.mrb[37].mxu1  ;;  %v3194_v58 = vpop.eup %3193  ;;  %3213 = vpow2.f32 %v1328_v34  ;;  %v1239_v35 = vmin.f32 %v4180_v20, 20.0  ;;  %v1470_v49 = vpack.c.bf16 %v1443_v7, %v1442_v51  ;;  %v1634_v27 = vadd.f32 %v4132_v15, %v1442_v51 }
 0x151   : > { %5561 = vst [vmem:[#allocation87_spill] sm:$0xff] %v4210_v56  ;;  %v4214_v3 = vpop.f32.mrb[38].mxu1  ;;  %v3196_v53 = vpop.eup %3195  ;;  %v1351_v0 = vadd.f32 1.0, %v3194_v58  ;;  %3215 = vpow2.f32 %v1304_v43  ;;  %v1227_v62 = vmin.f32 %v4183_v8, 20.0  ;;  %v984_v9 = vmin.f32 %v4189_v63, 20.0 }
 0x152   : > { %5562 = vst [vmem:[#allocation88_spill] sm:$0xff] %v4214_v3  ;;  %v4218_v40 = vpop.f32.mrb[39].mxu1  ;;  %v3198_v46 = vpop.eup %3197  ;;  %v1108_v45 = vadd.f32 1.0, %v3196_v53  ;;  %3217 = vpow2.f32 %v1074_v24  ;;  %v4220_v34 = vadd.f32 %v1634_v27, %v1443_v7  ;;  %1502 = vxpose.xlu1.c.b16.cont [5/8] %v1470_v49, 128  ;;  %v972_v60 = vmin.f32 %v4198_v37, 20.0 }
 0x153   : > { %5563 = vst [vmem:[#allocation89_spill] sm:$0xff] %v4218_v40  ;;  %v4223_v15 = vpop.eup %3199  ;;  %3219 = vlog2.f32 %v1351_v0  ;;  %v1096_v51 = vadd.f32 1.0, %v3198_v46  ;;  %v4227_v58 = vadd.f32 %v3927_v30, %v3825_v2  ;;  %v4230_v43 = vadd.f32 %v726_v21, %v3825_v2  ;;  %v734_v63 = vpop.f32.mrb[40].mxu0 }
 0x154   : > { %5564 = vst [vmem:[#allocation90_spill] sm:$0xff] %v4223_v15  ;;  %v3202_v40 = vpop.eup %3201  ;;  %3221 = vlog2.f32 %v1108_v45  ;;  %v4232_v24 = vmul.f32 1.442695, %v971_v50  ;;  %v4236_v49 = vadd.f32 %v3933_v13, %v3823_v14  ;;  %v4239_v27 = vadd.f32 %v728_v44, %v3823_v14  ;;  %v4241_v0 = vpop.f32.mrb[41].mxu0 }
 0x155   : > { %5565 = vst [vmem:[#allocation91_spill] sm:$0xff] %v4227_v58  ;;  %v4243_v53 = vpop.eup %3203  ;;  %3223 = vlog2.f32 %v1096_v51  ;;  %v1364_v30 = vadd.f32 1.0, %v3202_v40  ;;  %v4245_v21 = vmul.f32 1.442695, %v1239_v35  ;;  %v4247_v7 = vmul.f32 1.442695, %v1227_v62 }
 0x156   : > { %5566 = vst [vmem:[#allocation92_spill] sm:$0xff] %v4236_v49  ;;  %5567 = vst [vmem:[#allocation93_spill] sm:$0xff] %v4239_v27  ;;  %v4249_v46 = vpop.f32.mrb[42].mxu0  ;;  %v3206_v50 = vpop.eup %3205  ;;  %3225 = vpow2.f32 %v4166_v16  ;;  %v4252_v13 = vmul.f32 1.442695, %v984_v9  ;;  %v1240_v62 = vmin.f32 %v4227_v58, 20.0 }
 0x157   : > { %v4254_v45 = vmul.f32 1.442695, %v972_v60  ;;  %v4256_v44 = vpop.f32.mrb[43].mxu0  ;;  %v4258_v37 = vpop.f32.mrb[40].mxu1  ;;  %3227 = vlog2.f32 %v1364_v30  ;;  %v1352_v35 = vadd.f32 1.0, %v3206_v50  ;;  %v1228_v40 = vmin.f32 %v4230_v43, 20.0 }
 0x158   : > { %5568 = vst [vmem:[#allocation94_spill] sm:$0xff] %v4258_v37  ;;  %v4260_v15 = vpop.eup %3207  ;;  %v4264_v51 = vpop.f32.mrb[41].mxu1  ;;  %3229 = vpow2.f32 %v4171_v23  ;;  %v985_v16 = vmin.f32 %v4236_v49, 20.0  ;;  %v973_v9 = vmin.f32 %v4239_v27, 20.0  ;;  %v4271_v60 = vadd.f32 %v3939_v4, %v3825_v2 }
 0x159   : > { %5569 = vst [vmem:[#allocation95_spill] sm:$0xff] %v4260_v15  ;;  %5570 = vst [vmem:[#allocation96_spill] sm:$0xff] %v4264_v51  ;;  %v3210_v3 = vpop.eup %3209  ;;  %3231 = vlog2.f32 %v1352_v35  ;;  %v4275_v50 = vadd.f32 %v4200_v48, %v3825_v2  ;;  %vm1252_vm12 = vcmp.gt.f32.partialorder %v4008_v32, 20.0  ;;  %v4278_v51 = vpop.f32.mrb[42].mxu1  ;;  %v1391_v49 = vmul.f32 0.6931472, %v4174_v18 }
 0x15a   : > { %v3212_v15 = vpop.eup %3211  ;;  %v1109_v30 = vadd.f32 1.0, %v3210_v3  ;;  %5571 = vst [vmem:[#allocation97_spill] sm:$0xff] %v4278_v51  ;;  %3233 = vpow2.f32 %v4176_v12  ;;  %v1393_v4 = vmul.f32 0.6931472, %v4192_v5  ;;  %v4283_v27 = vpop.f32.mrb[43].mxu1  ;;  %vm1253_vm13 = vcmp.gt.f32.partialorder %v4020_v36, 20.0 }
 0x15b   : > { %v3214_v23 = vpop.eup %3213  ;;  %v1097_v37 = vadd.f32 1.0, %v3212_v15  ;;  %5572 = vst [vmem:[#allocation98_spill] sm:$0xff] %v4283_v27  ;;  %v4287_v48 = vadd.f32 %v734_v63, %v3823_v14  ;;  %v744_v56 = vpop.f32.mrb[44].mxu0  ;;  %v1444_v18 = vsel %vm1252_vm12, %v4008_v32, %v1391_v49  ;;  %v1241_v49 = vmin.f32 %v4271_v60, 20.0 }
 0x15c   : > { %v3216_v35 = vpop.eup %3215  ;;  %3235 = vlog2.f32 %v1109_v30  ;;  %v1365_v3 = vadd.f32 1.0, %v3214_v23  ;;  %v1445_v5 = vsel %vm1253_vm13, %v4020_v36, %v1393_v4  ;;  %v746_v12 = vpop.f32.mrb[45].mxu0  ;;  %v1636_v8 = vadd.f32 %v4220_v34, %v1444_v18 }
 0x15d   : > { %v3218_v51 = vpop.eup %3217  ;;  %3237 = vlog2.f32 %v1097_v37  ;;  %v1353_v15 = vadd.f32 1.0, %v3216_v35  ;;  %v1471_v23 = vpack.c.bf16 %v1445_v5, %v1444_v18  ;;  %v748_v58 = vpop.f32.mrb[46].mxu0  ;;  %v1334_v37 = vmul.f32 1.442695, %v1240_v62 }
 0x15e   : > { %v3220_v27 = vpop.eup %3219  ;;  %3239 = vlog2.f32 %v1365_v3  ;;  %v1110_v30 = vadd.f32 1.0, %v3218_v51  ;;  %v4294_v63 = vpop.f32.mrb[44].mxu1  ;;  %v1310_v35 = vmul.f32 1.442695, %v1228_v40  ;;  %v1080_v36 = vmul.f32 1.442695, %v985_v16 }
 0x15f   : > { %v4296_v20 = vpop.eup %3221  ;;  %3241 = vlog2.f32 %v1353_v15  ;;  %v750_v1 = vpop.f32.mrb[47].mxu0  ;;  %v1637_v51 = vadd.f32 %v1636_v8, %v1445_v5  ;;  %1503 = vxpose.xlu1.c.b16.cont [6/8] %v1471_v23, 128  ;;  %v1056_v3 = vmul.f32 1.442695, %v973_v9  ;;  %v1229_v62 = vmin.f32 %v4275_v50, 20.0 }
 0x160   : > { %5573 = vst [vmem:[#allocation99_spill] sm:$0xff] %v4296_v20  ;;  %v4298_v59 = vpop.f32.mrb[45].mxu1  ;;  %v4300_v32 = vpop.eup %3223  ;;  %3243 = vlog2.f32 %v1110_v30  ;;  %v974_v40 = vmin.f32 %v4287_v48, 20.0  ;;  %v4315_v8 = vadd.f32 %v4241_v0, %v3825_v2  ;;  %v4319_v16 = vadd.f32 %v4249_v46, %v3823_v14 }
 0x161   : > { %v4303_v34 = vpop.f32.mrb[46].mxu1  ;;  %v3226_v4 = vpop.eup %3225  ;;  %3245 = vpow2.f32 %v4206_v38  ;;  %v4324_v9 = vadd.f32 %v4256_v44, %v3825_v2  ;;  %vm1254_vm14 = vcmp.gt.f32.partialorder %v4049_v29, 20.0  ;;  %v1395_v5 = vmul.f32 0.6931472, %v4243_v53 }
 0x162   : > { %v4308_v15 = vpop.f32.mrb[47].mxu1  ;;  %v4310_v18 = vpop.eup %3227  ;;  %v1098_v30 = vadd.f32 1.0, %v3226_v4  ;;  %3247 = vpow2.f32 %v4232_v24  ;;  %vm1255_vm15 = vcmp.gt.f32.partialorder %v4061_v57, 20.0  ;;  %v1397_v0 = vmul.f32 0.6931472, %v3220_v27 }
 0x163   : > { %v3230_v38 = vpop.eup %3229  ;;  %3249 = vpow2.f32 %v4245_v21  ;;  %v1446_v21 = vsel %vm1254_vm14, %v4049_v29, %v1395_v5  ;;  %v4334_v46 = vadd.f32 %v744_v56, %v3823_v14  ;;  %v4337_v44 = vadd.f32 %v746_v12, %v3825_v2 }
 0x164   : > { %v3232_v24 = vpop.eup %3231  ;;  %3251 = vlog2.f32 %v1098_v30  ;;  %v1366_v23 = vadd.f32 1.0, %v3230_v38  ;;  %v1447_v53 = vsel %vm1255_vm15, %v4061_v57, %v1397_v0  ;;  %v1638_v30 = vadd.f32 %v1637_v51, %v1446_v21 }
 0x165   : > { %v4329_v4 = vpop.eup %3233  ;;  %3253 = vpow2.f32 %v4247_v7  ;;  %5574 = vst [vmem:[#allocation100_spill] sm:$0xff] %v4334_v46  ;;  %v4343_v27 = vadd.f32 %v748_v58, %v3823_v14  ;;  %v1336_v29 = vmul.f32 1.442695, %v1241_v49  ;;  %v1312_v7 = vmul.f32 1.442695, %v1229_v62 }
 0x166   : > { %v4339_v20 = vpop.eup %3235  ;;  %3255 = vlog2.f32 %v1366_v23  ;;  %v1472_v56 = vpack.c.bf16 %v1447_v53, %v1446_v21  ;;  %v1058_v12 = vmul.f32 1.442695, %v974_v40  ;;  %v4352_v23 = vadd.f32 %v750_v1, %v3825_v2 }
 0x167   : > { %5575 = vst [vmem:[#allocation101_spill] sm:$0xff] %v4339_v20  ;;  %5576 = vst [vmem:[#allocation102_spill] sm:$0xff] %v4343_v27  ;;  %v4345_v38 = vpop.eup %3237  ;;  %3257 = vpow2.f32 %v4252_v13  ;;  %v1639_v20 = vadd.f32 %v1638_v30, %v1447_v53  ;;  %v1230_v14 = vmin.f32 %v4315_v8, 20.0  ;;  %v975_v58 = vmin.f32 %v4319_v16, 20.0 }
 0x168   : > { %v4348_v5 = vpop.eup %3239  ;;  %3259 = vpow2.f32 %v4254_v45  ;;  %v1231_v13 = vmin.f32 %v4324_v9, 20.0  ;;  %1504 = vxpose.xlu1.c.b16.cont [7/8] %v1472_v56, 128  ;;  %vm1266_vm0 = vcmp.gt.f32.partialorder %v3845_v55, 20.0  ;;  %v976_v45 = vmin.f32 %v4334_v46, 20.0 }
 0x169   : > { %v3242_v57 = vpop.eup %3241  ;;  %3261 = vpow2.f32 %v1334_v37  ;;  %v1232_v51 = vmin.f32 %v4337_v44, 20.0  ;;  %v977_v2 = vmin.f32 %v4343_v27, 20.0  ;;  %vm1256_vm1 = vcmp.gt.f32.partialorder %v4092_v19, 20.0 }
 0x16a   : > { %v4358_v49 = vpop.eup %3243  ;;  %3263 = vpow2.f32 %v1310_v35  ;;  %v1399_v37 = vmul.f32 0.6931472, %v3232_v24  ;;  %v1401_v62 = vmul.f32 0.6931472, %v3242_v57  ;;  %v1233_v21 = vmin.f32 %v4352_v23, 20.0 }
 0x16b   : > { %5577 = vst [vmem:[#allocation103_spill] sm:$0xff] %v4358_v49  ;;  %v3246_v1 = vpop.eup %3245  ;;  %3265 = vpow2.f32 %v1080_v36  ;;  %vm1257_vm2 = vcmp.gt.f32.partialorder %v4114_v33, 20.0  ;;  %v4370_v27 = vmul.f32 1.442695, %v1231_v13  ;;  %vm1267_vm3 = vcmp.gt.f32.partialorder %v3855_v41, 20.0 }
 0x16c   : > { %v3248_v40 = vpop.eup %3247  ;;  %v1111_v0 = vadd.f32 1.0, %v3246_v1  ;;  %3267 = vpow2.f32 %v1056_v3  ;;  %v1448_v30 = vsel %vm1256_vm1, %v4092_v19, %v1399_v37  ;;  %v1449_v56 = vsel %vm1257_vm2, %v4114_v33, %v1401_v62 }
 0x16d   : > { %v3250_v35 = vpop.eup %3249  ;;  %v1099_v53 = vadd.f32 1.0, %v3248_v40  ;;  %3269 = vpow2.f32 %v1336_v29  ;;  %v1473_v24 = vpack.c.bf16 %v1449_v56, %v1448_v30  ;;  %v1640_v57 = vadd.f32 %v1639_v20, %v1448_v30 }
 0x16e   : > { %v4368_v49 = vpop.eup %3251  ;;  %3271 = vlog2.f32 %v1111_v0  ;;  %v1367_v36 = vadd.f32 1.0, %v3250_v35  ;;  %v1314_v3 = vmul.f32 1.442695, %v1230_v14  ;;  %v1060_v1 = vmul.f32 1.442695, %v975_v58 }
 0x16f   : > { %v3254_v46 = vpop.eup %3253  ;;  %3273 = vlog2.f32 %v1099_v53  ;;  %v4375_v19 = vmul.f32 1.442695, %v976_v45  ;;  %v4377_v33 = vmul.f32 1.442695, %v1232_v51  ;;  %v4379_v29 = vadd.f32 %v1640_v57, %v1449_v56  ;;  %1505 = vxpose.xlu1.c.b16.end [8/8] %v1473_v24, 128 }
 0x170   : > { %v4373_v40 = vpop.eup %3255  ;;  %3275 = vlog2.f32 %v1367_v36  ;;  %v4381_v20 = vmul.f32 1.442695, %v977_v2  ;;  %v4383_v14 = vmul.f32 1.442695, %v1233_v21  ;;  %v467_v58 = vsub.s32 2, %v3816_v26 }
 0x171   : > { %v3258_v37 = vpop.eup %3257  ;;  %3277 = vpow2.f32 %v1312_v7  ;;  %v4387_v0 = vadd.f32 1.0, %v4329_v4  ;;  %v1419_v45 = vmul.f32 0.6931472, %v4147_v25  ;;  %v4390_v53 = vadd.f32 1.0, %v3254_v46  ;;  %v3395_v7 = vld [vmem:[%s5333_s3] sm:$0x7] }
 0x172   : > { %v3260_v13 = vpop.eup %3259  ;;  %v1112_v62 = vadd.f32 1.0, %v3258_v37  ;;  %3279 = vpow2.f32 %v1058_v12  ;;  %v4395_v2 = vrot.slane %v3395_v7, %v467_v58  ;;  %v1421_v12 = vmul.f32 0.6931472, %v4204_v54 }
 0x173   : > { %v3262_v51 = vpop.eup %3261  ;;  %v1100_v35 = vadd.f32 1.0, %v3260_v13  ;;  %3281 = vpow2.f32 %v1314_v3  ;;  %v4401_v25 = vsel %vm1266_vm0, %v3845_v55, %v1419_v45  ;;  %vm1268_vm4 = vcmp.gt.f32.partialorder %v3900_v61, 20.0 }
 0x174   : > { %v3264_v26 = vpop.eup %3263  ;;  %3283 = vlog2.f32 %v1112_v62  ;;  %v1368_v21 = vadd.f32 1.0, %v3262_v51  ;;  %v4405_v30 = vadd.f32 %v3963_v22, %v4395_v2  ;;  %v4409_v56 = vadd.f32 %v3969_v42, %v4395_v2 }
 0x175   : > { %v3266_v4 = vpop.eup %3265  ;;  %3285 = vlog2.f32 %v1100_v35  ;;  %v1356_v46 = vadd.f32 1.0, %v3264_v26  ;;  %v4414_v55 = vadd.f32 %v3975_v17, %v4395_v2  ;;  %v4418_v24 = vadd.f32 %v3978_v52, %v4395_v2  ;;  %v5594_v52 = vld [vmem:[#allocation91_spill] sm:$0xff] }
 0x176   : > { %v3268_v36 = vpop.eup %3267  ;;  %3287 = vlog2.f32 %v1368_v21  ;;  %v1113_v54 = vadd.f32 1.0, %v3266_v4  ;;  %v4422_v42 = vadd.f32 %v4010_v10, %v4395_v2  ;;  %v4426_v3 = vadd.f32 %v4016_v31, %v4395_v2 }
 0x177   : > { %v3270_v57 = vpop.eup %3269  ;;  %3289 = vlog2.f32 %v1356_v46  ;;  %v1101_v22 = vadd.f32 1.0, %v3268_v36  ;;  %v4438_v10 = vadd.f32 %v4023_v6, %v4395_v2  ;;  %v4442_v31 = vadd.f32 %v4026_v47, %v4395_v2  ;;  %v5580_v46 = vld [vmem:[#allocation63_spill] sm:$0xff] }
 0x178   : > { %v4428_v37 = vpop.eup %3271  ;;  %3291 = vlog2.f32 %v1113_v54  ;;  %v1369_v17 = vadd.f32 1.0, %v3270_v57  ;;  %v4446_v62 = vadd.f32 %v4051_v39, %v4395_v2  ;;  %v4451_v51 = vsel %vm1267_vm3, %v3855_v41, %v1421_v12  ;;  %v5581_v54 = vld [vmem:[#allocation43_spill] sm:$0xff] }
 0x179   : > { %5578 = vst [vmem:[#allocation104_spill] sm:$0xff] %v4428_v37  ;;  %v4434_v13 = vpop.eup %3273  ;;  %3293 = vlog2.f32 %v1101_v22  ;;  %v4455_v35 = vadd.f32 %v4057_v11, %v4395_v2  ;;  %v4459_v6 = vadd.f32 %v4063_v28, %v4395_v2  ;;  %vm1260_vm5 = vcmp.gt.f32.partialorder %v4230_v43, 20.0 }
 0x17a   : > { %v3276_v45 = vpop.eup %3275  ;;  %3295 = vlog2.f32 %v1369_v17  ;;  %v4478_v36 = vadd.f32 %v5580_v46, %v4395_v2  ;;  %vm1269_vm6 = vcmp.gt.f32.partialorder %v5581_v54, 20.0  ;;  %v1423_v17 = vmul.f32 0.6931472, %v4310_v18  ;;  %v5584_v46 = vld [vmem:[#allocation65_spill] sm:$0xff]  ;;  %v5585_v18 = vld [vmem:[#allocation66_spill] sm:$0xff] }
 0x17b   : > { %v3278_v47 = vpop.eup %3277  ;;  %3297 = vpow2.f32 %v1060_v1  ;;  %v5579_v1 = vld [vmem:[#allocation57_spill] sm:$0xff]  ;;  %v4495_v41 = vadd.f32 %v5584_v46, %v4395_v2  ;;  %vm1261_vm8 = vcmp.gt.f32.partialorder %v4275_v50, 20.0  ;;  %v1429_v22 = vmul.f32 0.6931472, %v3276_v45 }
 0x17c   : > { %v3280_v26 = vpop.eup %3279  ;;  %v1357_v11 = vadd.f32 1.0, %v3278_v47  ;;  %3299 = vpow2.f32 %v4370_v27  ;;  %v4473_v21 = vadd.f32 %v5579_v1, %v4395_v2  ;;  %vm1262_vm10 = vcmp.gt.f32.partialorder %v4315_v8, 20.0 }
 0x17d   : > { %v3282_v12 = vpop.eup %3281  ;;  %v1102_v4 = vadd.f32 1.0, %v3280_v26  ;;  %3301 = vpow2.f32 %v4375_v19  ;;  %v1425_v19 = vmul.f32 0.6931472, %v4348_v5  ;;  %v5583_v26 = vld [vmem:[#allocation64_spill] sm:$0xff]  ;;  %v5586_v5 = vld [vmem:[#allocation73_spill] sm:$0xff]  ;;  %vm1272_vm11 = vcmp.gt.f32.partialorder %v5594_v52, 20.0 }
 0x17e   : > { %v4481_v57 = vpop.eup %3283  ;;  %3303 = vlog2.f32 %v1357_v11  ;;  %v1358_v27 = vadd.f32 1.0, %v3282_v12  ;;  %v4491_v1 = vadd.f32 %v5583_v26, %v4395_v2  ;;  %v4500_v12 = vsel %vm1268_vm4, %v3900_v61, %v1423_v17  ;;  %v5588_v61 = vld [vmem:[#allocation71_spill] sm:$0xff] }
 0x17f   : > { %5582 = vst [vmem:[#allocation57_spill] sm:$0xff] %v4481_v57  ;;  %v4486_v47 = vpop.eup %3285  ;;  %3305 = vlog2.f32 %v1102_v4  ;;  %v4504_v4 = vadd.f32 %v5585_v18, %v4395_v2  ;;  %v900_v28 = vadd.f32 %v5586_v5, %v4395_v2  ;;  %v4512_v46 = vsel %vm1269_vm6, %v5581_v54, %v1425_v19  ;;  %v5590_v19 = vld [vmem:[#allocation81_spill] sm:$0xff] }
 0x180   : > { %v3288_v11 = vpop.eup %3287  ;;  %3307 = vlog2.f32 %v1358_v27  ;;  %5587 = vst [vmem:[#allocation63_spill] sm:$0xff] %v4512_v46  ;;  %vm1270_vm7 = vcmp.gt.f32.partialorder %v5588_v61, 20.0  ;;  %vm1271_vm9 = vcmp.gt.f32.partialorder %v5590_v19, 20.0  ;;  %v1427_v27 = vmul.f32 0.6931472, %v4373_v40 }
 0x181   : > { %v3290_v26 = vpop.eup %3289  ;;  %3309 = vpow2.f32 %v4377_v33  ;;  %vm1273_vm12 = vcmp.gt.f32.partialorder %v4271_v60, 20.0  ;;  %vm1263_vm15 = vcmp.gt.f32.partialorder %v4324_v9, 20.0  ;;  %vm1264_vm2 = vcmp.gt.f32.partialorder %v4337_v44, 20.0 }
 0x182   : > { %v4517_v17 = vpop.eup %3291  ;;  %3311 = vpow2.f32 %v4381_v20  ;;  %v1407_v18 = vmul.f32 0.6931472, %v3290_v26  ;;  %v5591_v26 = vld [vmem:[#allocation75_spill] sm:$0xff]  ;;  %v4545_v40 = vsel %vm1270_vm7, %v5588_v61, %v1427_v27  ;;  %v1431_v27 = vmul.f32 0.6931472, %v3288_v11 }
 0x183   : > { %5589 = vst [vmem:[#allocation43_spill] sm:$0xff] %v4517_v17  ;;  %v4525_v54 = vpop.eup %3293  ;;  %3313 = vpow2.f32 %v4383_v14  ;;  %v892_v33 = vadd.f32 %v5591_v26, %v4395_v2  ;;  %v5592_v14 = vld [vmem:[#allocation77_spill] sm:$0xff]  ;;  %vm1265_vm4 = vcmp.gt.f32.partialorder %v4352_v23, 20.0 }
 0x184   : > { %v3296_v39 = vpop.eup %3295  ;;  %3315 = vlog2.f32 %v4387_v0  ;;  %v4534_v20 = vsel %vm1260_vm5, %v4230_v43, %v1407_v18  ;;  %v903_v5 = vadd.f32 %v5592_v14, %v4395_v2  ;;  %v4548_v0 = vsel %vm1271_vm9, %v5590_v19, %v1429_v22  ;;  %v5593_v43 = vld [vmem:[#allocation78_spill] sm:$0xff]  ;;  %v5595_v19 = vld [vmem:[#allocation72_spill] sm:$0xff] }
 0x185   : > { %v3298_v7 = vpop.eup %3297  ;;  %3317 = vlog2.f32 %v4390_v53  ;;  %v895_v45 = vadd.f32 %v5593_v43, %v4395_v2  ;;  %vm1258_vm13 = vcmp.gt.f32.partialorder %v5595_v19, 20.0  ;;  %v1433_v43 = vmul.f32 0.6931472, %v3296_v39 }
 0x186   : > { %v3300_v18 = vpop.eup %3299  ;;  %v1103_v58 = vadd.f32 1.0, %v3298_v7  ;;  %v1491_v14 = vpack.c.bf16 %v903_v5, %v900_v28  ;;  %v5596_v7 = vld [vmem:[#allocation86_spill] sm:$0xff] }
 0x187   : > { %v3302_v53 = vpop.eup %3301  ;;  %v1359_v57 = vadd.f32 1.0, %v3300_v18  ;;  %v1490_v17 = vpack.c.bf16 %v895_v45, %v892_v33  ;;  %v916_v37 = vadd.f32 %v5596_v7, %v4395_v2  ;;  %v5597_v28 = vld [vmem:[#allocation82_spill] sm:$0xff]  ;;  %v4565_v33 = vsel %vm1272_vm11, %v5594_v52, %v1431_v27  ;;  %v5600_v18 = vld [vmem:[#allocation88_spill] sm:$0xff]  ;;  %v5601_v52 = vld [vmem:[#allocation89_spill] sm:$0xff] }
 0x188   : > { %v3304_v61 = vpop.eup %3303  ;;  %3319 = vlog2.f32 %v1103_v58  ;;  %v1104_v22 = vadd.f32 1.0, %v3302_v53  ;;  %vm1259_vm14 = vcmp.gt.f32.partialorder %v5597_v28, 20.0  ;;  %v5598_v58 = vld [vmem:[#allocation87_spill] sm:$0xff]  ;;  %v4572_v39 = vsel %vm1273_vm12, %v4271_v60, %v1433_v43 }
 0x189   : > { %v4559_v46 = vpop.eup %3305  ;;  %3321 = vlog2.f32 %v1359_v57  ;;  %v1409_v5 = vmul.f32 0.6931472, %v3304_v61  ;;  %2833 = vmatprep.subr.bf16.mxu1 %v1490_v17  ;;  %v908_v11 = vadd.f32 %v5598_v58, %v4395_v2  ;;  %v5599_v57 = vpack.c.bf16 %v4418_v24, %v4409_v56  ;;  %v5602_v56 = vld [vmem:[#allocation94_spill] sm:$0xff] }
 0x18a   : > { %v3308_v45 = vpop.eup %3307  ;;  %3323 = vlog2.f32 %v1104_v22  ;;  %v919_v53 = vadd.f32 %v5600_v18, %v4395_v2  ;;  %v911_v17 = vadd.f32 %v5601_v52, %v4395_v2  ;;  %v1481_v60 = vpack.c.bf16 %v4572_v39, %v4565_v33 }
 0x18b   : > { %2834 = vmatpush3.bf16.msra.mxu1 %v5599_v57  ;;  %v3310_v27 = vpop.eup %3309  ;;  %v4584_v61 = vsel %vm1261_vm8, %v4275_v50, %v1409_v5  ;;  %v1411_v22 = vmul.f32 0.6931472, %v3308_v45  ;;  %v4590_v24 = vadd.f32 %v5602_v56, %v4395_v2  ;;  %v5604_v45 = vld [vmem:[#allocation97_spill] sm:$0xff] }
 0x18c   : > { %2835 = vmatprep.subr.bf16.mxu1 %v1491_v14  ;;  %v3312_v43 = vpop.eup %3311  ;;  %v1360_v7 = vadd.f32 1.0, %v3310_v27  ;;  %v1475_v58 = vpack.c.bf16 %v4584_v61, %v4534_v20  ;;  %v1493_v57 = vpack.c.bf16 %v919_v53, %v916_v37  ;;  %v1492_v18 = vpack.c.bf16 %v911_v17, %v908_v11  ;;  %v5603_v14 = vld [vmem:[#allocation96_spill] sm:$0xff]  ;;  %v5606_v53 = vld [vmem:[#allocation98_spill] sm:$0xff] }
 0x18d   : > { %v3314_v52 = vpop.eup %3313  ;;  %v1105_v26 = vadd.f32 1.0, %v3312_v43  ;;  %v4598_v50 = vsel %vm1262_vm10, %v4315_v8, %v1411_v22  ;;  %v924_v5 = vadd.f32 %v5603_v14, %v4395_v2  ;;  %v4604_v27 = vadd.f32 %v5604_v45, %v4395_v2 }
 0x18e   : > { %v3316_v56 = vpop.eup %3315  ;;  %3325 = vlog2.f32 %v1360_v7  ;;  %v1361_v37 = vadd.f32 1.0, %v3314_v52  ;;  %v5605_v11 = vpack.c.bf16 %v4414_v55, %v4405_v30  ;;  %v927_v17 = vadd.f32 %v5606_v53, %v4395_v2  ;;  %v5607_v7 = vld [vmem:[#allocation37_spill] sm:$0xff]  ;;  %v5608_v55 = vld [vmem:[#allocation50_spill] sm:$0xff]  ;;  %v5610_v53 = vld [vmem:[#allocation48_spill] sm:$0xff] }
 0x18f   : > { %v4613_v8 = vadd.f32 %v4294_v63, %v4395_v2  ;;  %v3318_v22 = vpop.eup %3317  ;;  %3327 = vlog2.f32 %v1105_v26  ;;  %v1403_v43 = vmul.f32 0.6931472, %v3316_v56  ;;  %v1495_v14 = vpack.c.bf16 %v4604_v27, %v4590_v24  ;;  %v5609_v63 = vld [vmem:[#allocation36_spill] sm:$0xff] }
 0x190   : > { %2836 = vmatpush3.bf16.msra.mxu1 %v5605_v11  ;;  %vm989_vm0 = vcmp.gt.f32.partialorder %v5607_v7, 20.0  ;;  %3329 = vlog2.f32 %v1361_v37  ;;  %v1405_v52 = vmul.f32 0.6931472, %v3318_v22  ;;  %v1494_v30 = vpack.c.bf16 %v927_v17, %v924_v5  ;;  %v5629_v27 = vld [vmem:[#allocation80_spill] sm:$0xff] }
 0x191   : > { %2837 = vmatprep.subr.bf16.mxu1 %v1492_v18  ;;  %v1121_v45 = vmul.f32 0.6931472, %v5608_v55  ;;  %v1450_v11 = vsel %vm1258_vm13, %v5595_v19, %v1403_v43  ;;  %vm988_vm1 = vcmp.gt.f32.partialorder %v5609_v63, 20.0  ;;  %v1119_v26 = vmul.f32 0.6931472, %v5610_v53 }
 0x192   : > { %v4626_v18 = vadd.f32 %v4298_v59, %v4395_v2  ;;  %v4628_v56 = vpop.eup %3319  ;;  %v1451_v5 = vsel %vm1259_vm14, %v5597_v28, %v1405_v52  ;;  %v1642_v37 = vadd.f32 %v4379_v29, %v1450_v11  ;;  %v5611_v19 = vpack.c.bf16 %v4442_v31, %v4426_v3  ;;  %v5612_v52 = vld [vmem:[#allocation40_spill] sm:$0xff] }
 0x193   : > { %v4639_v17 = vsel %vm989_vm0, %v5607_v7, %v1121_v45  ;;  %v4643_v59 = vadd.f32 %v4303_v34, %v4395_v2  ;;  %v3322_v22 = vpop.eup %3321  ;;  %v1474_v43 = vpack.c.bf16 %v1451_v5, %v1450_v11  ;;  %v4646_v28 = vsel %vm988_vm1, %v5609_v63, %v1119_v26  ;;  %v5613_v45 = vld [vmem:[#allocation54_spill] sm:$0xff] }
 0x194   : > { %2838 = vmatpush3.bf16.msra.mxu1 %v5611_v19  ;;  %v943_v29 = vadd.f32 %v4308_v15, %v4395_v2  ;;  %vm991_vm3 = vcmp.gt.f32.partialorder %v5612_v52, 20.0  ;;  %v4651_v3 = vpop.eup %3323  ;;  %v1643_v31 = vadd.f32 %v1642_v37, %v1451_v5  ;;  %v1413_v7 = vmul.f32 0.6931472, %v3322_v22  ;;  %v5614_v15 = vld [vmem:[#allocation38_spill] sm:$0xff]  ;;  %v5615_v2 = vld [vmem:[#allocation53_spill] sm:$0xff]  ;;  %v5617_v37 = vld [vmem:[#allocation44_spill] sm:$0xff] }
 0x195   : > { %2839 = vmatprep.subr.bf16.mxu1 %v1493_v57  ;;  %v1890_v34 = vpack.c.bf16 %v4639_v17, %v4646_v28  ;;  %v1497_v57 = vpack.c.bf16 %v4643_v59, %v4613_v8  ;;  %1514 = vxpose.xlu0.c.b16.start [1/8] %v1474_v43, 128  ;;  %v1125_v11 = vmul.f32 0.6931472, %v5613_v45  ;;  %vm990_vm5 = vcmp.gt.f32.partialorder %v5614_v15, 20.0  ;;  %v5618_v19 = vld [vmem:[#allocation61_spill] sm:$0xff] }
 0x196   : > { %v1496_v55 = vpack.c.bf16 %v943_v29, %v4626_v18  ;;  %v1123_v63 = vmul.f32 0.6931472, %v5615_v2  ;;  %v1644_v53 = vadd.f32 %v1643_v31, %v4534_v20  ;;  %v1455_v26 = vsel %vm1263_vm15, %v4324_v9, %v1413_v7  ;;  %v5619_v9 = vld [vmem:[#allocation42_spill] sm:$0xff] }
 0x197   : > { %v5616_v5 = vpack.c.bf16 %v4438_v10, %v4422_v42  ;;  %vm993_vm6 = vcmp.gt.f32.partialorder %v5617_v37, 20.0  ;;  %v1129_v18 = vmul.f32 0.6931472, %v5618_v19  ;;  %v1476_v22 = vpack.c.bf16 %v1455_v26, %v4598_v50 }
 0x198   : > { %v4675_v43 = vsel %vm991_vm3, %v5612_v52, %v1125_v11  ;;  %v4678_v29 = vsel %vm990_vm5, %v5614_v15, %v1123_v63  ;;  %vm992_vm7 = vcmp.gt.f32.partialorder %v5619_v9, 20.0  ;;  %v3326_v31 = vpop.eup %3325  ;;  %v1645_v42 = vadd.f32 %v1644_v53, %v4584_v61  ;;  %v5621_v11 = vld [vmem:[#allocation47_spill] sm:$0xff]  ;;  %v5622_v15 = vld [vmem:[#allocation69_spill] sm:$0xff]  ;;  %v5626_v61 = vld [vmem:[#allocation52_spill] sm:$0xff] }
 0x199   : > { %2840 = vmatpush3.bf16.msra.mxu1 %v5616_v5  ;;  %v1891_v10 = vpack.c.bf16 %v4675_v43, %v4678_v29  ;;  %v4685_v7 = vsel %vm993_vm6, %v5617_v37, %v1129_v18  ;;  %v4688_v2 = vpop.eup %3327  ;;  %1515 = vxpose.xlu0.c.b16.cont [2/8] %v1475_v58, 128  ;;  %v1415_v52 = vmul.f32 0.6931472, %v3326_v31  ;;  %vm995_vm8 = vcmp.gt.f32.partialorder %v5621_v11, 20.0  ;;  %v5623_v53 = vld [vmem:[#allocation45_spill] sm:$0xff] }
 0x19a   : > { %2841 = vmatprep.subr.bf16.mxu1 %v1494_v30  ;;  %v5620_v30 = vld [vmem:[#allocation60_spill] sm:$0xff]  ;;  %v1133_v63 = vmul.f32 0.6931472, %v5622_v15  ;;  %vm994_vm9 = vcmp.gt.f32.partialorder %v5623_v53, 20.0  ;;  %v3330_v5 = vpop.eup %3329  ;;  %v1646_v19 = vadd.f32 %v1645_v42, %v4598_v50  ;;  %v5624_v37 = vpack.c.bf16 %v4473_v21, %v4455_v35  ;;  %v5627_v42 = vld [vmem:[#allocation83_spill] sm:$0xff] }
 0x19b   : > { %v1127_v45 = vmul.f32 0.6931472, %v5620_v30  ;;  %v5625_v30 = vld [vmem:[#allocation68_spill] sm:$0xff]  ;;  %vm997_vm10 = vcmp.gt.f32.partialorder %v5626_v61, 20.0  ;;  %v1417_v58 = vmul.f32 0.6931472, %v3330_v5  ;;  %v1456_v31 = vsel %vm1264_vm2, %v4337_v44, %v1415_v52 }
 0x19c   : > { %v1131_v20 = vmul.f32 0.6931472, %v5625_v30  ;;  %v4714_v21 = vsel %vm995_vm8, %v5621_v11, %v1133_v63  ;;  %v1647_v50 = vadd.f32 %v1646_v19, %v1455_v26  ;;  %v5628_v15 = vld [vmem:[#allocation51_spill] sm:$0xff]  ;;  %v5630_v52 = vld [vmem:[#allocation56_spill] sm:$0xff]  ;;  %v5631_v63 = vpack.c.bf16 %v4459_v6, %v4446_v62 }
 0x19d   : > { %2842 = vmatpush3.bf16.msra.mxu1 %v5624_v37  ;;  %v4701_v18 = vsel %vm992_vm7, %v5619_v9, %v1127_v45  ;;  %v1137_v45 = vmul.f32 0.6931472, %v5627_v42  ;;  %vm996_vm11 = vcmp.gt.f32.partialorder %v5628_v15, 20.0  ;;  %1516 = vxpose.xlu0.c.b16.cont [3/8] %v1476_v22, 128  ;;  %v1457_v44 = vsel %vm1265_vm4, %v4352_v23, %v1417_v58  ;;  %v5633_v19 = vld [vmem:[#allocation55_spill] sm:$0xff]  ;;  %v5634_v37 = vld [vmem:[#allocation90_spill] sm:$0xff]  ;;  %v5637_v42 = vld [vmem:[#allocation76_spill] sm:$0xff] }
 0x19e   : > { %2843 = vmatprep.subr.bf16.mxu1 %v1495_v14  ;;  %v1892_v35 = vpack.c.bf16 %v4685_v7, %v4701_v18  ;;  %v4717_v9 = vsel %vm994_vm9, %v5623_v53, %v1131_v20  ;;  %v1135_v14 = vmul.f32 0.6931472, %v5629_v27  ;;  %vm999_vm12 = vcmp.gt.f32.partialorder %v5630_v52, 20.0  ;;  %v5632_v53 = vld [vmem:[#allocation95_spill] sm:$0xff] }
 0x19f   : > { %v1477_v26 = vpack.c.bf16 %v1457_v44, %v1456_v31  ;;  %v1648_v11 = vadd.f32 %v1647_v50, %v1456_v31  ;;  %v4734_v22 = vsel %vm997_vm10, %v5626_v61, %v1137_v45  ;;  %v1141_v23 = vmul.f32 0.6931472, %v5632_v53  ;;  %v5635_v20 = vld [vmem:[#allocation67_spill] sm:$0xff]  ;;  %v5636_v31 = vld [vmem:[#allocation62_spill] sm:$0xff] }
 0x1a0   : > { %v4738_v5 = vsel %vm996_vm11, %v5628_v15, %v1135_v14  ;;  %vm998_vm13 = vcmp.gt.f32.partialorder %v5633_v19, 20.0  ;;  %v1139_v30 = vmul.f32 0.6931472, %v5634_v37  ;;  %vm1001_vm14 = vcmp.gt.f32.partialorder %v5635_v20, 20.0  ;;  %v5639_v14 = vld [vmem:[#allocation70_spill] sm:$0xff]  ;;  %v5645_v37 = vld [vmem:[#allocation63_spill] sm:$0xff] }
 0x1a1   : > { %2844 = vmatpush3.bf16.msra.mxu1 %v5631_v63  ;;  %v1649_v58 = vadd.f32 %v1648_v11, %v1457_v44  ;;  %v4746_v6 = vsel %vm999_vm12, %v5630_v52, %v1141_v23  ;;  %v1145_v61 = vmul.f32 0.6931472, %v4345_v38  ;;  %1517 = vxpose.xlu0.c.b16.cont [4/8] %v1477_v26, 128  ;;  %vm1000_vm15 = vcmp.gt.f32.partialorder %v5636_v31, 20.0 }
 0x1a2   : > { %2845 = vmatprep.subr.bf16.mxu1 %v1496_v55  ;;  %v4750_v55 = vsel %vm998_vm13, %v5633_v19, %v1139_v30  ;;  %v1143_v50 = vmul.f32 0.6931472, %v4300_v32  ;;  %vm1003_vm0 = vcmp.gt.f32.partialorder %v5637_v42, 20.0  ;;  %v5638_v15 = vpack.c.bf16 %v4504_v4, %v4491_v1  ;;  %v5640_v4 = vld [vmem:[#allocation93_spill] sm:$0xff]  ;;  %v5644_v19 = vld [vmem:[#allocation102_spill] sm:$0xff] }
 0x1a3   : > { %v1650_v45 = vadd.f32 %v1649_v58, %v4401_v25  ;;  %v4762_v38 = vsel %vm1001_vm14, %v5635_v20, %v1145_v61  ;;  %v1149_v27 = vmul.f32 0.6931472, %v4434_v13  ;;  %vm1002_vm1 = vcmp.gt.f32.partialorder %v5639_v14, 20.0 }
 0x1a4   : > { %v4769_v32 = vsel %vm1000_vm15, %v5636_v31, %v1143_v50  ;;  %v1147_v1 = vmul.f32 0.6931472, %v4368_v49  ;;  %vm1005_vm2 = vcmp.gt.f32.partialorder %v5640_v4, 20.0  ;;  %v1153_v8 = vmul.f32 0.6931472, %v4525_v54  ;;  %v5642_v49 = vld [vmem:[#allocation85_spill] sm:$0xff] }
 0x1a5   : > { %2846 = vmatpush3.bf16.msra.mxu1 %v5638_v15  ;;  %v1651_v52 = vadd.f32 %v1650_v45, %v4451_v51  ;;  %v4778_v13 = vsel %vm1003_vm0, %v5637_v42, %v1149_v27  ;;  %v5641_v59 = vpack.c.bf16 %v4451_v51, %v4401_v25  ;;  %vm1004_vm3 = vcmp.gt.f32.partialorder %v5642_v49, 20.0  ;;  %v5648_v31 = vld [vmem:[#allocation35_spill] sm:$0xff]  ;;  %v5651_v15 = vld [vmem:[#allocation58_spill] sm:$0xff] }
 0x1a6   : > { %2847 = vmatprep.subr.bf16.mxu1 %v1497_v57  ;;  %v4785_v57 = vsel %vm1002_vm1, %v5639_v14, %v1147_v1  ;;  %v1151_v11 = vmul.f32 0.6931472, %v4486_v47  ;;  %vm1007_vm4 = vcmp.gt.f32.partialorder %v4319_v16, 20.0  ;;  %v5643_v53 = vpack.c.bf16 %v4495_v41, %v4478_v36  ;;  %v5649_v42 = vld [vmem:[#allocation79_spill] sm:$0xff] }
 0x1a7   : > { %1518 = vxpose.xlu0.c.b16.cont [5/8] %v5641_v59, 128  ;;  %v1652_v63 = vadd.f32 %v1651_v52, %v4500_v12  ;;  %v4797_v25 = vsel %vm1005_vm2, %v5640_v4, %v1153_v8  ;;  %v1157_v51 = vmul.f32 0.6931472, %v4628_v56  ;;  %vm1006_vm5 = vcmp.gt.f32.partialorder %v4287_v48, 20.0  ;;  %v5653_v52 = vld [vmem:[#allocation101_spill] sm:$0xff] }
 0x1a8   : > { %v4801_v23 = vsel %vm1004_vm3, %v5642_v49, %v1151_v11  ;;  %v1155_v47 = vmul.f32 0.6931472, %v4559_v46  ;;  %vm1009_vm6 = vcmp.gt.f32.partialorder %v5644_v19, 20.0  ;;  %v1161_v20 = vmul.f32 0.6931472, %v4688_v2  ;;  %v5647_v46 = vld [vmem:[#allocation100_spill] sm:$0xff] }
 0x1a9   : > { %2848 = vmatpush3.bf16.msra.mxu1 %v5643_v53  ;;  %v1653_v41 = vadd.f32 %v1652_v63, %v5645_v37  ;;  %v4810_v30 = vsel %vm1007_vm4, %v4319_v16, %v1157_v51  ;;  %v5646_v56 = vpack.c.bf16 %v5645_v37, %v4500_v12  ;;  %vm1008_vm7 = vcmp.gt.f32.partialorder %v5647_v46, 20.0  ;;  %v5655_v11 = vld [vmem:[#allocation39_spill] sm:$0xff]  ;;  %v5657_v51 = vld [vmem:[#allocation74_spill] sm:$0xff] }
 0x1aa   : > { %v4817_v58 = vsel %vm1006_vm5, %v4287_v48, %v1155_v47  ;;  %v1159_v61 = vmul.f32 0.6931472, %v4651_v3  ;;  %vm1011_vm8 = vcmp.gt.f32.partialorder %v5648_v31, 20.0  ;;  %v4826_v2 = vsel %vm1009_vm6, %v5644_v19, %v1161_v20  ;;  %v5650_v48 = vld [vmem:[#allocation34_spill] sm:$0xff]  ;;  %v5652_v3 = vld [vmem:[#allocation41_spill] sm:$0xff]  ;;  %v5656_v63 = vld [vmem:[#allocation99_spill] sm:$0xff] }
 0x1ab   : > { %1519 = vxpose.xlu0.c.b16.cont [6/8] %v5646_v56, 128  ;;  %v1654_v50 = vadd.f32 %v1653_v41, %v4545_v40  ;;  %v1165_v12 = vmul.f32 0.6931472, %v5649_v42  ;;  %vm1010_vm9 = vcmp.gt.f32.partialorder %v5650_v48, 20.0  ;;  %v1163_v27 = vmul.f32 0.6931472, %v5651_v15  ;;  %v5658_v41 = vld [vmem:[#allocation104_spill] sm:$0xff] }
 0x1ac   : > { %v4830_v45 = vsel %vm1008_vm7, %v5647_v46, %v1159_v61  ;;  %vm1013_vm10 = vcmp.gt.f32.partialorder %v5652_v3, 20.0  ;;  %v1169_v8 = vmul.f32 0.6931472, %v5653_v52  ;;  %v5654_v59 = vpack.c.bf16 %v4548_v0, %v4545_v40  ;;  %v5659_v20 = vld [vmem:[#allocation59_spill] sm:$0xff]  ;;  %v5661_v61 = vld [vmem:[#allocation92_spill] sm:$0xff] }
 0x1ad   : > { %v1655_v14 = vadd.f32 %v1654_v50, %v4548_v0  ;;  %v4839_v4 = vsel %vm1011_vm8, %v5648_v31, %v1165_v12  ;;  %v4846_v49 = vsel %vm1010_vm9, %v5650_v48, %v1163_v27  ;;  %vm1012_vm11 = vcmp.gt.f32.partialorder %v5655_v11, 20.0  ;;  %v5660_v56 = vld [vmem:[#allocation103_spill] sm:$0xff]  ;;  %v5663_v27 = vld [vmem:[#allocation84_spill] sm:$0xff] }
 0x1ae   : > { %v1167_v53 = vmul.f32 0.6931472, %v5656_v63  ;;  %vm1015_vm12 = vcmp.gt.f32.partialorder %v5657_v51, 20.0  ;;  %v4855_v37 = vsel %vm1013_vm10, %v5652_v3, %v1169_v8  ;;  %v1173_v40 = vmul.f32 0.6931472, %v5658_v41  ;;  %v5662_v12 = vld [vmem:[#allocation43_spill] sm:$0xff] }
 0x1af   : > { %1520 = vxpose.xlu0.c.b16.cont [7/8] %v5654_v59, 128  ;;  %v1656_v47 = vadd.f32 %v1655_v14, %v4565_v33  ;;  %vm1014_vm13 = vcmp.gt.f32.partialorder %v5659_v20, 20.0  ;;  %v1171_v46 = vmul.f32 0.6931472, %v5660_v56  ;;  %vm1017_vm14 = vcmp.gt.f32.partialorder %v5661_v61, 20.0  ;;  %v5664_v3 = vld [vmem:[#allocation57_spill] sm:$0xff] }
 0x1b0   : > { %v4859_v0 = vsel %vm1012_vm11, %v5655_v11, %v1167_v53  ;;  %v4868_v42 = vsel %vm1015_vm12, %v5657_v51, %v1173_v40  ;;  %v1177_v48 = vmul.f32 0.6931472, %v5662_v12  ;;  %vm1016_vm15 = vcmp.gt.f32.partialorder %v5663_v27, 20.0  ;;  %v5665_v41 = vld [vmem:[#allocation49_spill] sm:$0xff] }
 0x1b1   : > { %v1657_v31 = vadd.f32 %v1656_v47, %v4572_v39  ;;  %v4875_v15 = vsel %vm1014_vm13, %v5659_v20, %v1171_v46  ;;  %v1175_v14 = vmul.f32 0.6931472, %v5664_v3  ;;  %v5666_v20 = vld [vmem:[#allocation46_spill] sm:$0xff] }
 0x1b2   : > { %v4882_v59 = vsel %vm1017_vm14, %v5661_v61, %v1177_v48 }
 0x1b3   : > { %1521 = vxpose.xlu0.c.b16.end [8/8] %v1481_v60, 128  ;;  %v1658_v52 = vrot.slane %v1657_v31, 4  ;;  %v4885_v11 = vsel %vm1016_vm15, %v5663_v27, %v1175_v14 }
 0x1b5   : > { %v1659_v63 = vadd.f32 %v1658_v52, %v1657_v31 }
 0x1b7   : > { %v1660_v39 = vrot.slane %v1659_v63, 2 }
 0x1b9   : > { %v1661_v60 = vadd.f32 %v1660_v39, %v1659_v63 }
 0x1bb   : > { %v1662_v53 = vrot.slane %v1661_v60, 1 }
 0x1bd   : > { %v1663_v51 = vadd.f32 %v1662_v53, %v1661_v60 }
 0x1bf   : > { %v1664_v47 = vadd.f32 1e-06, %v1663_v51 }
 0x1c1   : > { %v1666_v40 = vmul.f32 %v1664_v47, %v5665_v41  ;;  %v1665_v56 = vmul.f32 %v1664_v47, %v5666_v20  ;;  %v1668_v46 = vmul.f32 %v1664_v47, %v4639_v17  ;;  %v1667_v61 = vmul.f32 %v1664_v47, %v4646_v28 }
 0x1c2   : > { %v1670_v12 = vmul.f32 %v1664_v47, %v4675_v43  ;;  %v1669_v31 = vmul.f32 %v1664_v47, %v4678_v29  ;;  %v1672_v48 = vmul.f32 %v1664_v47, %v4685_v7  ;;  %v1671_v27 = vmul.f32 %v1664_v47, %v4701_v18 }
 0x1c3   : > { %1699 = vadd.xlane.f32.xlu1 %v1666_v40  ;;  %1697 = vadd.xlane.f32.xlu0 %v1665_v56  ;;  %v1674_v3 = vmul.f32 %v1664_v47, %v4714_v21  ;;  %v1673_v14 = vmul.f32 %v1664_v47, %v4717_v9  ;;  %v1676_v52 = vmul.f32 %v1664_v47, %v4734_v22 }
 0x1c4   : > { %v1675_v63 = vmul.f32 %v1664_v47, %v4738_v5  ;;  %v1678_v39 = vmul.f32 %v1664_v47, %v4746_v6  ;;  %v1677_v60 = vmul.f32 %v1664_v47, %v4750_v55  ;;  %v1680_v53 = vmul.f32 %v1664_v47, %v4762_v38 }
 0x1c5   : > { %v1679_v51 = vmul.f32 %v1664_v47, %v4769_v32  ;;  %v1682_v41 = vmul.f32 %v1664_v47, %v4778_v13  ;;  %v1681_v40 = vmul.f32 %v1664_v47, %v4785_v57  ;;  %v1684_v20 = vmul.f32 %v1664_v47, %v4797_v25 }
 0x1c6   : > { %v1683_v56 = vmul.f32 %v1664_v47, %v4801_v23  ;;  %v1686_v33 = vmul.f32 %v1664_v47, %v4810_v30  ;;  %v1685_v8 = vmul.f32 %v1664_v47, %v4817_v58  ;;  %v1688_v50 = vmul.f32 %v1664_v47, %v4826_v2 }
 0x1c7   : > { %1703 = vadd.xlane.f32.xlu1 %v1668_v46  ;;  %1701 = vadd.xlane.f32.xlu0 %v1667_v61  ;;  %v1687_v19 = vmul.f32 %v1664_v47, %v4830_v45  ;;  %v1690_v1 = vmul.f32 %v1664_v47, %v4839_v4  ;;  %v1689_v16 = vmul.f32 %v1664_v47, %v4846_v49 }
 0x1c8   : > { %v1692_v36 = vmul.f32 %v1664_v47, %v4855_v37  ;;  %v1691_v54 = vmul.f32 %v1664_v47, %v4859_v0  ;;  %v1694_v26 = vmul.f32 %v1664_v47, %v4868_v42  ;;  %v1693_v44 = vmul.f32 %v1664_v47, %v4875_v15 }
 0x1c9   : > { %v1696_v62 = vmul.f32 %v1664_v47, %v4882_v59  ;;  %v1695_v24 = vmul.f32 %v1664_v47, %v4885_v11  ;;  %v1506_v47 = vpop.trf.xlu1  ;;  %v5669_v17 = vpack.c.bf16 %v4746_v6, %v4750_v55  ;;  %v5670_v28 = vpack.c.bf16 %v4762_v38, %v4769_v32 }
 0x1ca   : > { %v5672_v43 = vpack.c.bf16 %v4797_v25, %v4801_v23  ;;  %v5673_v29 = vpack.c.bf16 %v4810_v30, %v4817_v58  ;;  %v5675_v7 = vpack.c.bf16 %v4839_v4, %v4846_v49  ;;  %v5676_v18 = vpack.c.bf16 %v4855_v37, %v4859_v0 }
 0x1cb   : > { %1707 = vadd.xlane.f32.xlu1 %v1670_v12  ;;  %1705 = vadd.xlane.f32.xlu0 %v1669_v31  ;;  %v3405_v38 = vmov 0.0  }
 0x1cc   : > { %2335 = vst [vmem:[%s4970_s15] sm:$0xff] %v3405_v38 }
 0x1cd   : > { %v1507_v12 = vpop.trf.xlu1 }
 0x1cf   : > { %1711 = vadd.xlane.f32.xlu1 %v1672_v48  ;;  %1709 = vadd.xlane.f32.xlu0 %v1671_v27 }
 0x1d3   : > { %1715 = vadd.xlane.f32.xlu1 %v1674_v3  ;;  %1713 = vadd.xlane.f32.xlu0 %v1673_v14 }
 0x1d7   : > { %1719 = vadd.xlane.f32.xlu1 %v1676_v52  ;;  %1717 = vadd.xlane.f32.xlu0 %v1675_v63 }
 0x1db   : > { %1723 = vadd.xlane.f32.xlu1 %v1678_v39  ;;  %1721 = vadd.xlane.f32.xlu0 %v1677_v60 }
 0x1df   : > { %1727 = vadd.xlane.f32.xlu1 %v1680_v53  ;;  %1725 = vadd.xlane.f32.xlu0 %v1679_v51 }
 0x1e3   : > { %1731 = vadd.xlane.f32.xlu1 %v1682_v41  ;;  %1729 = vadd.xlane.f32.xlu0 %v1681_v40 }
 0x1e7   : > { %1735 = vadd.xlane.f32.xlu1 %v1684_v20  ;;  %1733 = vadd.xlane.f32.xlu0 %v1683_v56 }
 0x1eb   : > { %1739 = vadd.xlane.f32.xlu1 %v1686_v33  ;;  %1737 = vadd.xlane.f32.xlu0 %v1685_v8 }
 0x1ef   : > { %1743 = vadd.xlane.f32.xlu1 %v1688_v50  ;;  %1741 = vadd.xlane.f32.xlu0 %v1687_v19  ;;  %v1508_v50 = vpop.trf.xlu1 }
 0x1f3   : > { %1747 = vadd.xlane.f32.xlu1 %v1690_v1  ;;  %1745 = vadd.xlane.f32.xlu0 %v1689_v16 }
 0x1f7   : > { %1751 = vadd.xlane.f32.xlu1 %v1692_v36  ;;  %1749 = vadd.xlane.f32.xlu0 %v1691_v54  ;;  %v1509_v36 = vpop.trf.xlu1 }
 0x1fb   : > { %1755 = vadd.xlane.f32.xlu1 %v1694_v26  ;;  %1753 = vadd.xlane.f32.xlu0 %v1693_v44  ;;  %v1510_v44 = vpop.trf.xlu1 }
 0x1fd   : > { %v1522_v46 = vpop.trf.xlu0 }
 0x1fe   : > { %1562 = vmatprep.mubr.bf16.mxu1 %v1522_v46 }
 0x1ff   : > { %1563 = vmatmul.mubr.bf16.vlgmr.msra.gmra.mrb[48].mxu1 %v1506_v47  ;;  %1759 = vadd.xlane.f32.xlu1 %v1696_v62  ;;  %v1511_v62 = vpop.trf.xlu1 }
 0x200   : > { %1757 = vadd.xlane.f32.xlu0 %v1695_v24 }
 0x201   : > { %v1523_v61 = vpop.trf.xlu0 }
 0x202   : > { %1570 = vmatprep.mubr.bf16.mxu1 %v1523_v61 }
 0x203   : > { %v1512_v16 = vpop.trf.xlu1 }
 0x205   : > { %v1524_v31 = vpop.trf.xlu0 }
 0x207   : > { %1571 = vmatmul.mubr.bf16.gmra.mrb[52].mxu1 %v1507_v12  ;;  %v1513_v8 = vpop.trf.xlu1 }
 0x208   : > { %1578 = vmatprep.mubr.bf16.mxu1 %v1524_v31 }
 0x209   : > { %v1525_v19 = vpop.trf.xlu0 }
 0x20d   : > { %v1526_v54 = vpop.trf.xlu0 }
 0x20f   : > { %1579 = vmatmul.mubr.bf16.gmra.mrb[56].mxu1 %v1508_v50 }
 0x210   : > { %1586 = vmatprep.mubr.bf16.mxu1 %v1525_v19 }
 0x211   : > { %v1527_v26 = vpop.trf.xlu0 }
 0x215   : > { %v1528_v24 = vpop.trf.xlu0 }
 0x217   : > { %1587 = vmatmul.mubr.bf16.gmra.mrb[60].mxu1 %v1509_v36 }
 0x218   : > { %1594 = vmatprep.mubr.bf16.mxu1 %v1526_v54 }
 0x219   : > { %v1529_v1 = vpop.trf.xlu0 }
 0x21f   : > { %1595 = vmatmul.mubr.bf16.gmra.mrb[64].mxu1 %v1510_v44 }
 0x220   : > { %1602 = vmatprep.mubr.bf16.mxu1 %v1527_v26 }
 0x227   : > { %1603 = vmatmul.mubr.bf16.gmra.mrb[68].mxu1 %v1511_v62 }
 0x228   : > { %1610 = vmatprep.mubr.bf16.mxu1 %v1528_v24 }
 0x22f   : > { %1611 = vmatmul.mubr.bf16.gmra.mrb[72].mxu1 %v1512_v16 }
 0x230   : > { %1618 = vmatprep.mubr.bf16.mxu1 %v1529_v1 }
 0x237   : > { %1619 = vmatmul.mubr.bf16.gmra.mrb[76].mxu1 %v1513_v8 }
 0x2d2   : > { %v2849_v33 = vpop.f32.mrb[48].mxu1 }
 0x2d3   : > { %v2850_v48 = vpop.f32.mrb[49].mxu1 }
 0x2d4   : > { %v2851_v27 = vadd.f32 %v2850_v48, %v2849_v33  ;;  %v2852_v3 = vpop.f32.mrb[50].mxu1 }
 0x2d5   : > { %v2853_v14 = vpop.f32.mrb[51].mxu1 }
 0x2d6   : > { %v2854_v52 = vadd.f32 %v2853_v14, %v2852_v3 }
 0x2d8   : > { %v1905_v63 = vpack.c.bf16 %v2854_v52, %v2851_v27 }
 0x2da   : > { %v2855_v39 = vpop.f32.mrb[52].mxu1  ;;  %2969 = vmatprep.subr.bf16.mxu0 %v1905_v63 }
 0x2db   : > { %v2856_v60 = vpop.f32.mrb[53].mxu1  ;;  %2970 = vmatpush3.bf16.msra.mxu0 %v1905_v63 }
 0x2dc   : > { %v2857_v53 = vadd.f32 %v2856_v60, %v2855_v39  ;;  %v2858_v51 = vpop.f32.mrb[54].mxu1 }
 0x2dd   : > { %v2859_v41 = vpop.f32.mrb[55].mxu1 }
 0x2de   : > { %v2860_v40 = vadd.f32 %v2859_v41, %v2858_v51 }
 0x2e0   : > { %v1906_v20 = vpack.c.bf16 %v2860_v40, %v2857_v53 }
 0x2e2   : > { %2971 = vmatprep.subr.bf16.mxu0 %v1906_v20  ;;  %v2861_v56 = vpop.f32.mrb[56].mxu1 }
 0x2e3   : > { %2972 = vmatpush3.bf16.msra.mxu0 %v1906_v20  ;;  %v2862_v47 = vpop.f32.mrb[57].mxu1 }
 0x2e4   : > { %v2863_v46 = vadd.f32 %v2862_v47, %v2861_v56  ;;  %v2864_v61 = vpop.f32.mrb[58].mxu1 }
 0x2e5   : > { %v2865_v12 = vpop.f32.mrb[59].mxu1 }
 0x2e6   : > { %v2866_v31 = vadd.f32 %v2865_v12, %v2864_v61 }
 0x2e8   : > { %v1907_v50 = vpack.c.bf16 %v2866_v31, %v2863_v46 }
 0x2ea   : > { %2973 = vmatprep.subr.bf16.mxu0 %v1907_v50  ;;  %v2867_v19 = vpop.f32.mrb[60].mxu1 }
 0x2eb   : > { %2974 = vmatpush3.bf16.msra.mxu0 %v1907_v50  ;;  %v2868_v36 = vpop.f32.mrb[61].mxu1 }
 0x2ec   : > { %v2869_v54 = vadd.f32 %v2868_v36, %v2867_v19  ;;  %v2870_v44 = vpop.f32.mrb[62].mxu1 }
 0x2ed   : > { %v2871_v26 = vpop.f32.mrb[63].mxu1 }
 0x2ee   : > { %v2872_v62 = vadd.f32 %v2871_v26, %v2870_v44  ;;  %v5667_v26 = vpack.c.bf16 %v4714_v21, %v4717_v9  ;;  %v5678_v21 = vpack.c.bf16 %v4882_v59, %v4885_v11  ;;  %v1700_v9 = vpop.xlane.xlu1 %1699 }
 0x2ef   : > { %3331 = vrcp.f32 %v1700_v9 }
 0x2f0   : > { %v1908_v24 = vpack.c.bf16 %v2872_v62, %v2869_v54  ;;  %v5668_v62 = vpack.c.bf16 %v4734_v22, %v4738_v5  ;;  %v1698_v22 = vpop.xlane.xlu0 %1697 }
 0x2f1   : > { %3333 = vrcp.f32 %v1698_v22 }
 0x2f2   : > { %2975 = vmatprep.subr.bf16.mxu0 %v1908_v24  ;;  %v2873_v16 = vpop.f32.mrb[64].mxu1  ;;  %v1704_v5 = vpop.xlane.xlu1 %1703 }
 0x2f3   : > { %2976 = vmatpush3.bf16.msra.mxu0 %v1908_v24  ;;  %v2874_v1 = vpop.f32.mrb[65].mxu1  ;;  %3335 = vrcp.f32 %v1704_v5 }
 0x2f4   : > { %v2875_v8 = vadd.f32 %v2874_v1, %v2873_v16  ;;  %v2876_v33 = vpop.f32.mrb[66].mxu1  ;;  %v1702_v6 = vpop.xlane.xlu0 %1701 }
 0x2f5   : > { %v2877_v48 = vpop.f32.mrb[67].mxu1  ;;  %3337 = vrcp.f32 %v1702_v6 }
 0x2f6   : > { %v2878_v27 = vadd.f32 %v2877_v48, %v2876_v33  ;;  %v1708_v55 = vpop.xlane.xlu1 %1707 }
 0x2f7   : > { %3339 = vrcp.f32 %v1708_v55 }
 0x2f8   : > { %v1909_v3 = vpack.c.bf16 %v2878_v27, %v2875_v8  ;;  %v1706_v32 = vpop.xlane.xlu0 %1705 }
 0x2f9   : > { %3341 = vrcp.f32 %v1706_v32  ;;  %v3332_v0 = vpop.eup %3331 }
 0x2fa   : > { %v2879_v14 = vpop.f32.mrb[68].mxu1  ;;  %2977 = vmatprep.subr.bf16.mxu0 %v1909_v3  ;;  %v1794_v27 = vmul.f32 %v3332_v0, %v1700_v9 }
 0x2fb   : > { %v2880_v52 = vpop.f32.mrb[69].mxu1  ;;  %2978 = vmatpush3.bf16.msra.mxu0 %v1909_v3 }
 0x2fc   : > { %v2881_v63 = vadd.f32 %v2880_v52, %v2879_v14  ;;  %v2882_v39 = vpop.f32.mrb[70].mxu1 }
 0x2fd   : > { %v2883_v60 = vpop.f32.mrb[71].mxu1 }
 0x2fe   : > { %v2884_v53 = vadd.f32 %v2883_v60, %v2882_v39 }
 0x300   : > { %v1910_v51 = vpack.c.bf16 %v2884_v53, %v2881_v63 }
 0x302   : > { %v2885_v41 = vpop.f32.mrb[72].mxu1  ;;  %2979 = vmatprep.subr.bf16.mxu0 %v1910_v51 }
 0x303   : > { %v2886_v40 = vpop.f32.mrb[73].mxu1  ;;  %2980 = vmatpush3.bf16.msra.mxu0 %v1910_v51 }
 0x304   : > { %v2887_v20 = vadd.f32 %v2886_v40, %v2885_v41  ;;  %v2888_v56 = vpop.f32.mrb[74].mxu1  ;;  %v1826_v40 = vsub.f32 2.0, %v1794_v27 }
 0x305   : > { %v2889_v47 = vpop.f32.mrb[75].mxu1 }
 0x306   : > { %v2890_v46 = vadd.f32 %v2889_v47, %v2888_v56 }
 0x308   : > { %v1911_v61 = vpack.c.bf16 %v2890_v46, %v2887_v20 }
 0x30a   : > { %v2891_v12 = vpop.f32.mrb[76].mxu1  ;;  %2981 = vmatprep.subr.bf16.mxu0 %v1911_v61 }
 0x30b   : > { %v2892_v31 = vpop.f32.mrb[77].mxu1  ;;  %2982 = vmatpush3.bf16.msra.mxu0 %v1911_v61 }
 0x30c   : > { %v2893_v50 = vadd.f32 %v2892_v31, %v2891_v12  ;;  %v2894_v19 = vpop.f32.mrb[78].mxu1 }
 0x30d   : > { %v2895_v36 = vpop.f32.mrb[79].mxu1 }
 0x30e   : > { %v2896_v54 = vadd.f32 %v2895_v36, %v2894_v19 }
 0x310   : > { %v1912_v44 = vpack.c.bf16 %v2896_v54, %v2893_v50 }
 0x312   : > { %2983 = vmatprep.subr.bf16.mxu0 %v1912_v44 }
 0x313   : > { %2984 = vmatpush3.bf16.msra.mxu0 %v1912_v44 }
 0x316   : > { %2986 = vmatmul.mubr.bf16.vlgmr.msra.gmra.mrb[48].mxu0 %v1890_v34  ;;  %v5671_v34 = vpack.c.bf16 %v4778_v13, %v4785_v57  ;;  %v1712_v13 = vpop.xlane.xlu1 %1711  ;;  %v1710_v57 = vpop.xlane.xlu0 %1709 }
 0x317   : > { %2989 = vmatprep.mubr.bf16.mxu0 %v1891_v10  ;;  %v5674_v10 = vpack.c.bf16 %v4826_v2, %v4830_v45  ;;  %3343 = vrcp.f32 %v1712_v13 }
 0x318   : > { %3345 = vrcp.f32 %v1710_v57 }
 0x31a   : > { %v1716_v25 = vpop.xlane.xlu1 %1715  ;;  %v1714_v23 = vpop.xlane.xlu0 %1713 }
 0x31b   : > { %3347 = vrcp.f32 %v1716_v25 }
 0x31c   : > { %3349 = vrcp.f32 %v1714_v23 }
 0x31e   : > { %2990 = vmatmul.mubr.bf16.gmra.mrb[52].mxu0 %v1892_v35  ;;  %v5677_v35 = vpack.c.bf16 %v4868_v42, %v4875_v15  ;;  %v1720_v30 = vpop.xlane.xlu1 %1719  ;;  %v4973_v58 = vpop.xlane.xlu0 %1717 }
 0x31f   : > { %2993 = vmatprep.mubr.bf16.mxu0 %v5667_v26  ;;  %3351 = vrcp.f32 %v1720_v30  ;;  %v3334_v15 = vpop.eup %3333 }
 0x320   : > { %3353 = vrcp.f32 %v4973_v58  ;;  %v3336_v59 = vpop.eup %3335  ;;  %v1793_v3 = vmul.f32 %v3334_v15, %v1698_v22 }
 0x321   : > { %v3338_v11 = vpop.eup %3337  ;;  %v1796_v52 = vmul.f32 %v3336_v59, %v1704_v5 }
 0x322   : > { %v4975_v2 = vpop.xlane.xlu1 %1723  ;;  %v4977_v45 = vpop.xlane.xlu0 %1721  ;;  %v1795_v53 = vmul.f32 %v3338_v11, %v1702_v6  ;;  %v1825_v20 = vsub.f32 2.0, %v1793_v3 }
 0x323   : > { %3355 = vrcp.f32 %v4975_v2  ;;  %v3340_v16 = vpop.eup %3339  ;;  %v1828_v46 = vsub.f32 2.0, %v1796_v52 }
 0x324   : > { %3357 = vrcp.f32 %v4977_v45  ;;  %v3342_v1 = vpop.eup %3341  ;;  %v1798_v51 = vmul.f32 %v3340_v16, %v1708_v55  ;;  %v1827_v44 = vsub.f32 2.0, %v1795_v53 }
 0x325   : > { %v4994_v8 = vpop.eup %3343  ;;  %v1797_v56 = vmul.f32 %v3342_v1, %v1706_v32  ;;  %v1860_v9 = vmul.f32 %v3336_v59, %v1828_v46 }
 0x326   : > { %2994 = vmatmul.mubr.bf16.gmra.mrb[56].mxu0 %v5668_v62  ;;  %v4979_v4 = vpop.xlane.xlu1 %1727  ;;  %v4981_v49 = vpop.xlane.xlu0 %1725  ;;  %v1800_v61 = vmul.f32 %v4994_v8, %v1712_v13  ;;  %v1830_v26 = vsub.f32 2.0, %v1798_v51 }
 0x327   : > { %2997 = vmatprep.mubr.bf16.mxu0 %v5669_v17  ;;  %3359 = vrcp.f32 %v4979_v4  ;;  %v3346_v48 = vpop.eup %3345 }
 0x328   : > { %3361 = vrcp.f32 %v4981_v49  ;;  %v3348_v14 = vpop.eup %3347  ;;  %v1799_v12 = vmul.f32 %v3346_v48, %v1710_v57 }
 0x329   : > { %v3350_v63 = vpop.eup %3349  ;;  %v1802_v19 = vmul.f32 %v3348_v14, %v1716_v25  ;;  %v1859_v25 = vmul.f32 %v3338_v11, %v1827_v44 }
 0x32a   : > { %v4983_v37 = vpop.xlane.xlu1 %1731  ;;  %v4985_v42 = vpop.xlane.xlu0 %1729  ;;  %v1801_v36 = vmul.f32 %v3350_v63, %v1714_v23  ;;  %v5031_v23 = vmul.f32 %v3340_v16, %v1830_v26 }
 0x32b   : > { %3363 = vrcp.f32 %v4983_v37  ;;  %v3352_v60 = vpop.eup %3351  ;;  %v1834_v5 = vsub.f32 2.0, %v1802_v19 }
 0x32c   : > { %3365 = vrcp.f32 %v4985_v42  ;;  %v5004_v41 = vpop.eup %3353  ;;  %v1804_v62 = vmul.f32 %v3352_v60, %v1720_v30  ;;  %v1833_v6 = vsub.f32 2.0, %v1801_v36 }
 0x32d   : > { %v5006_v47 = vpop.eup %3355  ;;  %v5047_v53 = vmul.f32 %v3348_v14, %v1834_v5 }
 0x32e   : > { %2998 = vmatmul.mubr.bf16.gmra.mrb[60].mxu0 %v5670_v28  ;;  %v4990_v24 = vpop.xlane.xlu1 %1735  ;;  %v4997_v33 = vpop.xlane.xlu0 %1733  ;;  %v1829_v28 = vsub.f32 2.0, %v1797_v56  ;;  %v1836_v32 = vsub.f32 2.0, %v1804_v62  ;;  %v5045_v52 = vmul.f32 %v3350_v63, %v1833_v6 }
 0x32f   : > { %3001 = vmatprep.mubr.bf16.mxu0 %v5671_v34  ;;  %3367 = vrcp.f32 %v4990_v24  ;;  %v5011_v50 = vpop.eup %3357  ;;  %v1803_v34 = vmul.f32 %v5004_v41, %v4973_v58 }
 0x330   : > { %3369 = vrcp.f32 %v4997_v33  ;;  %v1805_v55 = vmul.f32 %v5011_v50, %v4977_v45  ;;  %v5036_v45 = vmul.f32 %v3342_v1, %v1829_v28 }
 0x331   : > { %v5013_v54 = vpop.eup %3359  ;;  %v1835_v58 = vsub.f32 2.0, %v1803_v34 }
 0x332   : > { %v5002_v39 = vpop.xlane.xlu1 %1739  ;;  %v5009_v31 = vpop.xlane.xlu0 %1737  ;;  %v1808_v13 = vmul.f32 %v5013_v54, %v4979_v4  ;;  %v1837_v3 = vsub.f32 2.0, %v1805_v55 }
 0x333   : > { %3371 = vrcp.f32 %v5002_v39  ;;  %v5016_v17 = vpop.eup %3361  ;;  %v5059_v14 = vmul.f32 %v5004_v41, %v1835_v58 }
 0x334   : > { %3373 = vrcp.f32 %v5009_v31  ;;  %v5071_v41 = vmul.f32 %v5011_v50, %v1837_v3 }
 0x336   : > { %3002 = vmatmul.mubr.bf16.gmra.mrb[64].mxu0 %v5672_v43  ;;  %v5020_v43 = vpop.xlane.xlu1 %1743  ;;  %v5029_v57 = vpop.xlane.xlu0 %1741 }
 0x337   : > { %3005 = vmatprep.mubr.bf16.mxu0 %v5673_v29  ;;  %v1857_v29 = vmul.f32 %v3334_v15, %v1825_v20  ;;  %3375 = vrcp.f32 %v5020_v43 }
 0x338   : > { %3377 = vrcp.f32 %v5029_v57 }
 0x33a   : > { %v5043_v16 = vpop.xlane.xlu1 %1747  ;;  %v5064_v20 = vpop.xlane.xlu0 %1745 }
 0x33b   : > { %3379 = vrcp.f32 %v5043_v16 }
 0x33c   : > { %3381 = vrcp.f32 %v5064_v20 }
 0x33e   : > { %3006 = vmatmul.mubr.bf16.gmra.mrb[68].mxu0 %v5674_v10  ;;  %v1858_v10 = vmul.f32 %v3332_v0, %v1826_v40  ;;  %v5105_v58 = vpop.xlane.xlu0 %1749 }
 0x33f   : > { %3009 = vmatprep.mubr.bf16.mxu0 %v5675_v7  ;;  %v3364_v7 = vpop.eup %3363 }
 0x340   : > { %v3366_v22 = vpop.eup %3365  ;;  %v1810_v0 = vmul.f32 %v3364_v7, %v4983_v37 }
 0x341   : > { %v3368_v38 = vpop.eup %3367  ;;  %v1809_v59 = vmul.f32 %v3366_v22, %v4985_v42  ;;  %v5054_v42 = vld [vmem:[%s5331_s1 + $0x2] ss:$0 sm:$0xff] }
 0x342   : > { %v3370_v30 = vpop.eup %3369  ;;  %v1812_v11 = vmul.f32 %v3368_v38, %v4990_v24 }
 0x343   : > { %v1811_v37 = vmul.f32 %v3370_v30, %v4997_v33  ;;  %v5061_v40 = vpop.eup %3371  ;;  %v1841_v33 = vsub.f32 2.0, %v1809_v59 }
 0x344   : > { %v5077_v34 = vpop.eup %3373 }
 0x345   : > { %v1843_v44 = vsub.f32 2.0, %v1811_v37  ;;  %v5093_v5 = vmul.f32 %v3366_v22, %v1841_v33  ;;  %v5685_v22 = vld [vmem:[#allocation3_spill] sm:$0xff]  ;;  %v5118_v37 = vpop.eup %3375 }
 0x346   : > { %3010 = vmatmul.mubr.bf16.gmra.mrb[72].mxu0 %v5676_v18  ;;  %v1832_v18 = vsub.f32 2.0, %v1800_v61 }
 0x347   : > { %3013 = vmatprep.mubr.bf16.mxu0 %v5677_v35  ;;  %v1831_v35 = vsub.f32 2.0, %v1799_v12 }
 0x348   : > { %v5040_v4 = vmul.f32 %v4994_v8, %v1832_v18  ;;  %v5056_v8 = vmul.f32 %v3352_v60, %v1836_v32  ;;  %v1844_v60 = vsub.f32 2.0, %v1812_v11  ;;  %v5683_v32 = vld [vmem:[#allocation7_spill] sm:$0xff] }
 0x349   : > { %v1863_v27 = vmul.f32 %v3346_v48, %v1831_v35  ;;  %v1842_v48 = vsub.f32 2.0, %v1810_v0 }
 0x34b   : > { %v5087_v35 = vmul.f32 %v3364_v7, %v1842_v48  ;;  %v1813_v7 = vmul.f32 %v5077_v34, %v5009_v31 }
 0x34e   : > { %3014 = vmatmul.mubr.bf16.gmra.mrb[76].mxu0 %v5678_v21  ;;  %v1806_v21 = vmul.f32 %v5006_v47, %v4975_v2  ;;  %v1807_v2 = vmul.f32 %v5016_v17, %v4981_v49  ;;  %v1840_v49 = vsub.f32 2.0, %v1808_v13  ;;  %v5684_v13 = vmax.f32 %v5683_v32, 0.0 }
 0x350   : > { %v1838_v15 = vsub.f32 2.0, %v1806_v21  ;;  %v1839_v24 = vsub.f32 2.0, %v1807_v2  ;;  %v5075_v28 = vmul.f32 %v5013_v54, %v1840_v49  ;;  %v5686_v2 = vmax.f32 %v5685_v22, 0.0 }
 0x352   : > { %v5067_v61 = vmul.f32 %v5006_v47, %v1838_v15  ;;  %v1814_v47 = vmul.f32 %v5061_v40, %v5002_v39  ;;  %v5085_v50 = vmul.f32 %v5016_v17, %v1839_v24  ;;  %v5681_v39 = vld [vmem:[#allocation6_spill] sm:$0xff] }
 0x353   : > { %v5682_v6 = vmax.f32 %v5681_v39, 0.0 }
 0x354   : > { %v1846_v59 = vsub.f32 2.0, %v1814_v47 }
 0x3e9   : > { %v2987_v1 = vpop.f32.mrb[48].mxu0 }
 0x3ea   : > { %v2076_v51 = vmul.f32 %v2987_v1, %v1859_v25  ;;  %v1947_v63 = vpop.f32.mrb[49].mxu0  ;;  %v5100_v25 = vmul.f32 %v3368_v38, %v1844_v60  ;;  %v5116_v38 = vmul.f32 %v3370_v30, %v1843_v44  ;;  %v5125_v60 = vpop.eup %3377  ;;  %v1816_v44 = vmul.f32 %v5118_v37, %v5020_v43  ;;  %v5691_v43 = vld [vmem:[#allocation19_spill] sm:$0xff] }
 0x3eb   : > { %v2074_v56 = vmul.f32 %v1947_v63, %v1857_v29  ;;  %v2988_v46 = vpop.f32.mrb[50].mxu0  ;;  %v5081_v29 = vpop.xlane.xlu1 %1751  ;;  %v5140_v39 = vmul.f32 %v5125_v60, %v5029_v57  ;;  %v5692_v32 = vmax.f32 %v5691_v43, 0.0 }
 0x3ec   : > { %v2113_v12 = vmul.f32 %v5054_v42, %v2076_v51  ;;  %v2077_v19 = vmul.f32 %v2988_v46, %v1860_v9  ;;  %v1950_v36 = vpop.f32.mrb[51].mxu0  ;;  %3383 = vrcp.f32 %v5081_v29  ;;  %v5149_v22 = vpop.eup %3379 }
 0x3ed   : > { %v2111_v26 = vmul.f32 %v5054_v42, %v2074_v56  ;;  %v2075_v62 = vmul.f32 %v1950_v36, %v1858_v10  ;;  %v5679_v10 = vld [vmem:[#allocation2_spill] sm:$0xff]  ;;  %3385 = vrcp.f32 %v5105_v58 }
 0x3ee   : > { %v2114_v18 = vmul.f32 %v5054_v42, %v2077_v19  ;;  %v5680_v54 = vmax.f32 %v5679_v10, 0.0  ;;  %v2145_v55 = vadd.f32 %v2113_v12, %v5682_v6 }
 0x3ef   : > { %v2112_v9 = vmul.f32 %v5054_v42, %v2075_v62  ;;  %v5133_v47 = vpop.xlane.xlu1 %1755 }
 0x3f0   : > { %v2143_v21 = vadd.f32 %v2111_v26, %v5680_v54  ;;  %v2146_v17 = vadd.f32 %v2114_v18, %v5684_v13  ;;  %v2376_v33 = vmul.f32 %v2145_v55, %v2145_v55  ;;  %v5687_v18 = vld [vmem:[#allocation10_spill] sm:$0xff]  ;;  %3387 = vrcp.f32 %v5133_v47 }
 0x3f1   : > { %v2144_v0 = vadd.f32 %v2112_v9, %v5686_v2  ;;  %v2991_v15 = vpop.f32.mrb[52].mxu0  ;;  %v5688_v10 = vmax.f32 %v5687_v18, 0.0 }
 0x3f2   : > { %v2374_v3 = vmul.f32 %v2143_v21, %v2143_v21  ;;  %v2707_v31 = vpack.c.bf16 %v2146_v17, %v2145_v55  ;;  %v2080_v11 = vmul.f32 %v2991_v15, %v1863_v27  ;;  %v1963_v49 = vpop.f32.mrb[53].mxu0  ;;  %v2377_v26 = vmul.f32 %v2146_v17, %v2146_v17  ;;  %v5693_v15 = vld [vmem:[#allocation11_spill] sm:$0xff] }
 0x3f3   : > { %v2702_v1 = vpack.c.bf16 %v2144_v0, %v2143_v21  ;;  %v2336_v24 = vadd.f32 %v2144_v0, %v2143_v21  ;;  %v2375_v48 = vmul.f32 %v2144_v0, %v2144_v0  ;;  %v2078_v51 = vmul.f32 %v1963_v49, %v5036_v45  ;;  %v2992_v63 = vpop.f32.mrb[54].mxu0 }
 0x3f4   : > { %2794 = vst [vmem:[%s5112_s22 + $0x8] sm:$0xff] %v2707_v31   ;;  %v2117_v30 = vmul.f32 %v5054_v42, %v2080_v11  ;;  %v2081_v56 = vmul.f32 %v2992_v63, %v5040_v4  ;;  %v1966_v46 = vpop.f32.mrb[55].mxu0  ;;  %v1845_v45 = vsub.f32 2.0, %v1813_v7  ;;  %v5147_v7 = vmul.f32 %v5061_v40, %v1846_v59  ;;  %v5153_v11 = vpop.eup %3381 }
 0x3f5   : > { %2703 = vst [vmem:[%s5112_s22] sm:$0xff] %v2702_v1   ;;  %v2337_v27 = vadd.f32 %v2336_v24, %v2145_v55  ;;  %v2406_v12 = vadd.f32 %v2375_v48, %v2374_v3  ;;  %v2115_v19 = vmul.f32 %v5054_v42, %v2078_v51  ;;  %v2079_v36 = vmul.f32 %v1966_v46, %v5031_v23  ;;  %v5689_v23 = vld [vmem:[#allocation18_spill] sm:$0xff]  ;;  %v5162_v48 = vpop.xlane.xlu0 %1753 }
 0x3f6   : > { %v2118_v62 = vmul.f32 %v5054_v42, %v2081_v56  ;;  %v5690_v6 = vmax.f32 %v5689_v23, 0.0  ;;  %v5694_v3 = vmax.f32 %v5693_v15, 0.0  ;;  %v5158_v40 = vmul.f32 %v5077_v34, %v1845_v45  ;;  %v5160_v59 = vpop.eup %3383 }
 0x3f7   : > { %v2407_v4 = vadd.f32 %v2406_v12, %v2376_v33  ;;  %v2147_v54 = vadd.f32 %v2115_v19, %v5688_v10  ;;  %v2338_v21 = vadd.f32 %v2337_v27, %v2146_v17  ;;  %v2116_v9 = vmul.f32 %v5054_v42, %v2079_v36 }
 0x3f8   : > { %v2149_v55 = vadd.f32 %v2117_v30, %v5690_v6  ;;  %v2150_v13 = vadd.f32 %v2118_v62, %v5692_v32  ;;  %v1848_v46 = vsub.f32 2.0, %v1816_v44  ;;  %v5170_v62 = vpop.eup %3385  ;;  %3389 = vrcp.f32 %v5162_v48  ;;  %v5699_v32 = vld [vmem:[#allocation27_spill] sm:$0xff] }
 0x3f9   : > { %v2339_v2 = vadd.f32 %v2338_v21, %v2147_v54  ;;  %v2378_v0 = vmul.f32 %v2147_v54, %v2147_v54  ;;  %v2408_v17 = vadd.f32 %v2407_v4, %v2377_v26  ;;  %v2148_v31 = vadd.f32 %v2116_v9, %v5694_v3  ;;  %v2995_v57 = vpop.f32.mrb[56].mxu0  ;;  %v5695_v9 = vld [vmem:[#allocation26_spill] sm:$0xff] }
 0x3fa   : > { %v2717_v49 = vpack.c.bf16 %v2150_v13, %v2149_v55  ;;  %v2084_v1 = vmul.f32 %v2995_v57, %v5059_v14  ;;  %v1979_v24 = vpop.f32.mrb[57].mxu0  ;;  %v2380_v34 = vmul.f32 %v2149_v55, %v2149_v55  ;;  %v1847_v4 = vsub.f32 2.0, %v5140_v39  ;;  %v5697_v39 = vld [vmem:[#allocation24_spill] sm:$0xff] }
 0x3fb   : > { %v2409_v51 = vadd.f32 %v2408_v17, %v2378_v0  ;;  %v2712_v63 = vpack.c.bf16 %v2148_v31, %v2147_v54  ;;  %v2340_v33 = vadd.f32 %v2339_v2, %v2148_v31  ;;  %v2379_v30 = vmul.f32 %v2148_v31, %v2148_v31  ;;  %v2996_v56 = vpop.f32.mrb[58].mxu0 }
 0x3fc   : > { %2796 = vst [vmem:[%s5112_s22 + $0x18] sm:$0xff] %v2717_v49   ;;  %v2121_v27 = vmul.f32 %v5054_v42, %v2084_v1  ;;  %v2082_v14 = vmul.f32 %v1979_v24, %v5045_v52  ;;  %v2085_v12 = vmul.f32 %v2996_v56, %v5056_v8  ;;  %v1982_v19 = vpop.f32.mrb[59].mxu0  ;;  %v5176_v52 = vpop.xlane.xlu1 %1759  ;;  %v2381_v8 = vmul.f32 %v2150_v13, %v2150_v13 }
 0x3fd   : > { %2795 = vst [vmem:[%s5112_s22 + $0x10] sm:$0xff] %v2712_v63   ;;  %v2341_v36 = vadd.f32 %v2340_v33, %v2149_v55  ;;  %v2410_v45 = vadd.f32 %v2409_v51, %v2379_v30  ;;  %v2083_v26 = vmul.f32 %v1982_v19, %v5047_v53  ;;  %v1818_v53 = vmul.f32 %v5149_v22, %v5043_v16 }
 0x3fe   : > { %v2119_v44 = vmul.f32 %v5054_v42, %v2082_v14  ;;  %v2122_v18 = vmul.f32 %v5054_v42, %v2085_v12  ;;  %v5696_v23 = vmax.f32 %v5695_v9, 0.0  ;;  %v5698_v55 = vmax.f32 %v5697_v39, 0.0  ;;  %v5201_v14 = vpop.xlane.xlu0 %1757  ;;  %v5705_v9 = vld [vmem:[#allocation30_spill] sm:$0xff] }
 0x3ff   : > { %v2411_v10 = vadd.f32 %v2410_v45, %v2380_v34  ;;  %v2342_v54 = vadd.f32 %v2341_v36, %v2150_v13  ;;  %v2120_v21 = vmul.f32 %v5054_v42, %v2083_v26  ;;  %v5700_v2 = vmax.f32 %v5699_v32, 0.0  ;;  %v5701_v13 = vld [vmem:[#allocation25_spill] sm:$0xff] }
 0x400   : > { %v2153_v6 = vadd.f32 %v2121_v27, %v5696_v23  ;;  %v2151_v43 = vadd.f32 %v2119_v44, %v5698_v55  ;;  %v5189_v17 = vmul.f32 %v5153_v11, %v5064_v20  ;;  %v5702_v3 = vmax.f32 %v5701_v13, 0.0  ;;  %v5199_v27 = vpop.eup %3387  ;;  %v5707_v55 = vld [vmem:[#allocation31_spill] sm:$0xff]  ;;  %v5709_v13 = vld [vmem:[#allocation29_spill] sm:$0xff] }
 0x401   : > { %v2154_v0 = vadd.f32 %v2122_v18, %v5700_v2  ;;  %v2412_v15 = vadd.f32 %v2411_v10, %v2381_v8  ;;  %v2999_v57 = vpop.f32.mrb[60].mxu0  ;;  %v5194_v16 = vmul.f32 %v5118_v37, %v1848_v46  ;;  %3391 = vrcp.f32 %v5176_v52  ;;  %v5703_v10 = vld [vmem:[#allocation28_spill] sm:$0xff] }
 0x402   : > { %v2152_v31 = vadd.f32 %v2120_v21, %v5702_v3  ;;  %v2343_v49 = vadd.f32 %v2342_v54, %v2151_v43  ;;  %v2382_v1 = vmul.f32 %v2151_v43, %v2151_v43  ;;  %v1995_v51 = vpop.f32.mrb[61].mxu0  ;;  %v2088_v20 = vmul.f32 %v2999_v57, %v5085_v50  ;;  %v5217_v21 = vpop.eup %3389 }
 0x403   : > { %v2727_v24 = vpack.c.bf16 %v2154_v0, %v2153_v6  ;;  %v2086_v30 = vmul.f32 %v1995_v51, %v5071_v41  ;;  %v3000_v56 = vpop.f32.mrb[62].mxu0  ;;  %v5206_v34 = vmul.f32 %v5125_v60, %v1847_v4  ;;  %v1850_v36 = vsub.f32 2.0, %v1818_v53 }
 0x404   : > { %v2722_v63 = vpack.c.bf16 %v2152_v31, %v2151_v43  ;;  %v2383_v33 = vmul.f32 %v2152_v31, %v2152_v31  ;;  %v2413_v37 = vadd.f32 %v2412_v15, %v2382_v1  ;;  %v2344_v46 = vadd.f32 %v2343_v49, %v2152_v31  ;;  %v1998_v19 = vpop.f32.mrb[63].mxu0 }
 0x405   : > { %2798 = vst [vmem:[%s5112_s22 + $0x28] sm:$0xff] %v2727_v24   ;;  %v2089_v12 = vmul.f32 %v3000_v56, %v5075_v28  ;;  %v2125_v50 = vmul.f32 %v5054_v42, %v2088_v20  ;;  %v2123_v41 = vmul.f32 %v5054_v42, %v2086_v30  ;;  %v2087_v45 = vmul.f32 %v1998_v19, %v5067_v61 }
 0x406   : > { %2797 = vst [vmem:[%s5112_s22 + $0x20] sm:$0xff] %v2722_v63   ;;  %v2384_v26 = vmul.f32 %v2153_v6, %v2153_v6  ;;  %v2345_v44 = vadd.f32 %v2344_v46, %v2153_v6  ;;  %v2414_v18 = vadd.f32 %v2413_v37, %v2383_v33  ;;  %3393 = vrcp.f32 %v5201_v14 }
 0x407   : > { %v2126_v8 = vmul.f32 %v5054_v42, %v2089_v12  ;;  %v2385_v28 = vmul.f32 %v2154_v0, %v2154_v0  ;;  %v5704_v54 = vmax.f32 %v5703_v10, 0.0  ;;  %v2124_v4 = vmul.f32 %v5054_v42, %v2087_v45 }
 0x408   : > { %v2415_v53 = vadd.f32 %v2414_v18, %v2384_v26  ;;  %v5706_v23 = vmax.f32 %v5705_v9, 0.0  ;;  %v2346_v61 = vadd.f32 %v2345_v44, %v2154_v0  ;;  %v5708_v6 = vmax.f32 %v5707_v55, 0.0  ;;  %v5711_v44 = vld [vmem:[#allocation32_spill] sm:$0xff]  ;;  %v5715_v9 = vld [vmem:[#allocation15_spill] sm:$0xff] }
 0x409   : > { %v2155_v60 = vadd.f32 %v2123_v41, %v5704_v54  ;;  %v1849_v32 = vsub.f32 2.0, %v5189_v17  ;;  %v1820_v2 = vmul.f32 %v5160_v59, %v5081_v29  ;;  %v5710_v3 = vmax.f32 %v5709_v13, 0.0  ;;  %v3003_v57 = vpop.f32.mrb[64].mxu0  ;;  %v5713_v54 = vld [vmem:[#allocation14_spill] sm:$0xff] }
 0x40a   : > { %v2157_v39 = vadd.f32 %v2125_v50, %v5706_v23  ;;  %v2158_v43 = vadd.f32 %v2126_v8, %v5708_v6  ;;  %v2416_v1 = vadd.f32 %v2415_v53, %v2385_v28  ;;  %v2011_v51 = vpop.f32.mrb[65].mxu0  ;;  %v5229_v0 = vmul.f32 %v5149_v22, %v1850_v36 }
 0x40b   : > { %v2386_v15 = vmul.f32 %v2155_v60, %v2155_v60  ;;  %v2156_v31 = vadd.f32 %v2124_v4, %v5710_v3  ;;  %v2347_v49 = vadd.f32 %v2346_v61, %v2155_v60  ;;  %v2092_v17 = vmul.f32 %v3003_v57, %v5116_v38  ;;  %v3004_v20 = vpop.f32.mrb[66].mxu0  ;;  %v5233_v30 = vpop.eup %3391 }
 0x40c   : > { %v2737_v24 = vpack.c.bf16 %v2158_v43, %v2157_v39  ;;  %v2090_v29 = vmul.f32 %v2011_v51, %v5093_v5  ;;  %v1819_v56 = vmul.f32 %v5170_v62, %v5105_v58  ;;  %v2093_v12 = vmul.f32 %v3004_v20, %v5100_v25  ;;  %v2014_v19 = vpop.f32.mrb[67].mxu0 }
 0x40d   : > { %v2732_v63 = vpack.c.bf16 %v2156_v31, %v2155_v60  ;;  %v2387_v33 = vmul.f32 %v2156_v31, %v2156_v31  ;;  %v2417_v37 = vadd.f32 %v2416_v1, %v2386_v15  ;;  %v2348_v46 = vadd.f32 %v2347_v49, %v2156_v31 }
 0x40e   : > { %2800 = vst [vmem:[%s5112_s22 + $0x38] sm:$0xff] %v2737_v24   ;;  %v1852_v22 = vsub.f32 2.0, %v1820_v2  ;;  %v2129_v36 = vmul.f32 %v5054_v42, %v2092_v17  ;;  %v2127_v38 = vmul.f32 %v5054_v42, %v2090_v29  ;;  %v2091_v5 = vmul.f32 %v2014_v19, %v5087_v35  ;;  %v5717_v2 = vld [vmem:[#allocation33_spill] sm:$0xff] }
 0x40f   : > { %2799 = vst [vmem:[%s5112_s22 + $0x30] sm:$0xff] %v2732_v63   ;;  %v2388_v50 = vmul.f32 %v2157_v39, %v2157_v39  ;;  %v2349_v41 = vadd.f32 %v2348_v46, %v2157_v39  ;;  %v2418_v45 = vadd.f32 %v2417_v37, %v2387_v33  ;;  %v2130_v26 = vmul.f32 %v5054_v42, %v2093_v12 }
 0x410   : > { %v2389_v58 = vmul.f32 %v2158_v43, %v2158_v43  ;;  %v5712_v18 = vmax.f32 %v5711_v44, 0.0  ;;  %v2128_v25 = vmul.f32 %v5054_v42, %v2091_v5  ;;  %v1881_v28 = vmul.f32 %v5153_v11, %v1849_v32  ;;  %v5252_v39 = vpop.eup %3393 }
 0x411   : > { %v2419_v10 = vadd.f32 %v2418_v45, %v2388_v50  ;;  %v5714_v60 = vmax.f32 %v5713_v54, 0.0  ;;  %v2350_v53 = vadd.f32 %v2349_v41, %v2158_v43  ;;  %v5716_v35 = vmax.f32 %v5715_v9, 0.0  ;;  %v3007_v32 = vpop.f32.mrb[68].mxu0  ;;  %v5721_v41 = vld [vmem:[#allocation20_spill] sm:$0xff] }
 0x412   : > { %v2159_v8 = vadd.f32 %v2127_v38, %v5712_v18  ;;  %v1851_v61 = vsub.f32 2.0, %v1819_v56  ;;  %v5256_v55 = vmul.f32 %v5199_v27, %v5133_v47  ;;  %v5718_v15 = vmax.f32 %v5717_v2, 0.0  ;;  %v2027_v31 = vpop.f32.mrb[69].mxu0 }
 0x413   : > { %v2161_v4 = vadd.f32 %v2129_v36, %v5714_v60  ;;  %v2162_v23 = vadd.f32 %v2130_v26, %v5716_v35  ;;  %v2420_v3 = vadd.f32 %v2419_v10, %v2389_v58  ;;  %v1884_v57 = vmul.f32 %v5160_v59, %v1852_v22  ;;  %v3008_v51 = vpop.f32.mrb[70].mxu0 }
 0x414   : > { %v2390_v6 = vmul.f32 %v2159_v8, %v2159_v8  ;;  %v2160_v11 = vadd.f32 %v2128_v25, %v5718_v15  ;;  %v2351_v13 = vadd.f32 %v2350_v53, %v2159_v8  ;;  %v2096_v24 = vmul.f32 %v3007_v32, %v5206_v34  ;;  %v2030_v20 = vpop.f32.mrb[71].mxu0  ;;  %v5725_v25 = vld [vmem:[#allocation17_spill] sm:$0xff] }
 0x415   : > { %v2747_v43 = vpack.c.bf16 %v2162_v23, %v2161_v4  ;;  %v2094_v47 = vmul.f32 %v2027_v31, %v5158_v40  ;;  %v5265_v63 = vmul.f32 %v5217_v21, %v5162_v48  ;;  %v2097_v29 = vmul.f32 %v3008_v51, %v5194_v16  ;;  %v5719_v16 = vld [vmem:[#allocation16_spill] sm:$0xff] }
 0x416   : > { %v2742_v49 = vpack.c.bf16 %v2160_v11, %v2159_v8  ;;  %v2391_v1 = vmul.f32 %v2160_v11, %v2160_v11  ;;  %v2421_v33 = vadd.f32 %v2420_v3, %v2390_v6  ;;  %v2352_v17 = vadd.f32 %v2351_v13, %v2160_v11 }
 0x417   : > { %2802 = vst [vmem:[%s5112_s22 + $0x48] sm:$0xff] %v2747_v43   ;;  %v2133_v59 = vmul.f32 %v5054_v42, %v2096_v24  ;;  %v2131_v56 = vmul.f32 %v5054_v42, %v2094_v47  ;;  %v2095_v34 = vmul.f32 %v2030_v20, %v5147_v7  ;;  %v1883_v40 = vmul.f32 %v5170_v62, %v1851_v61  ;;  %v5723_v62 = vld [vmem:[#allocation21_spill] sm:$0xff] }
 0x418   : > { %2801 = vst [vmem:[%s5112_s22 + $0x40] sm:$0xff] %v2742_v49   ;;  %v2392_v37 = vmul.f32 %v2161_v4, %v2161_v4  ;;  %v2353_v46 = vadd.f32 %v2352_v17, %v2161_v4  ;;  %v2422_v12 = vadd.f32 %v2421_v33, %v2391_v1  ;;  %v2134_v48 = vmul.f32 %v5054_v42, %v2097_v29  ;;  %v5727_v33 = vld [vmem:[#allocation4_spill] sm:$0xff] }
 0x419   : > { %v1824_v19 = vmul.f32 %v5233_v30, %v5176_v52  ;;  %v2393_v22 = vmul.f32 %v2162_v23, %v2162_v23  ;;  %v5720_v36 = vmax.f32 %v5719_v16, 0.0  ;;  %v2132_v5 = vmul.f32 %v5054_v42, %v2095_v34  ;;  %v3011_v60 = vpop.f32.mrb[72].mxu0 }
 0x41a   : > { %v2423_v50 = vadd.f32 %v2422_v12, %v2392_v37  ;;  %v5722_v45 = vmax.f32 %v5721_v41, 0.0  ;;  %v2354_v26 = vadd.f32 %v2353_v46, %v2162_v23  ;;  %v5724_v58 = vmax.f32 %v5723_v62, 0.0  ;;  %v2043_v23 = vpop.f32.mrb[73].mxu0  ;;  %v5731_v46 = vld [vmem:[#allocation9_spill] sm:$0xff] }
 0x41b   : > { %v2163_v38 = vadd.f32 %v2131_v56, %v5720_v36  ;;  %v1854_v18 = vsub.f32 2.0, %v5256_v55  ;;  %v1823_v8 = vmul.f32 %v5252_v39, %v5201_v14  ;;  %v5726_v10 = vmax.f32 %v5725_v25, 0.0  ;;  %v3012_v15 = vpop.f32.mrb[74].mxu0  ;;  %v5729_v56 = vld [vmem:[#allocation8_spill] sm:$0xff] }
 0x41c   : > { %v2165_v7 = vadd.f32 %v2133_v59, %v5722_v45  ;;  %v2166_v44 = vadd.f32 %v2134_v48, %v5724_v58  ;;  %v1853_v4 = vsub.f32 2.0, %v5265_v63  ;;  %v2424_v9 = vadd.f32 %v2423_v50, %v2393_v22  ;;  %v2046_v3 = vpop.f32.mrb[75].mxu0 }
 0x41d   : > { %v2394_v52 = vmul.f32 %v2163_v38, %v2163_v38  ;;  %v2164_v54 = vadd.f32 %v2132_v5, %v5726_v10  ;;  %v2355_v53 = vadd.f32 %v2354_v26, %v2163_v38  ;;  %v2100_v2 = vmul.f32 %v3011_v60, %v1883_v40 }
 0x41e   : > { %v2757_v35 = vpack.c.bf16 %v2166_v44, %v2165_v7  ;;  %v2098_v55 = vmul.f32 %v2043_v23, %v1881_v28  ;;  %v1856_v11 = vsub.f32 2.0, %v1824_v19  ;;  %v2101_v13 = vmul.f32 %v3012_v15, %v1884_v57  ;;  %v5733_v19 = vld [vmem:[#allocation5_spill] sm:$0xff] }
 0x41f   : > { %v2752_v61 = vpack.c.bf16 %v2164_v54, %v2163_v38  ;;  %v2395_v6 = vmul.f32 %v2164_v54, %v2164_v54  ;;  %v2425_v14 = vadd.f32 %v2424_v9, %v2394_v52  ;;  %v2356_v32 = vadd.f32 %v2355_v53, %v2164_v54 }
 0x420   : > { %2804 = vst [vmem:[%s5112_s22 + $0x58] sm:$0xff] %v2757_v35   ;;  %v1855_v43 = vsub.f32 2.0, %v1823_v8  ;;  %v2137_v31 = vmul.f32 %v5054_v42, %v2100_v2  ;;  %v2135_v49 = vmul.f32 %v5054_v42, %v2098_v55  ;;  %v2099_v1 = vmul.f32 %v2046_v3, %v5229_v0  ;;  %v5735_v35 = vld [vmem:[#allocation12_spill] sm:$0xff]  ;;  %v5737_v55 = vld [vmem:[#allocation22_spill] sm:$0xff] }
 0x421   : > { %2803 = vst [vmem:[%s5112_s22 + $0x50] sm:$0xff] %v2752_v61   ;;  %v2396_v24 = vmul.f32 %v2165_v7, %v2165_v7  ;;  %v2357_v47 = vadd.f32 %v2356_v32, %v2165_v7  ;;  %v2426_v51 = vadd.f32 %v2425_v14, %v2395_v6  ;;  %v2138_v28 = vmul.f32 %v5054_v42, %v2101_v13  ;;  %v3015_v38 = vpop.f32.mrb[76].mxu0  ;;  %v5739_v32 = vld [vmem:[#allocation23_spill] sm:$0xff] }
 0x422   : > { %v2397_v63 = vmul.f32 %v2166_v44, %v2166_v44  ;;  %v5728_v17 = vmax.f32 %v5727_v33, 0.0  ;;  %v2136_v57 = vmul.f32 %v5054_v42, %v2099_v1  ;;  %v1886_v20 = vmul.f32 %v5199_v27, %v1854_v18  ;;  %v2059_v45 = vpop.f32.mrb[77].mxu0 }
 0x423   : > { %v2427_v59 = vadd.f32 %v2426_v51, %v2396_v24  ;;  %v5730_v34 = vmax.f32 %v5729_v56, 0.0  ;;  %v2358_v37 = vadd.f32 %v2357_v47, %v2166_v44  ;;  %v5732_v0 = vmax.f32 %v5731_v46, 0.0  ;;  %v3016_v18 = vpop.f32.mrb[78].mxu0 }
 0x424   : > { %v2167_v29 = vadd.f32 %v2135_v49, %v5728_v17  ;;  %v5734_v22 = vmax.f32 %v5733_v19, 0.0  ;;  %v1887_v36 = vmul.f32 %v5252_v39, %v1855_v43  ;;  %v1885_v5 = vmul.f32 %v5217_v21, %v1853_v4  ;;  %v2062_v39 = vpop.f32.mrb[79].mxu0 }
 0x425   : > { %v2169_v40 = vadd.f32 %v2137_v31, %v5730_v34  ;;  %v2170_v12 = vadd.f32 %v2138_v28, %v5732_v0  ;;  %v2428_v50 = vadd.f32 %v2427_v59, %v2397_v63  ;;  %v1888_v7 = vmul.f32 %v5233_v30, %v1856_v11  ;;  %v5741_v31 = vld [vmem:[#allocation13_spill] sm:$0xff] }
 0x426   : > { %v2398_v48 = vmul.f32 %v2167_v29, %v2167_v29  ;;  %v2168_v16 = vadd.f32 %v2136_v57, %v5734_v22  ;;  %v2359_v27 = vadd.f32 %v2358_v37, %v2167_v29  ;;  %v2104_v58 = vmul.f32 %v3015_v38, %v1887_v36 }
 0x427   : > { %v2767_v41 = vpack.c.bf16 %v2170_v12, %v2169_v40  ;;  %v2102_v44 = vmul.f32 %v2059_v45, %v1885_v5  ;;  %v2105_v25 = vmul.f32 %v3016_v18, %v1888_v7  ;;  %v2103_v54 = vmul.f32 %v2062_v39, %v1886_v20 }
 0x428   : > { %v2762_v26 = vpack.c.bf16 %v2168_v16, %v2167_v29  ;;  %v2399_v62 = vmul.f32 %v2168_v16, %v2168_v16  ;;  %v2429_v8 = vadd.f32 %v2428_v50, %v2398_v48  ;;  %v2360_v52 = vadd.f32 %v2359_v27, %v2168_v16 }
 0x429   : > { %2806 = vst [vmem:[%s5112_s22 + $0x68] sm:$0xff] %v2767_v41   ;;  %v2141_v21 = vmul.f32 %v5054_v42, %v2104_v58  ;;  %v2139_v10 = vmul.f32 %v5054_v42, %v2102_v44  ;;  %v2400_v60 = vmul.f32 %v2169_v40, %v2169_v40  ;;  %v2142_v30 = vmul.f32 %v5054_v42, %v2105_v25 }
 0x42a   : > { %2805 = vst [vmem:[%s5112_s22 + $0x60] sm:$0xff] %v2762_v26   ;;  %v2361_v4 = vadd.f32 %v2360_v52, %v2169_v40  ;;  %v2430_v53 = vadd.f32 %v2429_v8, %v2399_v62  ;;  %v2401_v9 = vmul.f32 %v2170_v12, %v2170_v12  ;;  %v5736_v23 = vmax.f32 %v5735_v35, 0.0 }
 0x42b   : > { %v2140_v6 = vmul.f32 %v5054_v42, %v2103_v54  ;;  %v5738_v15 = vmax.f32 %v5737_v55, 0.0  ;;  %v5740_v13 = vmax.f32 %v5739_v32, 0.0  ;;  %v5742_v49 = vmax.f32 %v5741_v31, 0.0 }
 0x42c   : > { %v2171_v61 = vadd.f32 %v2139_v10, %v5736_v23  ;;  %v2431_v2 = vadd.f32 %v2430_v53, %v2400_v60  ;;  %v2362_v14 = vadd.f32 %v2361_v4, %v2170_v12 }
 0x42d   : > { %v2173_v11 = vadd.f32 %v2141_v21, %v5738_v15  ;;  %v2174_v3 = vadd.f32 %v2142_v30, %v5740_v13  ;;  %v2172_v1 = vadd.f32 %v2140_v6, %v5742_v49 }
 0x42e   : > { %v2402_v43 = vmul.f32 %v2171_v61, %v2171_v61  ;;  %v2363_v24 = vadd.f32 %v2362_v14, %v2171_v61  ;;  %v2432_v47 = vadd.f32 %v2431_v2, %v2401_v9 }
 0x42f   : > { %v2777_v51 = vpack.c.bf16 %v2174_v3, %v2173_v11  ;;  %v2772_v28 = vpack.c.bf16 %v2172_v1, %v2171_v61  ;;  %v2403_v63 = vmul.f32 %v2172_v1, %v2172_v1  ;;  %v2404_v17 = vmul.f32 %v2173_v11, %v2173_v11 }
 0x430   : > { %v2433_v33 = vadd.f32 %v2432_v47, %v2402_v43  ;;  %v2364_v42 = vadd.f32 %v2363_v24, %v2172_v1  ;;  %v2405_v20 = vmul.f32 %v2174_v3, %v2174_v3 }
 0x431   : > { %2808 = vst [vmem:[%s5112_s22 + $0x78] sm:$0xff] %v2777_v51   ;;  %2807 = vst [vmem:[%s5112_s22 + $0x70] sm:$0xff] %v2772_v28  }
 0x432   : > { %v2365_v29 = vadd.f32 %v2364_v42, %v2173_v11  ;;  %v2434_v57 = vadd.f32 %v2433_v33, %v2403_v63 }
 0x434   : > { %v2366_v59 = vadd.f32 %v2365_v29, %v2174_v3  ;;  %v2435_v56 = vadd.f32 %v2434_v57, %v2404_v17 }
 0x436   : > { %v2367_v34 = vrot.slane %v2366_v59, 4  ;;  %v2436_v40 = vadd.f32 %v2435_v56, %v2405_v20 }
 0x438   : > { %v2368_v37 = vadd.f32 %v2367_v34, %v2366_v59  ;;  %v2437_v46 = vrot.slane %v2436_v40, 4 }
 0x43a   : > { %v2369_v0 = vrot.slane %v2368_v37, 2  ;;  %v2438_v12 = vadd.f32 %v2437_v46, %v2436_v40 }
 0x43c   : > { %v2370_v48 = vadd.f32 %v2369_v0, %v2368_v37  ;;  %v2439_v19 = vrot.slane %v2438_v12, 2 }
 0x43e   : > { %v2371_v22 = vrot.slane %v2370_v48, 1  ;;  %v2440_v16 = vadd.f32 %v2439_v19, %v2438_v12 }
 0x440   : > { %v2372_v36 = vadd.f32 %v2371_v22, %v2370_v48  ;;  %v2441_v38 = vrot.slane %v2440_v16, 1 }
 0x442   : > { %2373 = vst [vmem:[%s4970_s15] sm:$0x1] %v2372_v36  ;;  %v2442_v5 = vadd.f32 %v2441_v38, %v2440_v16 }
 0x444   : > { %2443 = vst [vmem:[%s4970_s15 + $0x1] sm:$0x1] %v2442_v5 }
 0x445 PF: > { %s16_s18 = sadd.s32 1, %s3402_s18  }
 0x446   : > { %p13_p4 = scmp.ge.s32.totalorder %s16_s18, 4  }
 0x448   :  { %15 = sbr.rel (!%p13_p4) target bundleno = 1 (0x1), region = 78 }

</bundles_post_ra>
